<compile_context>
chip_gen: v7x
topology: tpu7x:2x2x1
jax: 0.10.0
libtpu: 0.0.40
codegen_flags: <defaults>
</compile_context>

<pallas_src>
import functools
import math

import jax
import jax.numpy as jnp
from jax import lax
from jax.experimental import pallas as pl
from jax.experimental.pallas import tpu as pltpu

EXPANSION = 4          # Bottleneck.expansion
_BN_EPS = 1e-5


# ------------------------------ Pallas kernel -------------------------------

def _bottleneck_kernel(*refs, bN, L, L2, stride, has_downsample, cm):
    """Fused Bottleneck forward for bN batch elements (channels-last)."""
    if has_downsample:
        (x_ref, res_ref, w1_ref, s1_ref, w2_ref, s2_ref, w3_ref, s3_ref,
         wd_ref, sd_ref, o_ref, a1_ref, a2_ref) = refs
    else:
        (x_ref, w1_ref, s1_ref, w2_ref, s2_ref, w3_ref, s3_ref,
         o_ref, a1_ref, a2_ref) = refs
        res_ref = wd_ref = sd_ref = None

    f32 = jnp.float32
    bf16 = jnp.bfloat16
    OFF1 = 16   # conv1-output staging row offset (multiple of 16 for bf16)
    OFF2 = 16   # conv2-output staging row offset
    TAIL = 16

    # Zero only the halo rows of the staging scratches, once per grid step.
    # (Deliberately NOT under `pl.program_id(0) == 0`: with the batch axis
    # marked "parallel" a core other than core 0 may never see step 0.)
    # Data rows [OFF, OFF+len) are fully overwritten for every element below;
    # halo rows are never written, so they implement conv2/conv3 zero padding.
    a1_ref[pl.ds(0, OFF1), :] = jnp.zeros((OFF1, cm), a1_ref.dtype)
    a1_ref[pl.ds(OFF1 + L, TAIL), :] = jnp.zeros((TAIL, cm), a1_ref.dtype)
    a2_ref[pl.ds(0, OFF2), :] = jnp.zeros((OFF2, cm), a2_ref.dtype)
    a2_ref[pl.ds(OFF2 + L2, TAIL), :] = jnp.zeros((TAIL, cm), a2_ref.dtype)

    for b in range(bN):
        # ---- conv1: k=7, pad=3, stride=1, + bn1 + relu ----------------------
        # x_ref holds the input zero-padded by 3 on each side (bf16), so each
        # tap is a contiguous shifted read feeding one MXU matmul (f32 accum).
        acc1 = jnp.dot(x_ref[b, pl.ds(0, L), :], w1_ref[0],
                       preferred_element_type=f32)
        for e in range(1, 7):
            acc1 += jnp.dot(x_ref[b, pl.ds(e, L), :], w1_ref[e],
                            preferred_element_type=f32)
        h1 = jnp.maximum(acc1 + s1_ref[...], 0.0)
        a1_ref[pl.ds(OFF1, L), :] = h1.astype(a1_ref.dtype)

        # ---- conv2: k=11, pad=5, stride=s, + bn2 + relu ---------------------
        # padded-conv1 position j lives at scratch row OFF1 - 5 + j.
        def conv2_tap(d):
            if stride == 1:
                t = a1_ref[pl.ds(d + OFF1 - 5, L2), :]
            else:
                t = a1_ref[pl.ds(d + OFF1 - 5, L2, stride=stride), :]
            # a1 scratch is bf16 for stride==1 (no cast needed); f32 for the
            # strided case (proven strided-read path), cast per tap.
            return t if t.dtype == bf16 else t.astype(bf16)

        acc2 = jnp.dot(conv2_tap(0), w2_ref[0], preferred_element_type=f32)
        for d in range(1, 11):
            acc2 += jnp.dot(conv2_tap(d), w2_ref[d], preferred_element_type=f32)
        h2 = jnp.maximum(acc2 + s2_ref[...], 0.0)
        # TODO(synk): training-mode Dropout(0.2) via pltpu.prng_random_bits;
        # identity in eval mode.
        a2_ref[pl.ds(OFF2, L2), :] = h2.astype(a2_ref.dtype)

        # ---- conv3: k=7, pad=3, stride=1, + bn3 -----------------------------
        # padded-conv2 position j lives at scratch row OFF2 - 3 + j.
        acc3 = jnp.dot(a2_ref[pl.ds(OFF2 - 3, L2), :], w3_ref[0],
                       preferred_element_type=f32)
        for e in range(1, 7):
            acc3 += jnp.dot(a2_ref[pl.ds(e + OFF2 - 3, L2), :], w3_ref[e],
                            preferred_element_type=f32)
        y = acc3 + s3_ref[...]

        # ---- residual branch ------------------------------------------------
        if has_downsample:
            # conv1x1 (stride pre-applied in the wrapper) + folded bn.
            res = jnp.dot(res_ref[b], wd_ref[...],
                          preferred_element_type=f32) + sd_ref[...]
        else:
            # Identity residual read straight from the resident padded input
            # (bf16) -- no separate f32 residual stream from HBM.
            res = x_ref[b, pl.ds(3, L), :].astype(f32)

        o_ref[b] = jnp.maximum(y + res, 0.0).astype(o_ref.dtype)


# --------------------------- host-side BN folding ---------------------------

def _fold_conv_bn(w, bn):
    """w: (Cout, Cin, K) PyTorch layout; bn = (gamma, beta, mean, var).

    Returns bf16 weights of shape (K, Cin, Cout) with the BN scale folded in,
    and the (1, Cout) f32 additive shift."""
    gamma, beta, mean, var = bn
    inv = gamma / jnp.sqrt(var + _BN_EPS)                    # (Cout,)
    w_fold = jnp.transpose(w, (2, 1, 0)) * inv               # (K, Cin, Cout)
    shift = (beta - mean * inv).reshape(1, -1)
    return w_fold.astype(jnp.bfloat16), shift.astype(jnp.float32)


# ------------------------------ forward wrapper ------------------------------

def bottleneck_forward(x_ncl, p, *, batch_block=None):
    """x_ncl: (N, Cin, L) as in PyTorch.  Returns (N, planes*4, L_out)."""
    stride = int(p["stride"])
    has_ds = "wd" in p
    n, cin, L = x_ncl.shape
    cm = p["w1"].shape[2]
    cout = p["w3"].shape[2]
    L2 = (L - 1) // stride + 1
    if not has_ds:
        assert stride == 1 and cin == cout, (
            "identity residual requires stride=1 and inplanes == planes*4")

    if batch_block is None:
        batch_block = 1
        for d in (8, 4, 2):
            if n % d == 0:
                batch_block = d
                break
    bN = batch_block
    assert n % bN == 0, "batch_block must divide the batch size"

    # Channels-last + fused pad/cast.  TODO(synk): run a whole ResNet stack
    # channels-last so these wrapper transposes disappear between blocks.
    x = jnp.transpose(x_ncl, (0, 2, 1))                                   # (N, L, Cin)
    x_pad = jnp.pad(x, ((0, 0), (3, 3), (0, 0))).astype(jnp.bfloat16)     # conv1 in

    args = [x_pad]
    in_specs = [pl.BlockSpec((bN, L + 6, cin), lambda i: (i, 0, 0))]
    if has_ds:
        res_in = x[:, ::stride, :].astype(jnp.bfloat16)                   # (N, L2, Cin)
        args.append(res_in)
        in_specs.append(pl.BlockSpec((bN, L2, cin), lambda i: (i, 0, 0)))

    def _wspec(shape):
        return pl.BlockSpec(shape, lambda i: (0,) * len(shape))

    w_args = [p["w1"], p["s1"], p["w2"], p["s2"], p["w3"], p["s3"]]
    w_specs = [_wspec((7, cin, cm)), _wspec((1, cm)),                     # conv1 / bn1
               _wspec((11, cm, cm)), _wspec((1, cm)),                     # conv2 / bn2
               _wspec((7, cm, cout)), _wspec((1, cout))]                  # conv3 / bn3
    if has_ds:
        w_args += [p["wd"], p["sd"]]
        w_specs += [_wspec((cin, cout)), _wspec((1, cout))]
    args += w_args
    in_specs += w_specs

    # Scratch: bf16 staging when reads are contiguous (stride==1); f32 for the
    # strided conv2 reads (keeps the proven strided-load path).
    a1_dtype = jnp.bfloat16 if stride == 1 else jnp.float32
    a1_rows, a2_rows = L + 32, L2 + 32

    flops = 2 * n * (7 * L * cin * cm + 11 * L2 * cm * cm + 7 * L2 * cm * cout)
    if has_ds:
        flops += 2 * n * L2 * cin * cout
    bytes_accessed = sum(int(a.size) * a.dtype.itemsize for a in args)
    bytes_accessed += n * L2 * cout * 4                                   # output

    # VMEM budget derived from actual block / scratch sizes (x2 for double
    # buffering), clamped so it stays inside v7x's 64 MiB physical VMEM.
    in_block_bytes = bN * (L + 6) * cin * 2 + (bN * L2 * cin * 2 if has_ds else 0)
    weight_bytes = sum(int(a.size) * a.dtype.itemsize for a in w_args)
    out_block_bytes = bN * L2 * cout * 4
    scratch_bytes = (a1_rows * cm * jnp.dtype(a1_dtype).itemsize
                     + a2_rows * cm * 2)
    vmem_limit = int(min(max(2 * (in_block_bytes + out_block_bytes + weight_bytes)
                             + scratch_bytes + (4 << 20), 8 << 20), 64 << 20))

    kernel = functools.partial(
        _bottleneck_kernel, bN=bN, L=L, L2=L2, stride=stride,
        has_downsample=has_ds, cm=cm)

    out_nlc = pl.pallas_call(
        kernel,
        out_shape=jax.ShapeDtypeStruct((n, L2, cout), jnp.float32),
        grid_spec=pltpu.PrefetchScalarGridSpec(
            num_scalar_prefetch=0,
            grid=(n // bN,),
            in_specs=in_specs,
            out_specs=pl.BlockSpec((bN, L2, cout), lambda i: (i, 0, 0)),
            scratch_shapes=[
                pltpu.VMEM((a1_rows, cm), a1_dtype),       # conv1 out (+conv2 halo)
                pltpu.VMEM((a2_rows, cm), jnp.bfloat16),   # conv2 out (+conv3 halo)
            ]),
        compiler_params=pltpu.CompilerParams(
            dimension_semantics=("parallel",),
            vmem_limit_bytes=vmem_limit),
        cost_estimate=pl.CostEstimate(flops=flops, transcendentals=0,
                                      bytes_accessed=bytes_accessed),
    )(*args)

    return jnp.transpose(out_nlc, (0, 2, 1))   # back to (N, C, L)


# --------------------------- parameter construction --------------------------

def _init_conv(key, cout, cin, k):
    std = math.sqrt(2.0 / (cin * k))
    return std * jax.random.normal(key, (cout, cin, k), jnp.float32)


def _init_bn(key, c):
    kg, kb, km, kv = jax.random.split(key, 4)
    gamma = 1.0 + 0.1 * jax.random.normal(kg, (c,), jnp.float32)
    beta = 0.1 * jax.random.normal(kb, (c,), jnp.float32)
    mean = 0.1 * jax.random.normal(km, (c,), jnp.float32)
    var = 1.0 + 0.1 * jax.random.uniform(kv, (c,), jnp.float32)
    return gamma, beta, mean, var


def make_bottleneck_params(key, inplanes, planes, stride=1, downsample=None):
    """Returns (folded kernel params, raw torch-layout params for reference)."""
    if downsample is None:
        downsample = (stride != 1) or (inplanes != planes * EXPANSION)
    cout = planes * EXPANSION
    keys = jax.random.split(key, 8)
    raw = {
        "conv1": _init_conv(keys[0], planes, inplanes, 7),
        "bn1": _init_bn(keys[1], planes),
        "conv2": _init_conv(keys[2], planes, planes, 11),
        "bn2": _init_bn(keys[3], planes),
        "conv3": _init_conv(keys[4], cout, planes, 7),
        "bn3": _init_bn(keys[5], cout),
    }
    if downsample:
        raw["down_conv"] = _init_conv(keys[6], cout, inplanes, 1)
        raw["down_bn"] = _init_bn(keys[7], cout)

    w1, s1 = _fold_conv_bn(raw["conv1"], raw["bn1"])
    w2, s2 = _fold_conv_bn(raw["conv2"], raw["bn2"])
    w3, s3 = _fold_conv_bn(raw["conv3"], raw["bn3"])
    folded = {"w1": w1, "s1": s1, "w2": w2, "s2": s2, "w3": w3, "s3": s3,
              "stride": stride}
    if downsample:
        wd, sd = _fold_conv_bn(raw["down_conv"], raw["down_bn"])
        folded["wd"] = wd[0]          # k=1 -> (Cin, Cout)
        folded["sd"] = sd
    return folded, raw


# ------------------------------ pure-JAX reference ---------------------------

def _conv1d_ref(x_ncl, w, stride, padding):
    return lax.conv_general_dilated(
        x_ncl, w, window_strides=(stride,), padding=[(padding, padding)],
        dimension_numbers=("NCH", "OIH", "NCH"),
        precision=lax.Precision.HIGHEST)


def _bn_ref(x_ncl, bn):
    gamma, beta, mean, var = bn
    inv = gamma / jnp.sqrt(var + _BN_EPS)
    return x_ncl * inv[None, :, None] + (beta - mean * inv)[None, :, None]


def bottleneck_reference(x_ncl, raw, stride, has_downsample):
    out = jax.nn.relu(_bn_ref(_conv1d_ref(x_ncl, raw["conv1"], 1, 3), raw["bn1"]))
    out = jax.nn.relu(_bn_ref(_conv1d_ref(out, raw["conv2"], stride, 5), raw["bn2"]))
    out = _bn_ref(_conv1d_ref(out, raw["conv3"], 1, 3), raw["bn3"])
    if has_downsample:
        residual = _bn_ref(_conv1d_ref(x_ncl, raw["down_conv"], stride, 0),
                           raw["down_bn"])
    else:
        residual = x_ncl
    return jax.nn.relu(out + residual)


# ----------------------------------- main ------------------------------------

if __name__ == "__main__":
    key = jax.random.PRNGKey(0)
    k1, k2, k3, k4 = jax.random.split(key, 4)

    batch, length = 2, 16

    # Block A: identity residual (inplanes == planes*4, stride=1), 2 batch
    # elements per grid step (exercises the batch-blocked path).
    planes_a, inplanes_a = 32, 128
    params_a, raw_a = make_bottleneck_params(k1, inplanes_a, planes_a, stride=1)
    x_a = jax.random.normal(k2, (batch, inplanes_a, length), jnp.float32)
    out_a = jax.block_until_ready(bottleneck_forward(x_a, params_a, batch_block=2))
    ref_a = bottleneck_reference(x_a, raw_a, 1, False)
    assert out_a.shape == (batch, planes_a * EXPANSION, length), out_a.shape
    err_a = float(jnp.max(jnp.abs(out_a - ref_a)) /
                  (jnp.max(jnp.abs(ref_a)) + 1e-6))
    assert err_a < 5e-2, f"block A mismatch: {err_a}"

    # Block B: stride-2 block with conv1x1+bn downsample, 1 element per step.
    planes_b, inplanes_b, stride_b = 32, 64, 2
    params_b, raw_b = make_bottleneck_params(k3, inplanes_b, planes_b,
                                             stride=stride_b)
    x_b = jax.random.normal(k4, (batch, inplanes_b, length), jnp.float32)
    out_b = jax.block_until_ready(bottleneck_forward(x_b, params_b, batch_block=1))
    ref_b = bottleneck_reference(x_b, raw_b, stride_b, True)
    assert out_b.shape == (batch, planes_b * EXPANSION, length // stride_b), out_b.shape
    err_b = float(jnp.max(jnp.abs(out_b - ref_b)) /
                  (jnp.max(jnp.abs(ref_b)) + 1e-6))
    assert err_b < 5e-2, f"block B mismatch: {err_b}"

    assert bool(jnp.all(jnp.isfinite(out_a))) and bool(jnp.all(jnp.isfinite(out_b)))
    print("KERNEL_OK")
</pallas_src>

<mosaic_0001>
module attributes {stable_mosaic.version = 11 : i64} {
  func.func @_bottleneck_kernel(%arg0: i32, %arg1: memref<2x22x128xbf16, #tpu.memory_space<vmem>>, %arg2: memref<7x128x32xbf16, #tpu.memory_space<vmem>>, %arg3: memref<1x32xf32, #tpu.memory_space<vmem>>, %arg4: memref<11x32x32xbf16, #tpu.memory_space<vmem>>, %arg5: memref<1x32xf32, #tpu.memory_space<vmem>>, %arg6: memref<7x32x128xbf16, #tpu.memory_space<vmem>>, %arg7: memref<1x128xf32, #tpu.memory_space<vmem>>, %arg8: memref<2x16x128xf32, #tpu.memory_space<vmem>>, %arg9: memref<48x32xbf16, #tpu.memory_space<vmem>>, %arg10: memref<48x32xbf16, #tpu.memory_space<vmem>>) attributes {dimension_semantics = [#tpu.dimension_semantics<parallel>], iteration_bounds = array<i64: 1>, scalar_prefetch = 0 : i64, scratch_operands = 2 : i64, tpu.core_type = #tpu.core_type<tc>, window_params = [{transform_indices = @transform_0, window_bounds = array<i64: 2, 22, 128>}, {pipeline_mode = #tpu.pipeline_mode<synchronous>, transform_indices = @transform_1, window_bounds = array<i64: 7, 128, 32>}, {pipeline_mode = #tpu.pipeline_mode<synchronous>, transform_indices = @transform_2, window_bounds = array<i64: 1, 32>}, {pipeline_mode = #tpu.pipeline_mode<synchronous>, transform_indices = @transform_3, window_bounds = array<i64: 11, 32, 32>}, {pipeline_mode = #tpu.pipeline_mode<synchronous>, transform_indices = @transform_4, window_bounds = array<i64: 1, 32>}, {pipeline_mode = #tpu.pipeline_mode<synchronous>, transform_indices = @transform_5, window_bounds = array<i64: 7, 32, 128>}, {pipeline_mode = #tpu.pipeline_mode<synchronous>, transform_indices = @transform_6, window_bounds = array<i64: 1, 128>}, {transform_indices = @transform_7, window_bounds = array<i64: 2, 16, 128>}]} {
    %cst = arith.constant 0.000000e+00 : bf16
    %0 = vector.broadcast %cst : bf16 to vector<16x32xbf16>
    %c0 = arith.constant 0 : index
    %c0_0 = arith.constant 0 : index
    %1 = vector.load %arg9[%c0, %c0_0] : memref<48x32xbf16, #tpu.memory_space<vmem>>, vector<16x32xbf16>
    tpu.vector_store %arg9[%c0, %c0_0], %0 {strides = array<i32>} : memref<48x32xbf16, #tpu.memory_space<vmem>>, vector<16x32xbf16>,
    %cst_1 = arith.constant 0.000000e+00 : bf16
    %2 = vector.broadcast %cst_1 : bf16 to vector<16x32xbf16>
    %c32 = arith.constant 32 : index
    %c0_2 = arith.constant 0 : index
    %3 = vector.load %arg9[%c32, %c0_2] : memref<48x32xbf16, #tpu.memory_space<vmem>>, vector<16x32xbf16>
    tpu.vector_store %arg9[%c32, %c0_2], %2 {strides = array<i32>} : memref<48x32xbf16, #tpu.memory_space<vmem>>, vector<16x32xbf16>,
    %cst_3 = arith.constant 0.000000e+00 : bf16
    %4 = vector.broadcast %cst_3 : bf16 to vector<16x32xbf16>
    %c0_4 = arith.constant 0 : index
    %c0_5 = arith.constant 0 : index
    %5 = vector.load %arg10[%c0_4, %c0_5] : memref<48x32xbf16, #tpu.memory_space<vmem>>, vector<16x32xbf16>
    tpu.vector_store %arg10[%c0_4, %c0_5], %4 {strides = array<i32>} : memref<48x32xbf16, #tpu.memory_space<vmem>>, vector<16x32xbf16>,
    %cst_6 = arith.constant 0.000000e+00 : bf16
    %6 = vector.broadcast %cst_6 : bf16 to vector<16x32xbf16>
    %c32_7 = arith.constant 32 : index
    %c0_8 = arith.constant 0 : index
    %7 = vector.load %arg10[%c32_7, %c0_8] : memref<48x32xbf16, #tpu.memory_space<vmem>>, vector<16x32xbf16>
    tpu.vector_store %arg10[%c32_7, %c0_8], %6 {strides = array<i32>} : memref<48x32xbf16, #tpu.memory_space<vmem>>, vector<16x32xbf16>,
    %c0_9 = arith.constant 0 : index
    %c0_10 = arith.constant 0 : index
    %c0_11 = arith.constant 0 : index
    %8 = vector.load %arg1[%c0_9, %c0_10, %c0_11] : memref<2x22x128xbf16, #tpu.memory_space<vmem>>, vector<1x16x128xbf16>
    %9 = vector.shape_cast %8 : vector<1x16x128xbf16> to vector<16x128xbf16>
    %c0_12 = arith.constant 0 : index
    %c0_13 = arith.constant 0 : index
    %c0_14 = arith.constant 0 : index
    %10 = vector.load %arg2[%c0_12, %c0_13, %c0_14] : memref<7x128x32xbf16, #tpu.memory_space<vmem>>, vector<1x128x32xbf16>
    %11 = vector.shape_cast %10 : vector<1x128x32xbf16> to vector<128x32xbf16>
    %cst_15 = arith.constant dense<0.000000e+00> : vector<16x32xf32>
    %12 = tpu.matmul %9, %11, %cst_15 {dimension_numbers = #tpu.dot_dimension_numbers<[1], [0], [0], [1], [0, 0, 1, 1], [], []>} : vector<16x128xbf16>, vector<128x32xbf16>, vector<16x32xf32> -> vector<16x32xf32>
    %c0_16 = arith.constant 0 : index
    %c1 = arith.constant 1 : index
    %c0_17 = arith.constant 0 : index
    %13 = vector.load %arg1[%c0_16, %c1, %c0_17] : memref<2x22x128xbf16, #tpu.memory_space<vmem>>, vector<1x16x128xbf16>
    %14 = vector.shape_cast %13 : vector<1x16x128xbf16> to vector<16x128xbf16>
    %c1_18 = arith.constant 1 : index
    %c0_19 = arith.constant 0 : index
    %c0_20 = arith.constant 0 : index
    %15 = vector.load %arg2[%c1_18, %c0_19, %c0_20] : memref<7x128x32xbf16, #tpu.memory_space<vmem>>, vector<1x128x32xbf16>
    %16 = vector.shape_cast %15 : vector<1x128x32xbf16> to vector<128x32xbf16>
    %cst_21 = arith.constant dense<0.000000e+00> : vector<16x32xf32>
    %17 = tpu.matmul %14, %16, %cst_21 {dimension_numbers = #tpu.dot_dimension_numbers<[1], [0], [0], [1], [0, 0, 1, 1], [], []>} : vector<16x128xbf16>, vector<128x32xbf16>, vector<16x32xf32> -> vector<16x32xf32>
    %18 = arith.addf %12, %17 : vector<16x32xf32>
    %c0_22 = arith.constant 0 : index
    %c2 = arith.constant 2 : index
    %c0_23 = arith.constant 0 : index
    %19 = vector.load %arg1[%c0_22, %c2, %c0_23] : memref<2x22x128xbf16, #tpu.memory_space<vmem>>, vector<1x16x128xbf16>
    %20 = vector.shape_cast %19 : vector<1x16x128xbf16> to vector<16x128xbf16>
    %c2_24 = arith.constant 2 : index
    %c0_25 = arith.constant 0 : index
    %c0_26 = arith.constant 0 : index
    %21 = vector.load %arg2[%c2_24, %c0_25, %c0_26] : memref<7x128x32xbf16, #tpu.memory_space<vmem>>, vector<1x128x32xbf16>
    %22 = vector.shape_cast %21 : vector<1x128x32xbf16> to vector<128x32xbf16>
    %cst_27 = arith.constant dense<0.000000e+00> : vector<16x32xf32>
    %23 = tpu.matmul %20, %22, %cst_27 {dimension_numbers = #tpu.dot_dimension_numbers<[1], [0], [0], [1], [0, 0, 1, 1], [], []>} : vector<16x128xbf16>, vector<128x32xbf16>, vector<16x32xf32> -> vector<16x32xf32>
    %24 = arith.addf %18, %23 : vector<16x32xf32>
    %c0_28 = arith.constant 0 : index
    %c3 = arith.constant 3 : index
    %c0_29 = arith.constant 0 : index
    %25 = vector.load %arg1[%c0_28, %c3, %c0_29] : memref<2x22x128xbf16, #tpu.memory_space<vmem>>, vector<1x16x128xbf16>
    %26 = vector.shape_cast %25 : vector<1x16x128xbf16> to vector<16x128xbf16>
    %c3_30 = arith.constant 3 : index
    %c0_31 = arith.constant 0 : index
    %c0_32 = arith.constant 0 : index
    %27 = vector.load %arg2[%c3_30, %c0_31, %c0_32] : memref<7x128x32xbf16, #tpu.memory_space<vmem>>, vector<1x128x32xbf16>
    %28 = vector.shape_cast %27 : vector<1x128x32xbf16> to vector<128x32xbf16>
    %cst_33 = arith.constant dense<0.000000e+00> : vector<16x32xf32>
    %29 = tpu.matmul %26, %28, %cst_33 {dimension_numbers = #tpu.dot_dimension_numbers<[1], [0], [0], [1], [0, 0, 1, 1], [], []>} : vector<16x128xbf16>, vector<128x32xbf16>, vector<16x32xf32> -> vector<16x32xf32>
    %30 = arith.addf %24, %29 : vector<16x32xf32>
    %c0_34 = arith.constant 0 : index
    %c4 = arith.constant 4 : index
    %c0_35 = arith.constant 0 : index
    %31 = vector.load %arg1[%c0_34, %c4, %c0_35] : memref<2x22x128xbf16, #tpu.memory_space<vmem>>, vector<1x16x128xbf16>
    %32 = vector.shape_cast %31 : vector<1x16x128xbf16> to vector<16x128xbf16>
    %c4_36 = arith.constant 4 : index
    %c0_37 = arith.constant 0 : index
    %c0_38 = arith.constant 0 : index
    %33 = vector.load %arg2[%c4_36, %c0_37, %c0_38] : memref<7x128x32xbf16, #tpu.memory_space<vmem>>, vector<1x128x32xbf16>
    %34 = vector.shape_cast %33 : vector<1x128x32xbf16> to vector<128x32xbf16>
    %cst_39 = arith.constant dense<0.000000e+00> : vector<16x32xf32>
    %35 = tpu.matmul %32, %34, %cst_39 {dimension_numbers = #tpu.dot_dimension_numbers<[1], [0], [0], [1], [0, 0, 1, 1], [], []>} : vector<16x128xbf16>, vector<128x32xbf16>, vector<16x32xf32> -> vector<16x32xf32>
    %36 = arith.addf %30, %35 : vector<16x32xf32>
    %c0_40 = arith.constant 0 : index
    %c5 = arith.constant 5 : index
    %c0_41 = arith.constant 0 : index
    %37 = vector.load %arg1[%c0_40, %c5, %c0_41] : memref<2x22x128xbf16, #tpu.memory_space<vmem>>, vector<1x16x128xbf16>
    %38 = vector.shape_cast %37 : vector<1x16x128xbf16> to vector<16x128xbf16>
    %c5_42 = arith.constant 5 : index
    %c0_43 = arith.constant 0 : index
    %c0_44 = arith.constant 0 : index
    %39 = vector.load %arg2[%c5_42, %c0_43, %c0_44] : memref<7x128x32xbf16, #tpu.memory_space<vmem>>, vector<1x128x32xbf16>
    %40 = vector.shape_cast %39 : vector<1x128x32xbf16> to vector<128x32xbf16>
    %cst_45 = arith.constant dense<0.000000e+00> : vector<16x32xf32>
    %41 = tpu.matmul %38, %40, %cst_45 {dimension_numbers = #tpu.dot_dimension_numbers<[1], [0], [0], [1], [0, 0, 1, 1], [], []>} : vector<16x128xbf16>, vector<128x32xbf16>, vector<16x32xf32> -> vector<16x32xf32>
    %42 = arith.addf %36, %41 : vector<16x32xf32>
    %c0_46 = arith.constant 0 : index
    %c6 = arith.constant 6 : index
    %c0_47 = arith.constant 0 : index
    %43 = vector.load %arg1[%c0_46, %c6, %c0_47] : memref<2x22x128xbf16, #tpu.memory_space<vmem>>, vector<1x16x128xbf16>
    %44 = vector.shape_cast %43 : vector<1x16x128xbf16> to vector<16x128xbf16>
    %c6_48 = arith.constant 6 : index
    %c0_49 = arith.constant 0 : index
    %c0_50 = arith.constant 0 : index
    %45 = vector.load %arg2[%c6_48, %c0_49, %c0_50] : memref<7x128x32xbf16, #tpu.memory_space<vmem>>, vector<1x128x32xbf16>
    %46 = vector.shape_cast %45 : vector<1x128x32xbf16> to vector<128x32xbf16>
    %cst_51 = arith.constant dense<0.000000e+00> : vector<16x32xf32>
    %47 = tpu.matmul %44, %46, %cst_51 {dimension_numbers = #tpu.dot_dimension_numbers<[1], [0], [0], [1], [0, 0, 1, 1], [], []>} : vector<16x128xbf16>, vector<128x32xbf16>, vector<16x32xf32> -> vector<16x32xf32>
    %48 = arith.addf %42, %47 : vector<16x32xf32>
    %c0_52 = arith.constant 0 : index
    %c0_53 = arith.constant 0 : index
    %49 = vector.load %arg3[%c0_52, %c0_53] : memref<1x32xf32, #tpu.memory_space<vmem>>, vector<1x32xf32>
    %50 = vector.broadcast %49 : vector<1x32xf32> to vector<16x32xf32>
    %51 = arith.addf %48, %50 : vector<16x32xf32>
    %cst_54 = arith.constant 0.000000e+00 : f32
    %52 = vector.broadcast %cst_54 : f32 to vector<16x32xf32>
    %53 = arith.maximumf %51, %52 : vector<16x32xf32>
    %54 = arith.truncf %53 : vector<16x32xf32> to vector<16x32xbf16>
    %c16 = arith.constant 16 : index
    %c0_55 = arith.constant 0 : index
    %55 = vector.load %arg9[%c16, %c0_55] : memref<48x32xbf16, #tpu.memory_space<vmem>>, vector<16x32xbf16>
    tpu.vector_store %arg9[%c16, %c0_55], %54 {strides = array<i32>} : memref<48x32xbf16, #tpu.memory_space<vmem>>, vector<16x32xbf16>,
    %c11 = arith.constant 11 : index
    %c0_56 = arith.constant 0 : index
    %56 = vector.load %arg9[%c11, %c0_56] : memref<48x32xbf16, #tpu.memory_space<vmem>>, vector<16x32xbf16>
    %c0_57 = arith.constant 0 : index
    %c0_58 = arith.constant 0 : index
    %c0_59 = arith.constant 0 : index
    %57 = vector.load %arg4[%c0_57, %c0_58, %c0_59] : memref<11x32x32xbf16, #tpu.memory_space<vmem>>, vector<1x32x32xbf16>
    %58 = vector.shape_cast %57 : vector<1x32x32xbf16> to vector<32x32xbf16>
    %cst_60 = arith.constant dense<0.000000e+00> : vector<16x32xf32>
    %59 = tpu.matmul %56, %58, %cst_60 {dimension_numbers = #tpu.dot_dimension_numbers<[1], [0], [0], [1], [0, 0, 1, 1], [], []>} : vector<16x32xbf16>, vector<32x32xbf16>, vector<16x32xf32> -> vector<16x32xf32>
    %c12 = arith.constant 12 : index
    %c0_61 = arith.constant 0 : index
    %60 = vector.load %arg9[%c12, %c0_61] : memref<48x32xbf16, #tpu.memory_space<vmem>>, vector<16x32xbf16>
    %c1_62 = arith.constant 1 : index
    %c0_63 = arith.constant 0 : index
    %c0_64 = arith.constant 0 : index
    %61 = vector.load %arg4[%c1_62, %c0_63, %c0_64] : memref<11x32x32xbf16, #tpu.memory_space<vmem>>, vector<1x32x32xbf16>
    %62 = vector.shape_cast %61 : vector<1x32x32xbf16> to vector<32x32xbf16>
    %cst_65 = arith.constant dense<0.000000e+00> : vector<16x32xf32>
    %63 = tpu.matmul %60, %62, %cst_65 {dimension_numbers = #tpu.dot_dimension_numbers<[1], [0], [0], [1], [0, 0, 1, 1], [], []>} : vector<16x32xbf16>, vector<32x32xbf16>, vector<16x32xf32> -> vector<16x32xf32>
    %64 = arith.addf %59, %63 : vector<16x32xf32>
    %c13 = arith.constant 13 : index
    %c0_66 = arith.constant 0 : index
    %65 = vector.load %arg9[%c13, %c0_66] : memref<48x32xbf16, #tpu.memory_space<vmem>>, vector<16x32xbf16>
    %c2_67 = arith.constant 2 : index
    %c0_68 = arith.constant 0 : index
    %c0_69 = arith.constant 0 : index
    %66 = vector.load %arg4[%c2_67, %c0_68, %c0_69] : memref<11x32x32xbf16, #tpu.memory_space<vmem>>, vector<1x32x32xbf16>
    %67 = vector.shape_cast %66 : vector<1x32x32xbf16> to vector<32x32xbf16>
    %cst_70 = arith.constant dense<0.000000e+00> : vector<16x32xf32>
    %68 = tpu.matmul %65, %67, %cst_70 {dimension_numbers = #tpu.dot_dimension_numbers<[1], [0], [0], [1], [0, 0, 1, 1], [], []>} : vector<16x32xbf16>, vector<32x32xbf16>, vector<16x32xf32> -> vector<16x32xf32>
    %69 = arith.addf %64, %68 : vector<16x32xf32>
    %c14 = arith.constant 14 : index
    %c0_71 = arith.constant 0 : index
    %70 = vector.load %arg9[%c14, %c0_71] : memref<48x32xbf16, #tpu.memory_space<vmem>>, vector<16x32xbf16>
    %c3_72 = arith.constant 3 : index
    %c0_73 = arith.constant 0 : index
    %c0_74 = arith.constant 0 : index
    %71 = vector.load %arg4[%c3_72, %c0_73, %c0_74] : memref<11x32x32xbf16, #tpu.memory_space<vmem>>, vector<1x32x32xbf16>
    %72 = vector.shape_cast %71 : vector<1x32x32xbf16> to vector<32x32xbf16>
    %cst_75 = arith.constant dense<0.000000e+00> : vector<16x32xf32>
    %73 = tpu.matmul %70, %72, %cst_75 {dimension_numbers = #tpu.dot_dimension_numbers<[1], [0], [0], [1], [0, 0, 1, 1], [], []>} : vector<16x32xbf16>, vector<32x32xbf16>, vector<16x32xf32> -> vector<16x32xf32>
    %74 = arith.addf %69, %73 : vector<16x32xf32>
    %c15 = arith.constant 15 : index
    %c0_76 = arith.constant 0 : index
    %75 = vector.load %arg9[%c15, %c0_76] : memref<48x32xbf16, #tpu.memory_space<vmem>>, vector<16x32xbf16>
    %c4_77 = arith.constant 4 : index
    %c0_78 = arith.constant 0 : index
    %c0_79 = arith.constant 0 : index
    %76 = vector.load %arg4[%c4_77, %c0_78, %c0_79] : memref<11x32x32xbf16, #tpu.memory_space<vmem>>, vector<1x32x32xbf16>
    %77 = vector.shape_cast %76 : vector<1x32x32xbf16> to vector<32x32xbf16>
    %cst_80 = arith.constant dense<0.000000e+00> : vector<16x32xf32>
    %78 = tpu.matmul %75, %77, %cst_80 {dimension_numbers = #tpu.dot_dimension_numbers<[1], [0], [0], [1], [0, 0, 1, 1], [], []>} : vector<16x32xbf16>, vector<32x32xbf16>, vector<16x32xf32> -> vector<16x32xf32>
    %79 = arith.addf %74, %78 : vector<16x32xf32>
    %c16_81 = arith.constant 16 : index
    %c0_82 = arith.constant 0 : index
    %80 = vector.load %arg9[%c16_81, %c0_82] : memref<48x32xbf16, #tpu.memory_space<vmem>>, vector<16x32xbf16>
    %c5_83 = arith.constant 5 : index
    %c0_84 = arith.constant 0 : index
    %c0_85 = arith.constant 0 : index
    %81 = vector.load %arg4[%c5_83, %c0_84, %c0_85] : memref<11x32x32xbf16, #tpu.memory_space<vmem>>, vector<1x32x32xbf16>
    %82 = vector.shape_cast %81 : vector<1x32x32xbf16> to vector<32x32xbf16>
    %cst_86 = arith.constant dense<0.000000e+00> : vector<16x32xf32>
    %83 = tpu.matmul %80, %82, %cst_86 {dimension_numbers = #tpu.dot_dimension_numbers<[1], [0], [0], [1], [0, 0, 1, 1], [], []>} : vector<16x32xbf16>, vector<32x32xbf16>, vector<16x32xf32> -> vector<16x32xf32>
    %84 = arith.addf %79, %83 : vector<16x32xf32>
    %c17 = arith.constant 17 : index
    %c0_87 = arith.constant 0 : index
    %85 = vector.load %arg9[%c17, %c0_87] : memref<48x32xbf16, #tpu.memory_space<vmem>>, vector<16x32xbf16>
    %c6_88 = arith.constant 6 : index
    %c0_89 = arith.constant 0 : index
    %c0_90 = arith.constant 0 : index
    %86 = vector.load %arg4[%c6_88, %c0_89, %c0_90] : memref<11x32x32xbf16, #tpu.memory_space<vmem>>, vector<1x32x32xbf16>
    %87 = vector.shape_cast %86 : vector<1x32x32xbf16> to vector<32x32xbf16>
    %cst_91 = arith.constant dense<0.000000e+00> : vector<16x32xf32>
    %88 = tpu.matmul %85, %87, %cst_91 {dimension_numbers = #tpu.dot_dimension_numbers<[1], [0], [0], [1], [0, 0, 1, 1], [], []>} : vector<16x32xbf16>, vector<32x32xbf16>, vector<16x32xf32> -> vector<16x32xf32>
    %89 = arith.addf %84, %88 : vector<16x32xf32>
    %c18 = arith.constant 18 : index
    %c0_92 = arith.constant 0 : index
    %90 = vector.load %arg9[%c18, %c0_92] : memref<48x32xbf16, #tpu.memory_space<vmem>>, vector<16x32xbf16>
    %c7 = arith.constant 7 : index
    %c0_93 = arith.constant 0 : index
    %c0_94 = arith.constant 0 : index
    %91 = vector.load %arg4[%c7, %c0_93, %c0_94] : memref<11x32x32xbf16, #tpu.memory_space<vmem>>, vector<1x32x32xbf16>
    %92 = vector.shape_cast %91 : vector<1x32x32xbf16> to vector<32x32xbf16>
    %cst_95 = arith.constant dense<0.000000e+00> : vector<16x32xf32>
    %93 = tpu.matmul %90, %92, %cst_95 {dimension_numbers = #tpu.dot_dimension_numbers<[1], [0], [0], [1], [0, 0, 1, 1], [], []>} : vector<16x32xbf16>, vector<32x32xbf16>, vector<16x32xf32> -> vector<16x32xf32>
    %94 = arith.addf %89, %93 : vector<16x32xf32>
    %c19 = arith.constant 19 : index
    %c0_96 = arith.constant 0 : index
    %95 = vector.load %arg9[%c19, %c0_96] : memref<48x32xbf16, #tpu.memory_space<vmem>>, vector<16x32xbf16>
    %c8 = arith.constant 8 : index
    %c0_97 = arith.constant 0 : index
    %c0_98 = arith.constant 0 : index
    %96 = vector.load %arg4[%c8, %c0_97, %c0_98] : memref<11x32x32xbf16, #tpu.memory_space<vmem>>, vector<1x32x32xbf16>
    %97 = vector.shape_cast %96 : vector<1x32x32xbf16> to vector<32x32xbf16>
    %cst_99 = arith.constant dense<0.000000e+00> : vector<16x32xf32>
    %98 = tpu.matmul %95, %97, %cst_99 {dimension_numbers = #tpu.dot_dimension_numbers<[1], [0], [0], [1], [0, 0, 1, 1], [], []>} : vector<16x32xbf16>, vector<32x32xbf16>, vector<16x32xf32> -> vector<16x32xf32>
    %99 = arith.addf %94, %98 : vector<16x32xf32>
    %c20 = arith.constant 20 : index
    %c0_100 = arith.constant 0 : index
    %100 = vector.load %arg9[%c20, %c0_100] : memref<48x32xbf16, #tpu.memory_space<vmem>>, vector<16x32xbf16>
    %c9 = arith.constant 9 : index
    %c0_101 = arith.constant 0 : index
    %c0_102 = arith.constant 0 : index
    %101 = vector.load %arg4[%c9, %c0_101, %c0_102] : memref<11x32x32xbf16, #tpu.memory_space<vmem>>, vector<1x32x32xbf16>
    %102 = vector.shape_cast %101 : vector<1x32x32xbf16> to vector<32x32xbf16>
    %cst_103 = arith.constant dense<0.000000e+00> : vector<16x32xf32>
    %103 = tpu.matmul %100, %102, %cst_103 {dimension_numbers = #tpu.dot_dimension_numbers<[1], [0], [0], [1], [0, 0, 1, 1], [], []>} : vector<16x32xbf16>, vector<32x32xbf16>, vector<16x32xf32> -> vector<16x32xf32>
    %104 = arith.addf %99, %103 : vector<16x32xf32>
    %c21 = arith.constant 21 : index
    %c0_104 = arith.constant 0 : index
    %105 = vector.load %arg9[%c21, %c0_104] : memref<48x32xbf16, #tpu.memory_space<vmem>>, vector<16x32xbf16>
    %c10 = arith.constant 10 : index
    %c0_105 = arith.constant 0 : index
    %c0_106 = arith.constant 0 : index
    %106 = vector.load %arg4[%c10, %c0_105, %c0_106] : memref<11x32x32xbf16, #tpu.memory_space<vmem>>, vector<1x32x32xbf16>
    %107 = vector.shape_cast %106 : vector<1x32x32xbf16> to vector<32x32xbf16>
    %cst_107 = arith.constant dense<0.000000e+00> : vector<16x32xf32>
    %108 = tpu.matmul %105, %107, %cst_107 {dimension_numbers = #tpu.dot_dimension_numbers<[1], [0], [0], [1], [0, 0, 1, 1], [], []>} : vector<16x32xbf16>, vector<32x32xbf16>, vector<16x32xf32> -> vector<16x32xf32>
    %109 = arith.addf %104, %108 : vector<16x32xf32>
    %c0_108 = arith.constant 0 : index
    %c0_109 = arith.constant 0 : index
    %110 = vector.load %arg5[%c0_108, %c0_109] : memref<1x32xf32, #tpu.memory_space<vmem>>, vector<1x32xf32>
    %111 = vector.broadcast %110 : vector<1x32xf32> to vector<16x32xf32>
    %112 = arith.addf %109, %111 : vector<16x32xf32>
    %cst_110 = arith.constant 0.000000e+00 : f32
    %113 = vector.broadcast %cst_110 : f32 to vector<16x32xf32>
    %114 = arith.maximumf %112, %113 : vector<16x32xf32>
    %115 = arith.truncf %114 : vector<16x32xf32> to vector<16x32xbf16>
    %c16_111 = arith.constant 16 : index
    %c0_112 = arith.constant 0 : index
    %116 = vector.load %arg10[%c16_111, %c0_112] : memref<48x32xbf16, #tpu.memory_space<vmem>>, vector<16x32xbf16>
    tpu.vector_store %arg10[%c16_111, %c0_112], %115 {strides = array<i32>} : memref<48x32xbf16, #tpu.memory_space<vmem>>, vector<16x32xbf16>,
    %c13_113 = arith.constant 13 : index
    %c0_114 = arith.constant 0 : index
    %117 = vector.load %arg10[%c13_113, %c0_114] : memref<48x32xbf16, #tpu.memory_space<vmem>>, vector<16x32xbf16>
    %c0_115 = arith.constant 0 : index
    %c0_116 = arith.constant 0 : index
    %c0_117 = arith.constant 0 : index
    %118 = vector.load %arg6[%c0_115, %c0_116, %c0_117] : memref<7x32x128xbf16, #tpu.memory_space<vmem>>, vector<1x32x128xbf16>
    %119 = vector.shape_cast %118 : vector<1x32x128xbf16> to vector<32x128xbf16>
    %cst_118 = arith.constant dense<0.000000e+00> : vector<16x128xf32>
    %120 = tpu.matmul %117, %119, %cst_118 {dimension_numbers = #tpu.dot_dimension_numbers<[1], [0], [0], [1], [0, 0, 1, 1], [], []>} : vector<16x32xbf16>, vector<32x128xbf16>, vector<16x128xf32> -> vector<16x128xf32>
    %c14_119 = arith.constant 14 : index
    %c0_120 = arith.constant 0 : index
    %121 = vector.load %arg10[%c14_119, %c0_120] : memref<48x32xbf16, #tpu.memory_space<vmem>>, vector<16x32xbf16>
    %c1_121 = arith.constant 1 : index
    %c0_122 = arith.constant 0 : index
    %c0_123 = arith.constant 0 : index
    %122 = vector.load %arg6[%c1_121, %c0_122, %c0_123] : memref<7x32x128xbf16, #tpu.memory_space<vmem>>, vector<1x32x128xbf16>
    %123 = vector.shape_cast %122 : vector<1x32x128xbf16> to vector<32x128xbf16>
    %cst_124 = arith.constant dense<0.000000e+00> : vector<16x128xf32>
    %124 = tpu.matmul %121, %123, %cst_124 {dimension_numbers = #tpu.dot_dimension_numbers<[1], [0], [0], [1], [0, 0, 1, 1], [], []>} : vector<16x32xbf16>, vector<32x128xbf16>, vector<16x128xf32> -> vector<16x128xf32>
    %125 = arith.addf %120, %124 : vector<16x128xf32>
    %c15_125 = arith.constant 15 : index
    %c0_126 = arith.constant 0 : index
    %126 = vector.load %arg10[%c15_125, %c0_126] : memref<48x32xbf16, #tpu.memory_space<vmem>>, vector<16x32xbf16>
    %c2_127 = arith.constant 2 : index
    %c0_128 = arith.constant 0 : index
    %c0_129 = arith.constant 0 : index
    %127 = vector.load %arg6[%c2_127, %c0_128, %c0_129] : memref<7x32x128xbf16, #tpu.memory_space<vmem>>, vector<1x32x128xbf16>
    %128 = vector.shape_cast %127 : vector<1x32x128xbf16> to vector<32x128xbf16>
    %cst_130 = arith.constant dense<0.000000e+00> : vector<16x128xf32>
    %129 = tpu.matmul %126, %128, %cst_130 {dimension_numbers = #tpu.dot_dimension_numbers<[1], [0], [0], [1], [0, 0, 1, 1], [], []>} : vector<16x32xbf16>, vector<32x128xbf16>, vector<16x128xf32> -> vector<16x128xf32>
    %130 = arith.addf %125, %129 : vector<16x128xf32>
    %c16_131 = arith.constant 16 : index
    %c0_132 = arith.constant 0 : index
    %131 = vector.load %arg10[%c16_131, %c0_132] : memref<48x32xbf16, #tpu.memory_space<vmem>>, vector<16x32xbf16>
    %c3_133 = arith.constant 3 : index
    %c0_134 = arith.constant 0 : index
    %c0_135 = arith.constant 0 : index
    %132 = vector.load %arg6[%c3_133, %c0_134, %c0_135] : memref<7x32x128xbf16, #tpu.memory_space<vmem>>, vector<1x32x128xbf16>
    %133 = vector.shape_cast %132 : vector<1x32x128xbf16> to vector<32x128xbf16>
    %cst_136 = arith.constant dense<0.000000e+00> : vector<16x128xf32>
    %134 = tpu.matmul %131, %133, %cst_136 {dimension_numbers = #tpu.dot_dimension_numbers<[1], [0], [0], [1], [0, 0, 1, 1], [], []>} : vector<16x32xbf16>, vector<32x128xbf16>, vector<16x128xf32> -> vector<16x128xf32>
    %135 = arith.addf %130, %134 : vector<16x128xf32>
    %c17_137 = arith.constant 17 : index
    %c0_138 = arith.constant 0 : index
    %136 = vector.load %arg10[%c17_137, %c0_138] : memref<48x32xbf16, #tpu.memory_space<vmem>>, vector<16x32xbf16>
    %c4_139 = arith.constant 4 : index
    %c0_140 = arith.constant 0 : index
    %c0_141 = arith.constant 0 : index
    %137 = vector.load %arg6[%c4_139, %c0_140, %c0_141] : memref<7x32x128xbf16, #tpu.memory_space<vmem>>, vector<1x32x128xbf16>
    %138 = vector.shape_cast %137 : vector<1x32x128xbf16> to vector<32x128xbf16>
    %cst_142 = arith.constant dense<0.000000e+00> : vector<16x128xf32>
    %139 = tpu.matmul %136, %138, %cst_142 {dimension_numbers = #tpu.dot_dimension_numbers<[1], [0], [0], [1], [0, 0, 1, 1], [], []>} : vector<16x32xbf16>, vector<32x128xbf16>, vector<16x128xf32> -> vector<16x128xf32>
    %140 = arith.addf %135, %139 : vector<16x128xf32>
    %c18_143 = arith.constant 18 : index
    %c0_144 = arith.constant 0 : index
    %141 = vector.load %arg10[%c18_143, %c0_144] : memref<48x32xbf16, #tpu.memory_space<vmem>>, vector<16x32xbf16>
    %c5_145 = arith.constant 5 : index
    %c0_146 = arith.constant 0 : index
    %c0_147 = arith.constant 0 : index
    %142 = vector.load %arg6[%c5_145, %c0_146, %c0_147] : memref<7x32x128xbf16, #tpu.memory_space<vmem>>, vector<1x32x128xbf16>
    %143 = vector.shape_cast %142 : vector<1x32x128xbf16> to vector<32x128xbf16>
    %cst_148 = arith.constant dense<0.000000e+00> : vector<16x128xf32>
    %144 = tpu.matmul %141, %143, %cst_148 {dimension_numbers = #tpu.dot_dimension_numbers<[1], [0], [0], [1], [0, 0, 1, 1], [], []>} : vector<16x32xbf16>, vector<32x128xbf16>, vector<16x128xf32> -> vector<16x128xf32>
    %145 = arith.addf %140, %144 : vector<16x128xf32>
    %c19_149 = arith.constant 19 : index
    %c0_150 = arith.constant 0 : index
    %146 = vector.load %arg10[%c19_149, %c0_150] : memref<48x32xbf16, #tpu.memory_space<vmem>>, vector<16x32xbf16>
    %c6_151 = arith.constant 6 : index
    %c0_152 = arith.constant 0 : index
    %c0_153 = arith.constant 0 : index
    %147 = vector.load %arg6[%c6_151, %c0_152, %c0_153] : memref<7x32x128xbf16, #tpu.memory_space<vmem>>, vector<1x32x128xbf16>
    %148 = vector.shape_cast %147 : vector<1x32x128xbf16> to vector<32x128xbf16>
    %cst_154 = arith.constant dense<0.000000e+00> : vector<16x128xf32>
    %149 = tpu.matmul %146, %148, %cst_154 {dimension_numbers = #tpu.dot_dimension_numbers<[1], [0], [0], [1], [0, 0, 1, 1], [], []>} : vector<16x32xbf16>, vector<32x128xbf16>, vector<16x128xf32> -> vector<16x128xf32>
    %150 = arith.addf %145, %149 : vector<16x128xf32>
    %c0_155 = arith.constant 0 : index
    %c0_156 = arith.constant 0 : index
    %151 = vector.load %arg7[%c0_155, %c0_156] : memref<1x128xf32, #tpu.memory_space<vmem>>, vector<1x128xf32>
    %152 = vector.broadcast %151 : vector<1x128xf32> to vector<16x128xf32>
    %153 = arith.addf %150, %152 : vector<16x128xf32>
    %c0_157 = arith.constant 0 : index
    %c3_158 = arith.constant 3 : index
    %c0_159 = arith.constant 0 : index
    %154 = vector.load %arg1[%c0_157, %c3_158, %c0_159] : memref<2x22x128xbf16, #tpu.memory_space<vmem>>, vector<1x16x128xbf16>
    %155 = vector.shape_cast %154 : vector<1x16x128xbf16> to vector<16x128xbf16>
    %156 = arith.extf %155 : vector<16x128xbf16> to vector<16x128xf32>
    %157 = arith.addf %153, %156 : vector<16x128xf32>
    %cst_160 = arith.constant 0.000000e+00 : f32
    %158 = vector.broadcast %cst_160 : f32 to vector<16x128xf32>
    %159 = arith.maximumf %157, %158 : vector<16x128xf32>
    %c0_161 = arith.constant 0 : index
    %c0_162 = arith.constant 0 : index
    %c0_163 = arith.constant 0 : index
    %160 = vector.load %arg8[%c0_161, %c0_162, %c0_163] : memref<2x16x128xf32, #tpu.memory_space<vmem>>, vector<1x16x128xf32>
    %161 = vector.shape_cast %160 : vector<1x16x128xf32> to vector<16x128xf32>
    %162 = vector.shape_cast %159 : vector<16x128xf32> to vector<1x16x128xf32>
    tpu.vector_store %arg8[%c0_161, %c0_162, %c0_163], %162 {strides = array<i32>} : memref<2x16x128xf32, #tpu.memory_space<vmem>>, vector<1x16x128xf32>,
    %c1_164 = arith.constant 1 : index
    %c0_165 = arith.constant 0 : index
    %c0_166 = arith.constant 0 : index
    %163 = vector.load %arg1[%c1_164, %c0_165, %c0_166] : memref<2x22x128xbf16, #tpu.memory_space<vmem>>, vector<1x16x128xbf16>
    %164 = vector.shape_cast %163 : vector<1x16x128xbf16> to vector<16x128xbf16>
    %c0_167 = arith.constant 0 : index
    %c0_168 = arith.constant 0 : index
    %c0_169 = arith.constant 0 : index
    %165 = vector.load %arg2[%c0_167, %c0_168, %c0_169] : memref<7x128x32xbf16, #tpu.memory_space<vmem>>, vector<1x128x32xbf16>
    %166 = vector.shape_cast %165 : vector<1x128x32xbf16> to vector<128x32xbf16>
    %cst_170 = arith.constant dense<0.000000e+00> : vector<16x32xf32>
    %167 = tpu.matmul %164, %166, %cst_170 {dimension_numbers = #tpu.dot_dimension_numbers<[1], [0], [0], [1], [0, 0, 1, 1], [], []>} : vector<16x128xbf16>, vector<128x32xbf16>, vector<16x32xf32> -> vector<16x32xf32>
    %c1_171 = arith.constant 1 : index
    %c1_172 = arith.constant 1 : index
    %c0_173 = arith.constant 0 : index
    %168 = vector.load %arg1[%c1_171, %c1_172, %c0_173] : memref<2x22x128xbf16, #tpu.memory_space<vmem>>, vector<1x16x128xbf16>
    %169 = vector.shape_cast %168 : vector<1x16x128xbf16> to vector<16x128xbf16>
    %c1_174 = arith.constant 1 : index
    %c0_175 = arith.constant 0 : index
    %c0_176 = arith.constant 0 : index
    %170 = vector.load %arg2[%c1_174, %c0_175, %c0_176] : memref<7x128x32xbf16, #tpu.memory_space<vmem>>, vector<1x128x32xbf16>
    %171 = vector.shape_cast %170 : vector<1x128x32xbf16> to vector<128x32xbf16>
    %cst_177 = arith.constant dense<0.000000e+00> : vector<16x32xf32>
    %172 = tpu.matmul %169, %171, %cst_177 {dimension_numbers = #tpu.dot_dimension_numbers<[1], [0], [0], [1], [0, 0, 1, 1], [], []>} : vector<16x128xbf16>, vector<128x32xbf16>, vector<16x32xf32> -> vector<16x32xf32>
    %173 = arith.addf %167, %172 : vector<16x32xf32>
    %c1_178 = arith.constant 1 : index
    %c2_179 = arith.constant 2 : index
    %c0_180 = arith.constant 0 : index
    %174 = vector.load %arg1[%c1_178, %c2_179, %c0_180] : memref<2x22x128xbf16, #tpu.memory_space<vmem>>, vector<1x16x128xbf16>
    %175 = vector.shape_cast %174 : vector<1x16x128xbf16> to vector<16x128xbf16>
    %c2_181 = arith.constant 2 : index
    %c0_182 = arith.constant 0 : index
    %c0_183 = arith.constant 0 : index
    %176 = vector.load %arg2[%c2_181, %c0_182, %c0_183] : memref<7x128x32xbf16, #tpu.memory_space<vmem>>, vector<1x128x32xbf16>
    %177 = vector.shape_cast %176 : vector<1x128x32xbf16> to vector<128x32xbf16>
    %cst_184 = arith.constant dense<0.000000e+00> : vector<16x32xf32>
    %178 = tpu.matmul %175, %177, %cst_184 {dimension_numbers = #tpu.dot_dimension_numbers<[1], [0], [0], [1], [0, 0, 1, 1], [], []>} : vector<16x128xbf16>, vector<128x32xbf16>, vector<16x32xf32> -> vector<16x32xf32>
    %179 = arith.addf %173, %178 : vector<16x32xf32>
    %c1_185 = arith.constant 1 : index
    %c3_186 = arith.constant 3 : index
    %c0_187 = arith.constant 0 : index
    %180 = vector.load %arg1[%c1_185, %c3_186, %c0_187] : memref<2x22x128xbf16, #tpu.memory_space<vmem>>, vector<1x16x128xbf16>
    %181 = vector.shape_cast %180 : vector<1x16x128xbf16> to vector<16x128xbf16>
    %c3_188 = arith.constant 3 : index
    %c0_189 = arith.constant 0 : index
    %c0_190 = arith.constant 0 : index
    %182 = vector.load %arg2[%c3_188, %c0_189, %c0_190] : memref<7x128x32xbf16, #tpu.memory_space<vmem>>, vector<1x128x32xbf16>
    %183 = vector.shape_cast %182 : vector<1x128x32xbf16> to vector<128x32xbf16>
    %cst_191 = arith.constant dense<0.000000e+00> : vector<16x32xf32>
    %184 = tpu.matmul %181, %183, %cst_191 {dimension_numbers = #tpu.dot_dimension_numbers<[1], [0], [0], [1], [0, 0, 1, 1], [], []>} : vector<16x128xbf16>, vector<128x32xbf16>, vector<16x32xf32> -> vector<16x32xf32>
    %185 = arith.addf %179, %184 : vector<16x32xf32>
    %c1_192 = arith.constant 1 : index
    %c4_193 = arith.constant 4 : index
    %c0_194 = arith.constant 0 : index
    %186 = vector.load %arg1[%c1_192, %c4_193, %c0_194] : memref<2x22x128xbf16, #tpu.memory_space<vmem>>, vector<1x16x128xbf16>
    %187 = vector.shape_cast %186 : vector<1x16x128xbf16> to vector<16x128xbf16>
    %c4_195 = arith.constant 4 : index
    %c0_196 = arith.constant 0 : index
    %c0_197 = arith.constant 0 : index
    %188 = vector.load %arg2[%c4_195, %c0_196, %c0_197] : memref<7x128x32xbf16, #tpu.memory_space<vmem>>, vector<1x128x32xbf16>
    %189 = vector.shape_cast %188 : vector<1x128x32xbf16> to vector<128x32xbf16>
    %cst_198 = arith.constant dense<0.000000e+00> : vector<16x32xf32>
    %190 = tpu.matmul %187, %189, %cst_198 {dimension_numbers = #tpu.dot_dimension_numbers<[1], [0], [0], [1], [0, 0, 1, 1], [], []>} : vector<16x128xbf16>, vector<128x32xbf16>, vector<16x32xf32> -> vector<16x32xf32>
    %191 = arith.addf %185, %190 : vector<16x32xf32>
    %c1_199 = arith.constant 1 : index
    %c5_200 = arith.constant 5 : index
    %c0_201 = arith.constant 0 : index
    %192 = vector.load %arg1[%c1_199, %c5_200, %c0_201] : memref<2x22x128xbf16, #tpu.memory_space<vmem>>, vector<1x16x128xbf16>
    %193 = vector.shape_cast %192 : vector<1x16x128xbf16> to vector<16x128xbf16>
    %c5_202 = arith.constant 5 : index
    %c0_203 = arith.constant 0 : index
    %c0_204 = arith.constant 0 : index
    %194 = vector.load %arg2[%c5_202, %c0_203, %c0_204] : memref<7x128x32xbf16, #tpu.memory_space<vmem>>, vector<1x128x32xbf16>
    %195 = vector.shape_cast %194 : vector<1x128x32xbf16> to vector<128x32xbf16>
    %cst_205 = arith.constant dense<0.000000e+00> : vector<16x32xf32>
    %196 = tpu.matmul %193, %195, %cst_205 {dimension_numbers = #tpu.dot_dimension_numbers<[1], [0], [0], [1], [0, 0, 1, 1], [], []>} : vector<16x128xbf16>, vector<128x32xbf16>, vector<16x32xf32> -> vector<16x32xf32>
    %197 = arith.addf %191, %196 : vector<16x32xf32>
    %c1_206 = arith.constant 1 : index
    %c6_207 = arith.constant 6 : index
    %c0_208 = arith.constant 0 : index
    %198 = vector.load %arg1[%c1_206, %c6_207, %c0_208] : memref<2x22x128xbf16, #tpu.memory_space<vmem>>, vector<1x16x128xbf16>
    %199 = vector.shape_cast %198 : vector<1x16x128xbf16> to vector<16x128xbf16>
    %c6_209 = arith.constant 6 : index
    %c0_210 = arith.constant 0 : index
    %c0_211 = arith.constant 0 : index
    %200 = vector.load %arg2[%c6_209, %c0_210, %c0_211] : memref<7x128x32xbf16, #tpu.memory_space<vmem>>, vector<1x128x32xbf16>
    %201 = vector.shape_cast %200 : vector<1x128x32xbf16> to vector<128x32xbf16>
    %cst_212 = arith.constant dense<0.000000e+00> : vector<16x32xf32>
    %202 = tpu.matmul %199, %201, %cst_212 {dimension_numbers = #tpu.dot_dimension_numbers<[1], [0], [0], [1], [0, 0, 1, 1], [], []>} : vector<16x128xbf16>, vector<128x32xbf16>, vector<16x32xf32> -> vector<16x32xf32>
    %203 = arith.addf %197, %202 : vector<16x32xf32>
    %c0_213 = arith.constant 0 : index
    %c0_214 = arith.constant 0 : index
    %204 = vector.load %arg3[%c0_213, %c0_214] : memref<1x32xf32, #tpu.memory_space<vmem>>, vector<1x32xf32>
    %205 = vector.broadcast %204 : vector<1x32xf32> to vector<16x32xf32>
    %206 = arith.addf %203, %205 : vector<16x32xf32>
    %cst_215 = arith.constant 0.000000e+00 : f32
    %207 = vector.broadcast %cst_215 : f32 to vector<16x32xf32>
    %208 = arith.maximumf %206, %207 : vector<16x32xf32>
    %209 = arith.truncf %208 : vector<16x32xf32> to vector<16x32xbf16>
    %c16_216 = arith.constant 16 : index
    %c0_217 = arith.constant 0 : index
    %210 = vector.load %arg9[%c16_216, %c0_217] : memref<48x32xbf16, #tpu.memory_space<vmem>>, vector<16x32xbf16>
    tpu.vector_store %arg9[%c16_216, %c0_217], %209 {strides = array<i32>} : memref<48x32xbf16, #tpu.memory_space<vmem>>, vector<16x32xbf16>,
    %c11_218 = arith.constant 11 : index
    %c0_219 = arith.constant 0 : index
    %211 = vector.load %arg9[%c11_218, %c0_219] : memref<48x32xbf16, #tpu.memory_space<vmem>>, vector<16x32xbf16>
    %c0_220 = arith.constant 0 : index
    %c0_221 = arith.constant 0 : index
    %c0_222 = arith.constant 0 : index
    %212 = vector.load %arg4[%c0_220, %c0_221, %c0_222] : memref<11x32x32xbf16, #tpu.memory_space<vmem>>, vector<1x32x32xbf16>
    %213 = vector.shape_cast %212 : vector<1x32x32xbf16> to vector<32x32xbf16>
    %cst_223 = arith.constant dense<0.000000e+00> : vector<16x32xf32>
    %214 = tpu.matmul %211, %213, %cst_223 {dimension_numbers = #tpu.dot_dimension_numbers<[1], [0], [0], [1], [0, 0, 1, 1], [], []>} : vector<16x32xbf16>, vector<32x32xbf16>, vector<16x32xf32> -> vector<16x32xf32>
    %c12_224 = arith.constant 12 : index
    %c0_225 = arith.constant 0 : index
    %215 = vector.load %arg9[%c12_224, %c0_225] : memref<48x32xbf16, #tpu.memory_space<vmem>>, vector<16x32xbf16>
    %c1_226 = arith.constant 1 : index
    %c0_227 = arith.constant 0 : index
    %c0_228 = arith.constant 0 : index
    %216 = vector.load %arg4[%c1_226, %c0_227, %c0_228] : memref<11x32x32xbf16, #tpu.memory_space<vmem>>, vector<1x32x32xbf16>
    %217 = vector.shape_cast %216 : vector<1x32x32xbf16> to vector<32x32xbf16>
    %cst_229 = arith.constant dense<0.000000e+00> : vector<16x32xf32>
    %218 = tpu.matmul %215, %217, %cst_229 {dimension_numbers = #tpu.dot_dimension_numbers<[1], [0], [0], [1], [0, 0, 1, 1], [], []>} : vector<16x32xbf16>, vector<32x32xbf16>, vector<16x32xf32> -> vector<16x32xf32>
    %219 = arith.addf %214, %218 : vector<16x32xf32>
    %c13_230 = arith.constant 13 : index
    %c0_231 = arith.constant 0 : index
    %220 = vector.load %arg9[%c13_230, %c0_231] : memref<48x32xbf16, #tpu.memory_space<vmem>>, vector<16x32xbf16>
    %c2_232 = arith.constant 2 : index
    %c0_233 = arith.constant 0 : index
    %c0_234 = arith.constant 0 : index
    %221 = vector.load %arg4[%c2_232, %c0_233, %c0_234] : memref<11x32x32xbf16, #tpu.memory_space<vmem>>, vector<1x32x32xbf16>
    %222 = vector.shape_cast %221 : vector<1x32x32xbf16> to vector<32x32xbf16>
    %cst_235 = arith.constant dense<0.000000e+00> : vector<16x32xf32>
    %223 = tpu.matmul %220, %222, %cst_235 {dimension_numbers = #tpu.dot_dimension_numbers<[1], [0], [0], [1], [0, 0, 1, 1], [], []>} : vector<16x32xbf16>, vector<32x32xbf16>, vector<16x32xf32> -> vector<16x32xf32>
    %224 = arith.addf %219, %223 : vector<16x32xf32>
    %c14_236 = arith.constant 14 : index
    %c0_237 = arith.constant 0 : index
    %225 = vector.load %arg9[%c14_236, %c0_237] : memref<48x32xbf16, #tpu.memory_space<vmem>>, vector<16x32xbf16>
    %c3_238 = arith.constant 3 : index
    %c0_239 = arith.constant 0 : index
    %c0_240 = arith.constant 0 : index
    %226 = vector.load %arg4[%c3_238, %c0_239, %c0_240] : memref<11x32x32xbf16, #tpu.memory_space<vmem>>, vector<1x32x32xbf16>
    %227 = vector.shape_cast %226 : vector<1x32x32xbf16> to vector<32x32xbf16>
    %cst_241 = arith.constant dense<0.000000e+00> : vector<16x32xf32>
    %228 = tpu.matmul %225, %227, %cst_241 {dimension_numbers = #tpu.dot_dimension_numbers<[1], [0], [0], [1], [0, 0, 1, 1], [], []>} : vector<16x32xbf16>, vector<32x32xbf16>, vector<16x32xf32> -> vector<16x32xf32>
    %229 = arith.addf %224, %228 : vector<16x32xf32>
    %c15_242 = arith.constant 15 : index
    %c0_243 = arith.constant 0 : index
    %230 = vector.load %arg9[%c15_242, %c0_243] : memref<48x32xbf16, #tpu.memory_space<vmem>>, vector<16x32xbf16>
    %c4_244 = arith.constant 4 : index
    %c0_245 = arith.constant 0 : index
    %c0_246 = arith.constant 0 : index
    %231 = vector.load %arg4[%c4_244, %c0_245, %c0_246] : memref<11x32x32xbf16, #tpu.memory_space<vmem>>, vector<1x32x32xbf16>
    %232 = vector.shape_cast %231 : vector<1x32x32xbf16> to vector<32x32xbf16>
    %cst_247 = arith.constant dense<0.000000e+00> : vector<16x32xf32>
    %233 = tpu.matmul %230, %232, %cst_247 {dimension_numbers = #tpu.dot_dimension_numbers<[1], [0], [0], [1], [0, 0, 1, 1], [], []>} : vector<16x32xbf16>, vector<32x32xbf16>, vector<16x32xf32> -> vector<16x32xf32>
    %234 = arith.addf %229, %233 : vector<16x32xf32>
    %c16_248 = arith.constant 16 : index
    %c0_249 = arith.constant 0 : index
    %235 = vector.load %arg9[%c16_248, %c0_249] : memref<48x32xbf16, #tpu.memory_space<vmem>>, vector<16x32xbf16>
    %c5_250 = arith.constant 5 : index
    %c0_251 = arith.constant 0 : index
    %c0_252 = arith.constant 0 : index
    %236 = vector.load %arg4[%c5_250, %c0_251, %c0_252] : memref<11x32x32xbf16, #tpu.memory_space<vmem>>, vector<1x32x32xbf16>
    %237 = vector.shape_cast %236 : vector<1x32x32xbf16> to vector<32x32xbf16>
    %cst_253 = arith.constant dense<0.000000e+00> : vector<16x32xf32>
    %238 = tpu.matmul %235, %237, %cst_253 {dimension_numbers = #tpu.dot_dimension_numbers<[1], [0], [0], [1], [0, 0, 1, 1], [], []>} : vector<16x32xbf16>, vector<32x32xbf16>, vector<16x32xf32> -> vector<16x32xf32>
    %239 = arith.addf %234, %238 : vector<16x32xf32>
    %c17_254 = arith.constant 17 : index
    %c0_255 = arith.constant 0 : index
    %240 = vector.load %arg9[%c17_254, %c0_255] : memref<48x32xbf16, #tpu.memory_space<vmem>>, vector<16x32xbf16>
    %c6_256 = arith.constant 6 : index
    %c0_257 = arith.constant 0 : index
    %c0_258 = arith.constant 0 : index
    %241 = vector.load %arg4[%c6_256, %c0_257, %c0_258] : memref<11x32x32xbf16, #tpu.memory_space<vmem>>, vector<1x32x32xbf16>
    %242 = vector.shape_cast %241 : vector<1x32x32xbf16> to vector<32x32xbf16>
    %cst_259 = arith.constant dense<0.000000e+00> : vector<16x32xf32>
    %243 = tpu.matmul %240, %242, %cst_259 {dimension_numbers = #tpu.dot_dimension_numbers<[1], [0], [0], [1], [0, 0, 1, 1], [], []>} : vector<16x32xbf16>, vector<32x32xbf16>, vector<16x32xf32> -> vector<16x32xf32>
    %244 = arith.addf %239, %243 : vector<16x32xf32>
    %c18_260 = arith.constant 18 : index
    %c0_261 = arith.constant 0 : index
    %245 = vector.load %arg9[%c18_260, %c0_261] : memref<48x32xbf16, #tpu.memory_space<vmem>>, vector<16x32xbf16>
    %c7_262 = arith.constant 7 : index
    %c0_263 = arith.constant 0 : index
    %c0_264 = arith.constant 0 : index
    %246 = vector.load %arg4[%c7_262, %c0_263, %c0_264] : memref<11x32x32xbf16, #tpu.memory_space<vmem>>, vector<1x32x32xbf16>
    %247 = vector.shape_cast %246 : vector<1x32x32xbf16> to vector<32x32xbf16>
    %cst_265 = arith.constant dense<0.000000e+00> : vector<16x32xf32>
    %248 = tpu.matmul %245, %247, %cst_265 {dimension_numbers = #tpu.dot_dimension_numbers<[1], [0], [0], [1], [0, 0, 1, 1], [], []>} : vector<16x32xbf16>, vector<32x32xbf16>, vector<16x32xf32> -> vector<16x32xf32>
    %249 = arith.addf %244, %248 : vector<16x32xf32>
    %c19_266 = arith.constant 19 : index
    %c0_267 = arith.constant 0 : index
    %250 = vector.load %arg9[%c19_266, %c0_267] : memref<48x32xbf16, #tpu.memory_space<vmem>>, vector<16x32xbf16>
    %c8_268 = arith.constant 8 : index
    %c0_269 = arith.constant 0 : index
    %c0_270 = arith.constant 0 : index
    %251 = vector.load %arg4[%c8_268, %c0_269, %c0_270] : memref<11x32x32xbf16, #tpu.memory_space<vmem>>, vector<1x32x32xbf16>
    %252 = vector.shape_cast %251 : vector<1x32x32xbf16> to vector<32x32xbf16>
    %cst_271 = arith.constant dense<0.000000e+00> : vector<16x32xf32>
    %253 = tpu.matmul %250, %252, %cst_271 {dimension_numbers = #tpu.dot_dimension_numbers<[1], [0], [0], [1], [0, 0, 1, 1], [], []>} : vector<16x32xbf16>, vector<32x32xbf16>, vector<16x32xf32> -> vector<16x32xf32>
    %254 = arith.addf %249, %253 : vector<16x32xf32>
    %c20_272 = arith.constant 20 : index
    %c0_273 = arith.constant 0 : index
    %255 = vector.load %arg9[%c20_272, %c0_273] : memref<48x32xbf16, #tpu.memory_space<vmem>>, vector<16x32xbf16>
    %c9_274 = arith.constant 9 : index
    %c0_275 = arith.constant 0 : index
    %c0_276 = arith.constant 0 : index
    %256 = vector.load %arg4[%c9_274, %c0_275, %c0_276] : memref<11x32x32xbf16, #tpu.memory_space<vmem>>, vector<1x32x32xbf16>
    %257 = vector.shape_cast %256 : vector<1x32x32xbf16> to vector<32x32xbf16>
    %cst_277 = arith.constant dense<0.000000e+00> : vector<16x32xf32>
    %258 = tpu.matmul %255, %257, %cst_277 {dimension_numbers = #tpu.dot_dimension_numbers<[1], [0], [0], [1], [0, 0, 1, 1], [], []>} : vector<16x32xbf16>, vector<32x32xbf16>, vector<16x32xf32> -> vector<16x32xf32>
    %259 = arith.addf %254, %258 : vector<16x32xf32>
    %c21_278 = arith.constant 21 : index
    %c0_279 = arith.constant 0 : index
    %260 = vector.load %arg9[%c21_278, %c0_279] : memref<48x32xbf16, #tpu.memory_space<vmem>>, vector<16x32xbf16>
    %c10_280 = arith.constant 10 : index
    %c0_281 = arith.constant 0 : index
    %c0_282 = arith.constant 0 : index
    %261 = vector.load %arg4[%c10_280, %c0_281, %c0_282] : memref<11x32x32xbf16, #tpu.memory_space<vmem>>, vector<1x32x32xbf16>
    %262 = vector.shape_cast %261 : vector<1x32x32xbf16> to vector<32x32xbf16>
    %cst_283 = arith.constant dense<0.000000e+00> : vector<16x32xf32>
    %263 = tpu.matmul %260, %262, %cst_283 {dimension_numbers = #tpu.dot_dimension_numbers<[1], [0], [0], [1], [0, 0, 1, 1], [], []>} : vector<16x32xbf16>, vector<32x32xbf16>, vector<16x32xf32> -> vector<16x32xf32>
    %264 = arith.addf %259, %263 : vector<16x32xf32>
    %c0_284 = arith.constant 0 : index
    %c0_285 = arith.constant 0 : index
    %265 = vector.load %arg5[%c0_284, %c0_285] : memref<1x32xf32, #tpu.memory_space<vmem>>, vector<1x32xf32>
    %266 = vector.broadcast %265 : vector<1x32xf32> to vector<16x32xf32>
    %267 = arith.addf %264, %266 : vector<16x32xf32>
    %cst_286 = arith.constant 0.000000e+00 : f32
    %268 = vector.broadcast %cst_286 : f32 to vector<16x32xf32>
    %269 = arith.maximumf %267, %268 : vector<16x32xf32>
    %270 = arith.truncf %269 : vector<16x32xf32> to vector<16x32xbf16>
    %c16_287 = arith.constant 16 : index
    %c0_288 = arith.constant 0 : index
    %271 = vector.load %arg10[%c16_287, %c0_288] : memref<48x32xbf16, #tpu.memory_space<vmem>>, vector<16x32xbf16>
    tpu.vector_store %arg10[%c16_287, %c0_288], %270 {strides = array<i32>} : memref<48x32xbf16, #tpu.memory_space<vmem>>, vector<16x32xbf16>,
    %c13_289 = arith.constant 13 : index
    %c0_290 = arith.constant 0 : index
    %272 = vector.load %arg10[%c13_289, %c0_290] : memref<48x32xbf16, #tpu.memory_space<vmem>>, vector<16x32xbf16>
    %c0_291 = arith.constant 0 : index
    %c0_292 = arith.constant 0 : index
    %c0_293 = arith.constant 0 : index
    %273 = vector.load %arg6[%c0_291, %c0_292, %c0_293] : memref<7x32x128xbf16, #tpu.memory_space<vmem>>, vector<1x32x128xbf16>
    %274 = vector.shape_cast %273 : vector<1x32x128xbf16> to vector<32x128xbf16>
    %cst_294 = arith.constant dense<0.000000e+00> : vector<16x128xf32>
    %275 = tpu.matmul %272, %274, %cst_294 {dimension_numbers = #tpu.dot_dimension_numbers<[1], [0], [0], [1], [0, 0, 1, 1], [], []>} : vector<16x32xbf16>, vector<32x128xbf16>, vector<16x128xf32> -> vector<16x128xf32>
    %c14_295 = arith.constant 14 : index
    %c0_296 = arith.constant 0 : index
    %276 = vector.load %arg10[%c14_295, %c0_296] : memref<48x32xbf16, #tpu.memory_space<vmem>>, vector<16x32xbf16>
    %c1_297 = arith.constant 1 : index
    %c0_298 = arith.constant 0 : index
    %c0_299 = arith.constant 0 : index
    %277 = vector.load %arg6[%c1_297, %c0_298, %c0_299] : memref<7x32x128xbf16, #tpu.memory_space<vmem>>, vector<1x32x128xbf16>
    %278 = vector.shape_cast %277 : vector<1x32x128xbf16> to vector<32x128xbf16>
    %cst_300 = arith.constant dense<0.000000e+00> : vector<16x128xf32>
    %279 = tpu.matmul %276, %278, %cst_300 {dimension_numbers = #tpu.dot_dimension_numbers<[1], [0], [0], [1], [0, 0, 1, 1], [], []>} : vector<16x32xbf16>, vector<32x128xbf16>, vector<16x128xf32> -> vector<16x128xf32>
    %280 = arith.addf %275, %279 : vector<16x128xf32>
    %c15_301 = arith.constant 15 : index
    %c0_302 = arith.constant 0 : index
    %281 = vector.load %arg10[%c15_301, %c0_302] : memref<48x32xbf16, #tpu.memory_space<vmem>>, vector<16x32xbf16>
    %c2_303 = arith.constant 2 : index
    %c0_304 = arith.constant 0 : index
    %c0_305 = arith.constant 0 : index
    %282 = vector.load %arg6[%c2_303, %c0_304, %c0_305] : memref<7x32x128xbf16, #tpu.memory_space<vmem>>, vector<1x32x128xbf16>
    %283 = vector.shape_cast %282 : vector<1x32x128xbf16> to vector<32x128xbf16>
    %cst_306 = arith.constant dense<0.000000e+00> : vector<16x128xf32>
    %284 = tpu.matmul %281, %283, %cst_306 {dimension_numbers = #tpu.dot_dimension_numbers<[1], [0], [0], [1], [0, 0, 1, 1], [], []>} : vector<16x32xbf16>, vector<32x128xbf16>, vector<16x128xf32> -> vector<16x128xf32>
    %285 = arith.addf %280, %284 : vector<16x128xf32>
    %c16_307 = arith.constant 16 : index
    %c0_308 = arith.constant 0 : index
    %286 = vector.load %arg10[%c16_307, %c0_308] : memref<48x32xbf16, #tpu.memory_space<vmem>>, vector<16x32xbf16>
    %c3_309 = arith.constant 3 : index
    %c0_310 = arith.constant 0 : index
    %c0_311 = arith.constant 0 : index
    %287 = vector.load %arg6[%c3_309, %c0_310, %c0_311] : memref<7x32x128xbf16, #tpu.memory_space<vmem>>, vector<1x32x128xbf16>
    %288 = vector.shape_cast %287 : vector<1x32x128xbf16> to vector<32x128xbf16>
    %cst_312 = arith.constant dense<0.000000e+00> : vector<16x128xf32>
    %289 = tpu.matmul %286, %288, %cst_312 {dimension_numbers = #tpu.dot_dimension_numbers<[1], [0], [0], [1], [0, 0, 1, 1], [], []>} : vector<16x32xbf16>, vector<32x128xbf16>, vector<16x128xf32> -> vector<16x128xf32>
    %290 = arith.addf %285, %289 : vector<16x128xf32>
    %c17_313 = arith.constant 17 : index
    %c0_314 = arith.constant 0 : index
    %291 = vector.load %arg10[%c17_313, %c0_314] : memref<48x32xbf16, #tpu.memory_space<vmem>>, vector<16x32xbf16>
    %c4_315 = arith.constant 4 : index
    %c0_316 = arith.constant 0 : index
    %c0_317 = arith.constant 0 : index
    %292 = vector.load %arg6[%c4_315, %c0_316, %c0_317] : memref<7x32x128xbf16, #tpu.memory_space<vmem>>, vector<1x32x128xbf16>
    %293 = vector.shape_cast %292 : vector<1x32x128xbf16> to vector<32x128xbf16>
    %cst_318 = arith.constant dense<0.000000e+00> : vector<16x128xf32>
    %294 = tpu.matmul %291, %293, %cst_318 {dimension_numbers = #tpu.dot_dimension_numbers<[1], [0], [0], [1], [0, 0, 1, 1], [], []>} : vector<16x32xbf16>, vector<32x128xbf16>, vector<16x128xf32> -> vector<16x128xf32>
    %295 = arith.addf %290, %294 : vector<16x128xf32>
    %c18_319 = arith.constant 18 : index
    %c0_320 = arith.constant 0 : index
    %296 = vector.load %arg10[%c18_319, %c0_320] : memref<48x32xbf16, #tpu.memory_space<vmem>>, vector<16x32xbf16>
    %c5_321 = arith.constant 5 : index
    %c0_322 = arith.constant 0 : index
    %c0_323 = arith.constant 0 : index
    %297 = vector.load %arg6[%c5_321, %c0_322, %c0_323] : memref<7x32x128xbf16, #tpu.memory_space<vmem>>, vector<1x32x128xbf16>
    %298 = vector.shape_cast %297 : vector<1x32x128xbf16> to vector<32x128xbf16>
    %cst_324 = arith.constant dense<0.000000e+00> : vector<16x128xf32>
    %299 = tpu.matmul %296, %298, %cst_324 {dimension_numbers = #tpu.dot_dimension_numbers<[1], [0], [0], [1], [0, 0, 1, 1], [], []>} : vector<16x32xbf16>, vector<32x128xbf16>, vector<16x128xf32> -> vector<16x128xf32>
    %300 = arith.addf %295, %299 : vector<16x128xf32>
    %c19_325 = arith.constant 19 : index
    %c0_326 = arith.constant 0 : index
    %301 = vector.load %arg10[%c19_325, %c0_326] : memref<48x32xbf16, #tpu.memory_space<vmem>>, vector<16x32xbf16>
    %c6_327 = arith.constant 6 : index
    %c0_328 = arith.constant 0 : index
    %c0_329 = arith.constant 0 : index
    %302 = vector.load %arg6[%c6_327, %c0_328, %c0_329] : memref<7x32x128xbf16, #tpu.memory_space<vmem>>, vector<1x32x128xbf16>
    %303 = vector.shape_cast %302 : vector<1x32x128xbf16> to vector<32x128xbf16>
    %cst_330 = arith.constant dense<0.000000e+00> : vector<16x128xf32>
    %304 = tpu.matmul %301, %303, %cst_330 {dimension_numbers = #tpu.dot_dimension_numbers<[1], [0], [0], [1], [0, 0, 1, 1], [], []>} : vector<16x32xbf16>, vector<32x128xbf16>, vector<16x128xf32> -> vector<16x128xf32>
    %305 = arith.addf %300, %304 : vector<16x128xf32>
    %c0_331 = arith.constant 0 : index
    %c0_332 = arith.constant 0 : index
    %306 = vector.load %arg7[%c0_331, %c0_332] : memref<1x128xf32, #tpu.memory_space<vmem>>, vector<1x128xf32>
    %307 = vector.broadcast %306 : vector<1x128xf32> to vector<16x128xf32>
    %308 = arith.addf %305, %307 : vector<16x128xf32>
    %c1_333 = arith.constant 1 : index
    %c3_334 = arith.constant 3 : index
    %c0_335 = arith.constant 0 : index
    %309 = vector.load %arg1[%c1_333, %c3_334, %c0_335] : memref<2x22x128xbf16, #tpu.memory_space<vmem>>, vector<1x16x128xbf16>
    %310 = vector.shape_cast %309 : vector<1x16x128xbf16> to vector<16x128xbf16>
    %311 = arith.extf %310 : vector<16x128xbf16> to vector<16x128xf32>
    %312 = arith.addf %308, %311 : vector<16x128xf32>
    %cst_336 = arith.constant 0.000000e+00 : f32
    %313 = vector.broadcast %cst_336 : f32 to vector<16x128xf32>
    %314 = arith.maximumf %312, %313 : vector<16x128xf32>
    %c1_337 = arith.constant 1 : index
    %c0_338 = arith.constant 0 : index
    %c0_339 = arith.constant 0 : index
    %315 = vector.load %arg8[%c1_337, %c0_338, %c0_339] : memref<2x16x128xf32, #tpu.memory_space<vmem>>, vector<1x16x128xf32>
    %316 = vector.shape_cast %315 : vector<1x16x128xf32> to vector<16x128xf32>
    %317 = vector.shape_cast %314 : vector<16x128xf32> to vector<1x16x128xf32>
    tpu.vector_store %arg8[%c1_337, %c0_338, %c0_339], %317 {strides = array<i32>} : memref<2x16x128xf32, #tpu.memory_space<vmem>>, vector<1x16x128xf32>,
    return
  }
  func.func @transform_0(%arg0: i32) -> (i32, i32, i32) {
    %c0_i32 = arith.constant 0 : i32
    %c0_i32_0 = arith.constant 0 : i32
    %c0_i32_1 = arith.constant 0 : i32
    return %arg0, %c0_i32, %c0_i32_0 : i32, i32, i32
  }
  func.func @transform_1(%arg0: i32) -> (i32, i32, i32) {
    %c0_i32 = arith.constant 0 : i32
    %c0_i32_0 = arith.constant 0 : i32
    %c0_i32_1 = arith.constant 0 : i32
    %c0_i32_2 = arith.constant 0 : i32
    return %c0_i32, %c0_i32_0, %c0_i32_1 : i32, i32, i32
  }
  func.func @transform_2(%arg0: i32) -> (i32, i32) {
    %c0_i32 = arith.constant 0 : i32
    %c0_i32_0 = arith.constant 0 : i32
    %c0_i32_1 = arith.constant 0 : i32
    return %c0_i32, %c0_i32_0 : i32, i32
  }
  func.func @transform_3(%arg0: i32) -> (i32, i32, i32) {
    %c0_i32 = arith.constant 0 : i32
    %c0_i32_0 = arith.constant 0 : i32
    %c0_i32_1 = arith.constant 0 : i32
    %c0_i32_2 = arith.constant 0 : i32
    return %c0_i32, %c0_i32_0, %c0_i32_1 : i32, i32, i32
  }
  func.func @transform_4(%arg0: i32) -> (i32, i32) {
    %c0_i32 = arith.constant 0 : i32
    %c0_i32_0 = arith.constant 0 : i32
    %c0_i32_1 = arith.constant 0 : i32
    return %c0_i32, %c0_i32_0 : i32, i32
  }
  func.func @transform_5(%arg0: i32) -> (i32, i32, i32) {
    %c0_i32 = arith.constant 0 : i32
    %c0_i32_0 = arith.constant 0 : i32
    %c0_i32_1 = arith.constant 0 : i32
    %c0_i32_2 = arith.constant 0 : i32
    return %c0_i32, %c0_i32_0, %c0_i32_1 : i32, i32, i32
  }
  func.func @transform_6(%arg0: i32) -> (i32, i32) {
    %c0_i32 = arith.constant 0 : i32
    %c0_i32_0 = arith.constant 0 : i32
    %c0_i32_1 = arith.constant 0 : i32
    return %c0_i32, %c0_i32_0 : i32, i32
  }
  func.func @transform_7(%arg0: i32) -> (i32, i32, i32) {
    %c0_i32 = arith.constant 0 : i32
    %c0_i32_0 = arith.constant 0 : i32
    %c0_i32_1 = arith.constant 0 : i32
    return %arg0, %c0_i32, %c0_i32_0 : i32, i32, i32
  }
}

</mosaic_0001>

<bundles_post_ra>
// kernel: tpu_custom_call.1
= control target key start
LH: loop header
LB: loop body
LE: loop exit
PB: predicated region body
PF: predicated region fallthrough
CT: control target
= control target key end

     0   :  { %v6088_v1 = vmov 0.0   ;;  %vm6089_vm0 = vmmov 0   ;;  %vm77_vm1 = vsmask.f32 7424  ;;  %vm291_vm2 = vcmask 1046528   ;;  %s7290_s0 = inlined_call_operand.vmem [shape: bf16[2,22,128], index: 0, kind: input, shape index: {}]   ;;  %s7291_s1 = inlined_call_operand.vmem [shape: bf16[7,128,32], index: 1, kind: input, shape index: {}]   ;;  %s7292_s2 = inlined_call_operand.vmem [shape: f32[1,32], index: 2, kind: input, shape index: {}]   ;;  %s7293_s3 = inlined_call_operand.vmem [shape: bf16[11,32,32], index: 3, kind: input, shape index: {}]   ;;  %s7294_s4 = inlined_call_operand.vmem [shape: f32[1,32], index: 4, kind: input, shape index: {}]   ;;  %s7295_s5 = inlined_call_operand.vmem [shape: bf16[7,32,128], index: 5, kind: input, shape index: {}]   ;;  %s7296_s6 = inlined_call_operand.vmem [shape: f32[1,128], index: 6, kind: input, shape index: {}]   ;;  %s7297_s7 = inlined_call_operand.hbm [shape: f32[2,16,128], index: 7, kind: output, shape index: {}]  }
   0x1   :  { %v5866_v0 = vld [vmem:[%s7291_s1 + $0x40] sm:$0xff]   ;;  %5292 = vmatprep.subr.bf16.mxu0 %v6088_v1  ;;  %5312 = vmatprep.subr.bf16.mxu1 %v6088_v1  ;;  %v5868_v3 = vld [vmem:[%s7291_s1 + $0x48] sm:$0xff]   ;;  %v5870_v5 = vld [vmem:[%s7291_s1 + $0x50] sm:$0xff]   ;;  %vm408_vm3 = vsmask.f32 6400  ;;  %vm539_vm4 = vcmask 1045504  }
   0x2   :  { %v5867_v2 = vld [vmem:[%s7291_s1] sm:$0xff]   ;;  %5293 = vmatpush3.bf16.msra.mxu0 %v5866_v0  ;;  %5308 = vmatprep.mubr.msk.bf16.mxu0 %vm6089_vm0, %v6088_v1  ;;  %v5869_v4 = vld [vmem:[%s7291_s1 + $0x8] sm:$0xff]   ;;  %v5871_v6 = vld [vmem:[%s7291_s1 + $0x10] sm:$0xff]   ;;  %vm656_vm5 = vsmask.f32 5376  ;;  %vm787_vm6 = vcmask 1044480  }
   0x3   :  { %5313 = vmatpush3.bf16.msra.mxu1 %v5867_v2  ;;  %5294 = vmatprep.subr.bf16.mxu0 %v6088_v1  ;;  %v5872_v7 = vld [vmem:[%s7291_s1 + $0x58] sm:$0xff]   ;;  %v5874_v9 = vld [vmem:[%s7291_s1 + $0x60] sm:$0xff]   ;;  %v5876_v13 = vld [vmem:[%s7291_s1 + $0x68] sm:$0xff]  }
   0x4   :  { %5314 = vmatprep.subr.bf16.mxu1 %v6088_v1  ;;  %5328 = vmatprep.mubr.msk.bf16.mxu1 %vm6089_vm0, %v6088_v1  ;;  %v5873_v8 = vld [vmem:[%s7291_s1 + $0x18] sm:$0xff]   ;;  %v5875_v10 = vld [vmem:[%s7291_s1 + $0x20] sm:$0xff]   ;;  %v6193_v15 = vld [vmem:[%s7290_s0 + $0x8] ss:$0 sps:$4 sm:$0x11]  }
   0x5   :  { %v33_v11 = vld [vmem:[%s7290_s0] sm:$0xf]  ;;  %v6184_v12 = vld [vmem:[%s7290_s0 + $0x4] sm:$0xf]  ;;  %v5877_v16 = vld [vmem:[%s7291_s1 + $0x28] sm:$0xff]   ;;  %v86_v21 = vshll.u32 %v6193_v15, 16 }
   0x6   :  { %5295 = vmatpush3.bf16.msra.mxu0 %v5868_v3  ;;  %v4503_v14 = vcombine.low %v33_v11, %v6184_v12  ;;  %v5878_v18 = vld [vmem:[%s7291_s1 + $0x70] sm:$0xff]   ;;  %v5880_v23 = vld [vmem:[%s7291_s1 + $0x78] sm:$0xff]   ;;  %v5884_v28 = vld [vmem:[%s7291_s1 + $0x80] sm:$0xff]   ;;  %v293_v57 = vrot.slane %v6193_v15, 1 }
   0x7   :  { %5315 = vmatpush3.bf16.msra.mxu1 %v5869_v4  ;;  %5296 = vmatprep.subr.bf16.mxu0 %v6088_v1  ;;  %v5879_v22 = vld [vmem:[%s7291_s1 + $0x30] sm:$0xff]   ;;  %v5881_v24 = vld [vmem:[%s7291_s1 + $0x38] sm:$0xff]   ;;  %v88_v26 = vrot.slane %v86_v21, 1  ;;  %v5885_v29 = vld [vmem:[%s7291_s1 + $0xc0] sm:$0xff]  }
   0x8   :  { %5316 = vmatprep.subr.bf16.mxu1 %v6088_v1  ;;  %v81_v17 = vshll.u32 %v4503_v14, 16  ;;  %v79_v19 = vshrl.u32 %v4503_v14, 16  ;;  %v5886_v30 = vld [vmem:[%s7291_s1 + $0x88] sm:$0xff]   ;;  %v5888_v32 = vld [vmem:[%s7291_s1 + $0x90] sm:$0xff]   ;;  %v5890_v34 = vld [vmem:[%s7291_s1 + $0x98] sm:$0xff]  }
   0x9   :  { %v5887_v31 = vld [vmem:[%s7291_s1 + $0xc8] sm:$0xff]   ;;  %v5889_v33 = vld [vmem:[%s7291_s1 + $0xd0] sm:$0xff]   ;;  %v5891_v35 = vld [vmem:[%s7291_s1 + $0xd8] sm:$0xff]  }
   0xa   :  { %5297 = vmatpush3.bf16.msra.mxu0 %v5870_v5  ;;  %v83_v20 = vrot.slane %v81_v17, 1  ;;  %v270_v36 = vld [vmem:[%s7290_s0] sm:$0xe]  ;;  %v6260_v37 = vld [vmem:[%s7290_s0 + $0x8] ss:$0 sps:$4 sm:$0x33]  }
   0xb   :  { %5317 = vmatpush3.bf16.msra.mxu1 %v5871_v6  ;;  %5298 = vmatprep.subr.bf16.mxu0 %v6088_v1  ;;  %v5892_v38 = vld [vmem:[%s7291_s1 + $0xa0] sm:$0xff]   ;;  %v4537_v39 = vcombine.low %v270_v36, %v6184_v12  ;;  %v5894_v41 = vld [vmem:[%s7291_s1 + $0xa8] sm:$0xff]   ;;  %v418_v45 = vshrl.u32 %v6260_v37, 16  ;;  %v421_v46 = vshll.u32 %v6260_v37, 16  ;;  %v5896_v48 = vld [vmem:[%s7291_s1 + $0xb0] sm:$0xff]   ;;  %v541_v6 = vrot.slane %v6260_v37, 2 }
   0xc   :  { %5318 = vmatprep.subr.bf16.mxu1 %v6088_v1  ;;  %v84_v25 = vor.u32 %v83_v20, %v79_v19  ;;  %v5893_v40 = vld [vmem:[%s7291_s1 + $0xe0] sm:$0xff]   ;;  %v5895_v42 = vld [vmem:[%s7291_s1 + $0xe8] sm:$0xff]   ;;  %v5897_v49 = vld [vmem:[%s7291_s1 + $0xf0] sm:$0xff]  }
   0xd   :  { %v410_v43 = vshrl.u32 %v4537_v39, 16  ;;  %v413_v44 = vshll.u32 %v4537_v39, 16  ;;  %v518_v47 = vld [vmem:[%s7290_s0] sm:$0xc]  ;;  %v420_v53 = vrot.slane %v418_v45, 1  ;;  %v423_v54 = vrot.slane %v421_v46, 2 }
   0xe   :  { %5299 = vmatpush3.bf16.msra.mxu0 %v5872_v7  ;;  %v89_v27 = vsel %vm77_vm1, %v84_v25, %v88_v26  ;;  %v6291_v51 = vcombine.low %v518_v47, %v6184_v12  ;;  %v6297_v55 = vld [vmem:[%s7290_s0 + $0x8] ss:$0 sps:$4 sm:$0x77]   ;;  %v5898_v56 = vld [vmem:[%s7291_s1 + $0xb8] sm:$0xff]   ;;  %v292_v59 = vrot.slane %v4537_v39, 1  ;;  %v5901_v3 = vld [vmem:[%s7291_s1 + $0x100] sm:$0xff]  }
   0xf   :  { %5319 = vmatpush3.bf16.msra.mxu1 %v5873_v8  ;;  %5300 = vmatprep.subr.bf16.mxu0 %v6088_v1  ;;  %v412_v50 = vrot.slane %v410_v43, 1  ;;  %v415_v52 = vrot.slane %v413_v44, 2  ;;  %v5899_v58 = vld [vmem:[%s7291_s1 + $0xf8] sm:$0xff]   ;;  %v424_v63 = vor.u32 %v423_v54, %v420_v53  ;;  %v666_v0 = vshrl.u32 %v6297_v55, 16  ;;  %v5903_v4 = vld [vmem:[%s7291_s1 + $0x140] sm:$0xff]   ;;  %v5904_v15 = vld [vmem:[%s7291_s1 + $0x108] sm:$0xff]  }
  0x10   :  { %5320 = vmatprep.subr.bf16.mxu1 %v6088_v1  ;;  %v658_v60 = vshrl.u32 %v6291_v51, 16  ;;  %v661_v61 = vshll.u32 %v6291_v51, 16  ;;  %v669_v2 = vshll.u32 %v6297_v55, 16  ;;  %v540_v5 = vrot.slane %v6291_v51, 2  ;;  %v5905_v17 = vld [vmem:[%s7291_s1 + $0x148] sm:$0xff]   ;;  %v5907_v20 = vld [vmem:[%s7291_s1 + $0x150] sm:$0xff]  }
  0x11   :  { %v416_v62 = vor.u32 %v415_v52, %v412_v50  ;;  %v294_v7 = vsel %vm291_vm2, %v292_v59, %v293_v57  ;;  %v6328_v11 = vrot.slane %v666_v0, 2  ;;  %v789_v19 = vrot.slane %v6297_v55, 3  ;;  %v5908_v21 = vld [vmem:[%s7291_s1 + $0x118] sm:$0xff]   ;;  %v5912_v25 = vld [vmem:[%s7291_s1 + $0x128] sm:$0xff]   ;;  %v5922_v37 = vld [vmem:[%s7291_s1 + $0x190] sm:$0xff]  }
  0x12   :  { %5301 = vmatpush3.bf16.msra.mxu0 %v5874_v9  ;;  %v6322_v8 = vrot.slane %v658_v60, 2  ;;  %v6324_v9 = vrot.slane %v661_v61, 3  ;;  %v5913_v26 = vld [vmem:[%s7291_s1 + $0x168] sm:$0xff]   ;;  %v5924_v39 = vld [vmem:[%s7291_s1 + $0x1a0] sm:$0xff]  }
  0x13   :  { %5321 = vmatpush3.bf16.msra.mxu1 %v5875_v10  ;;  %5302 = vmatprep.subr.bf16.mxu0 %v6088_v1  ;;  %v425_v10 = vsel %vm408_vm3, %v416_v62, %v424_v63  ;;  %v5921_v36 = vld [vmem:[%s7291_s1 + $0x188] sm:$0xff]  }
  0x14   :  { %5322 = vmatprep.subr.bf16.mxu1 %v6088_v1 }
  0x16   :  { %5303 = vmatpush3.bf16.msra.mxu0 %v5876_v13  ;;  %v6330_v13 = vrot.slane %v669_v2, 3 }
  0x17   :  { %5323 = vmatpush3.bf16.msra.mxu1 %v5877_v16  ;;  %5304 = vmatprep.subr.bf16.mxu0 %v6088_v1 }
  0x18   :  { %5324 = vmatprep.subr.bf16.mxu1 %v6088_v1 }
  0x1a   :  { %5305 = vmatpush3.bf16.msra.mxu0 %v5878_v18 }
  0x1b   :  { %5325 = vmatpush3.bf16.msra.mxu1 %v5879_v22  ;;  %5306 = vmatprep.subr.bf16.mxu0 %v6088_v1  ;;  %v5909_v22 = vld [vmem:[%s7291_s1 + $0x158] sm:$0xff]  }
  0x1c   :  { %5326 = vmatprep.subr.bf16.mxu1 %v6088_v1 }
  0x1e   :  { %5307 = vmatpush3.bf16.msra.mxu0 %v5880_v23  ;;  %v5910_v23 = vld [vmem:[%s7291_s1 + $0x120] sm:$0xff]  }
  0x1f   :  { %5327 = vmatpush3.bf16.msra.mxu1 %v5881_v24  ;;  %5332 = vmatprep.subr.bf16.mxu0 %v6088_v1  ;;  %v5911_v24 = vld [vmem:[%s7291_s1 + $0x160] sm:$0xff]  }
  0x20   :  { %5352 = vmatprep.subr.bf16.mxu1 %v6088_v1 }
  0x21   :  { %5309 = vmatmul.mubr.bf16.vlgmr.msra.gmra.mrb[0].mxu0 %v89_v27  ;;  %v5914_v27 = vld [vmem:[%s7291_s1 + $0x130] sm:$0xff]  }
  0x22   :  { %5329 = vmatmul.mubr.bf16.vlgmr.msra.gmra.mrb[0].mxu1 %v4503_v14  ;;  %5333 = vmatpush3.bf16.msra.mxu0 %v5884_v28  ;;  %v766_v14 = vld [vmem:[%s7290_s0] sm:$0x8]  ;;  %v5915_v28 = vld [vmem:[%s7291_s1 + $0x170] sm:$0xff]  }
  0x23   :  { %5353 = vmatpush3.bf16.msra.mxu1 %v5885_v29  ;;  %5334 = vmatprep.subr.bf16.mxu0 %v6088_v1  ;;  %v4637_v16 = vcombine.low %v766_v14, %v6184_v12  ;;  %v5906_v12 = vld [vmem:[%s7291_s1 + $0x110] sm:$0xff]   ;;  %v5916_v29 = vld [vmem:[%s7291_s1 + $0x138] sm:$0xff]  }
  0x24   :  { %5354 = vmatprep.subr.bf16.mxu1 %v6088_v1  ;;  %5348 = vmatprep.mubr.msk.bf16.mxu0 %vm6089_vm0, %v6088_v1 }
  0x25   :  { %5368 = vmatprep.mubr.msk.bf16.mxu1 %vm6089_vm0, %v6088_v1  ;;  %v6343_v18 = vrot.slane %v4637_v16, 3 }
  0x26   :  { %5335 = vmatpush3.bf16.msra.mxu0 %v5886_v30  ;;  %v5917_v30 = vld [vmem:[%s7291_s1 + $0x178] sm:$0xff]  }
  0x27   :  { %5355 = vmatpush3.bf16.msra.mxu1 %v5887_v31  ;;  %5336 = vmatprep.subr.bf16.mxu0 %v6088_v1  ;;  %v664_v31 = vor.u32 %v6324_v9, %v6322_v8  ;;  %v790_v43 = vsel %vm787_vm6, %v6343_v18, %v789_v19 }
  0x28   :  { %5356 = vmatprep.subr.bf16.mxu1 %v6088_v1 }
  0x2a   :  { %5337 = vmatpush3.bf16.msra.mxu0 %v5888_v32  ;;  %v672_v32 = vor.u32 %v6330_v13, %v6328_v11 }
  0x2b   :  { %5357 = vmatpush3.bf16.msra.mxu1 %v5889_v33  ;;  %5338 = vmatprep.subr.bf16.mxu0 %v6088_v1  ;;  %v5919_v33 = vld [vmem:[%s7291_s1 + $0x180] sm:$0xff]  }
  0x2c   :  { %5358 = vmatprep.subr.bf16.mxu1 %v6088_v1 }
  0x2e   :  { %5339 = vmatpush3.bf16.msra.mxu0 %v5890_v34  ;;  %v542_v34 = vsel %vm539_vm4, %v540_v5, %v541_v6 }
  0x2f   :  { %5359 = vmatpush3.bf16.msra.mxu1 %v5891_v35  ;;  %5340 = vmatprep.subr.bf16.mxu0 %v6088_v1  ;;  %v673_v35 = vsel %vm656_vm5, %v664_v31, %v672_v32 }
  0x30   :  { %5360 = vmatprep.subr.bf16.mxu1 %v6088_v1 }
  0x32   :  { %5341 = vmatpush3.bf16.msra.mxu0 %v5892_v38  ;;  %v5923_v38 = vld [vmem:[%s7291_s1 + $0x198] sm:$0xff]  }
  0x33   :  { %5361 = vmatpush3.bf16.msra.mxu1 %v5893_v40  ;;  %5342 = vmatprep.subr.bf16.mxu0 %v6088_v1  ;;  %v5925_v40 = vld [vmem:[%s7291_s1 + $0x1a8] sm:$0xff]  }
  0x34   :  { %5362 = vmatprep.subr.bf16.mxu1 %v6088_v1 }
  0x36   :  { %5343 = vmatpush3.bf16.msra.mxu0 %v5894_v41  ;;  %v5926_v41 = vld [vmem:[%s7291_s1 + $0x1b0] sm:$0xff]  }
  0x37   :  { %5363 = vmatpush3.bf16.msra.mxu1 %v5895_v42  ;;  %5344 = vmatprep.subr.bf16.mxu0 %v6088_v1  ;;  %v5927_v42 = vld [vmem:[%s7291_s1 + $0x1b8] sm:$0xff]  }
  0x38   :  { %5364 = vmatprep.subr.bf16.mxu1 %v6088_v1 }
  0x3a   :  { %5345 = vmatpush3.bf16.msra.mxu0 %v5896_v48 }
  0x3b   :  { %5365 = vmatpush3.bf16.msra.mxu1 %v5897_v49  ;;  %5346 = vmatprep.subr.bf16.mxu0 %v6088_v1 }
  0x3c   :  { %5366 = vmatprep.subr.bf16.mxu1 %v6088_v1 }
  0x3e   :  { %5347 = vmatpush3.bf16.msra.mxu0 %v5898_v56 }
  0x3f   :  { %5367 = vmatpush3.bf16.msra.mxu1 %v5899_v58  ;;  %5372 = vmatprep.subr.bf16.mxu0 %v6088_v1 }
  0x40   :  { %5392 = vmatprep.subr.bf16.mxu1 %v6088_v1 }
  0x41   :  { %5349 = vmatmul.mubr.bf16.vlgmr.msra.gmra.mrb[4].mxu0 %v294_v7 }
  0x42   :  { %5373 = vmatpush3.bf16.msra.mxu0 %v5901_v3  ;;  %5369 = vmatmul.mubr.bf16.vlgmr.msra.gmra.mrb[4].mxu1 %v425_v10 }
  0x43   :  { %5393 = vmatpush3.bf16.msra.mxu1 %v5903_v4  ;;  %5374 = vmatprep.subr.bf16.mxu0 %v6088_v1 }
  0x44   :  { %5394 = vmatprep.subr.bf16.mxu1 %v6088_v1  ;;  %5388 = vmatprep.mubr.msk.bf16.mxu0 %vm6089_vm0, %v6088_v1 }
  0x45   :  { %5408 = vmatprep.mubr.msk.bf16.mxu1 %vm6089_vm0, %v6088_v1 }
  0x46   :  { %5375 = vmatpush3.bf16.msra.mxu0 %v5904_v15 }
  0x47   :  { %5395 = vmatpush3.bf16.msra.mxu1 %v5905_v17  ;;  %5376 = vmatprep.subr.bf16.mxu0 %v6088_v1 }
  0x48   :  { %5396 = vmatprep.subr.bf16.mxu1 %v6088_v1 }
  0x4a   :  { %5377 = vmatpush3.bf16.msra.mxu0 %v5906_v12 }
  0x4b   :  { %5397 = vmatpush3.bf16.msra.mxu1 %v5907_v20  ;;  %5378 = vmatprep.subr.bf16.mxu0 %v6088_v1 }
  0x4c   :  { %5398 = vmatprep.subr.bf16.mxu1 %v6088_v1 }
  0x4e   :  { %5379 = vmatpush3.bf16.msra.mxu0 %v5908_v21 }
  0x4f   :  { %5399 = vmatpush3.bf16.msra.mxu1 %v5909_v22  ;;  %5380 = vmatprep.subr.bf16.mxu0 %v6088_v1 }
  0x50   :  { %5400 = vmatprep.subr.bf16.mxu1 %v6088_v1 }
  0x52   :  { %5381 = vmatpush3.bf16.msra.mxu0 %v5910_v23 }
  0x53   :  { %5401 = vmatpush3.bf16.msra.mxu1 %v5911_v24  ;;  %5382 = vmatprep.subr.bf16.mxu0 %v6088_v1 }
  0x54   :  { %5402 = vmatprep.subr.bf16.mxu1 %v6088_v1 }
  0x56   :  { %5383 = vmatpush3.bf16.msra.mxu0 %v5912_v25 }
  0x57   :  { %5403 = vmatpush3.bf16.msra.mxu1 %v5913_v26  ;;  %5384 = vmatprep.subr.bf16.mxu0 %v6088_v1 }
  0x58   :  { %5404 = vmatprep.subr.bf16.mxu1 %v6088_v1 }
  0x5a   :  { %5385 = vmatpush3.bf16.msra.mxu0 %v5914_v27 }
  0x5b   :  { %5405 = vmatpush3.bf16.msra.mxu1 %v5915_v28  ;;  %5386 = vmatprep.subr.bf16.mxu0 %v6088_v1 }
  0x5c   :  { %5406 = vmatprep.subr.bf16.mxu1 %v6088_v1 }
  0x5e   :  { %5387 = vmatpush3.bf16.msra.mxu0 %v5916_v29 }
  0x5f   :  { %5407 = vmatpush3.bf16.msra.mxu1 %v5917_v30  ;;  %5412 = vmatprep.subr.bf16.mxu0 %v6088_v1 }
  0x60   :  { %5432 = vmatprep.subr.bf16.mxu1 %v6088_v1 }
  0x61   :  { %5389 = vmatmul.mubr.bf16.vlgmr.msra.gmra.mrb[8].mxu0 %v542_v34 }
  0x62   :  { %5413 = vmatpush3.bf16.msra.mxu0 %v5919_v33  ;;  %5409 = vmatmul.mubr.bf16.vlgmr.msra.gmra.mrb[8].mxu1 %v673_v35 }
  0x63   :  { %5414 = vmatprep.subr.bf16.mxu0 %v6088_v1  ;;  %5428 = vmatprep.mubr.msk.bf16.mxu0 %vm6089_vm0, %v6088_v1 }
  0x64   :  { %5436 = vmatprep.mubr.msk.bf16.mxu1 %vm6089_vm0, %v6088_v1 }
  0x66   :  { %5415 = vmatpush3.bf16.msra.mxu0 %v5921_v36 }
  0x67   :  { %5416 = vmatprep.subr.bf16.mxu0 %v6088_v1 }
  0x6a   :  { %5417 = vmatpush3.bf16.msra.mxu0 %v5922_v37 }
  0x6b   :  { %5418 = vmatprep.subr.bf16.mxu0 %v6088_v1 }
  0x6e   :  { %5419 = vmatpush3.bf16.msra.mxu0 %v5923_v38 }
  0x6f   :  { %5420 = vmatprep.subr.bf16.mxu0 %v6088_v1 }
  0x72   :  { %5421 = vmatpush3.bf16.msra.mxu0 %v5924_v39 }
  0x73   :  { %5422 = vmatprep.subr.bf16.mxu0 %v6088_v1 }
  0x76   :  { %5423 = vmatpush3.bf16.msra.mxu0 %v5925_v40 }
  0x77   :  { %5424 = vmatprep.subr.bf16.mxu0 %v6088_v1 }
  0x7a   :  { %5425 = vmatpush3.bf16.msra.mxu0 %v5926_v41 }
  0x7b   :  { %5426 = vmatprep.subr.bf16.mxu0 %v6088_v1 }
  0x7e   :  { %5427 = vmatpush3.bf16.msra.mxu0 %v5927_v42 }
  0x7f   :  { %5464 = vmatprep.subr.bf16.mxu0 %v6088_v1 }
  0x81   :  { %5429 = vmatmul.mubr.bf16.vlgmr.msra.gmra.mrb[12].mxu0 %v790_v43 }
  0x82   :  { %5468 = vmatprep.mubr.msk.bf16.mxu0 %vm6089_vm0, %v6088_v1 }
  0x83   :  { %12 = vsyncpa [#allocation5], 0  ;;  %vm28_vm7 = vcmask 261120   ;;  %v5929_v44 = vld [vmem:[%s7293_s3 + $0x10] sm:$0xff]   ;;  %v5931_v45 = vld [vmem:[%s7293_s3 + $0x40] sm:$0xff]   ;;  %v6090_v46 = vmov 0  }
  0x84   :  { %29 = vst.msk [vmem:[#allocation2] sm:$0xff] %vm28_vm7, %v6090_v46  ;;  %30 = vst.msk [vmem:[#allocation2 + $0x10] sm:$0xff] %vm28_vm7, %v6090_v46  ;;  %5433 = vmatpush3.bf16.msra.mxu1 %v5929_v44  ;;  %v5930_v47 = vld [vmem:[%s7293_s3 + $0x18] sm:$0xff]   ;;  %5465 = vmatpush3.bf16.msra.mxu0 %v5931_v45  ;;  %v5933_v48 = vld [vmem:[%s7293_s3 + $0x48] sm:$0xff]   ;;  %vm910_vm8 = vcmask 1041408   ;;  %vm1134_vm12 = vcmask 1040384  }
  0x85   :  { %31 = vst.msk [vmem:[#allocation3] sm:$0xff] %vm28_vm7, %v6090_v46  ;;  %32 = vst.msk [vmem:[#allocation3 + $0x10] sm:$0xff] %vm28_vm7, %v6090_v46  ;;  %5434 = vmatprep.subr.bf16.mxu1 %v6088_v1  ;;  %5466 = vmatprep.subr.bf16.mxu0 %v6088_v1  ;;  %v4646_v21 = vld [vmem:[%s7292_s2] ss:$0 sm:$0xff]  ;;  %vm1202_vm9 = vsmask.f32 256 }
  0x86   :  { %v5932_v42 = vld [vmem:[%s7293_s3] sm:$0xff]   ;;  %vm970_vm10 = vsmask.f32 2304  ;;  %vm1050_vm11 = vsmask.f32 1280 }
  0x88   :  { %5435 = vmatpush3.bf16.msra.mxu1 %v5930_v47  ;;  %5467 = vmatpush3.bf16.msra.mxu0 %v5933_v48 }
  0x89   :  { %5440 = vmatprep.subr.bf16.mxu1 %v6088_v1  ;;  %5480 = vmatprep.subr.bf16.mxu0 %v6088_v1 }
  0x8b   :  { %v896_v32 = vld [vmem:[#allocation2] sm:$0xe0] }
  0x8c   :  { %v902_v33 = vld [vmem:[#allocation2] sm:$0xc0]  ;;  %v972_v36 = vshrl.u32 %v896_v32, 16  ;;  %v975_v37 = vshll.u32 %v896_v32, 16  ;;  %v5941_v32 = vld [vmem:[%s7293_s3 + $0x88] sm:$0xff]  }
  0x8d   :  { %v6478_v34 = vld [vmem:[#allocation2] sm:$0x80]  ;;  %v911_v38 = vrot.slane %v902_v33, 6 }
  0x8e   :  { %v1204_v35 = vshrl.u32 %v6478_v34, 16  ;;  %v974_v46 = vrot.slane %v972_v36, 5  ;;  %v977_v47 = vrot.slane %v975_v37, 6 }
  0x90   :  { %v1206_v45 = vrot.slane %v1204_v35, 7 }
  0xf4   :  { %v173_v49 = vpop.f32.mrb[0].mxu0 }
  0xf5   :  { %v263_v50 = vpop.f32.mrb[0].mxu1  ;;  %v5310_v51 = vpop.f32.mrb[1].mxu0 }
  0xf6   :  { %v264_v52 = vadd.f32 %v263_v50, %v173_v49  ;;  %v5330_v53 = vpop.f32.mrb[1].mxu1  ;;  %v176_v54 = vpop.f32.mrb[2].mxu0 }
  0xf7   :  { %v266_v55 = vpop.f32.mrb[2].mxu1  ;;  %v5311_v56 = vpop.f32.mrb[3].mxu0 }
  0xf8   :  { %v267_v57 = vadd.f32 %v266_v55, %v176_v54  ;;  %v5331_v58 = vpop.f32.mrb[3].mxu1  ;;  %v5934_v55 = vld [vmem:[%s7293_s3 + $0x8] sm:$0xff]  }
  0xf9   :  { %v6500_v58 = vld [vmem:[#allocation2 + $0x10] sm:$0x1] }
 0x114   :  { %v378_v59 = vpop.f32.mrb[4].mxu0 }
 0x115   :  { %v385_v60 = vadd.f32 %v378_v59, %v264_v52  ;;  %v5350_v61 = vpop.f32.mrb[5].mxu0  ;;  %v509_v62 = vpop.f32.mrb[4].mxu1  ;;  %v1052_v59 = vshrl.u32 %v902_v33, 16 }
 0x116   :  { %v381_v63 = vpop.f32.mrb[6].mxu0  ;;  %v5370_v0 = vpop.f32.mrb[5].mxu1  ;;  %v978_v61 = vor.u32 %v977_v47, %v974_v46 }
 0x117   :  { %v386_v2 = vadd.f32 %v381_v63, %v267_v57  ;;  %v516_v3 = vadd.f32 %v509_v62, %v385_v60  ;;  %v5351_v4 = vpop.f32.mrb[7].mxu0  ;;  %v512_v5 = vpop.f32.mrb[6].mxu1  ;;  %v5935_v57 = vld [vmem:[%s7293_s3 + $0x60] sm:$0xff]   ;;  %v1055_v60 = vshll.u32 %v902_v33, 16  ;;  %v1350_v62 = vshll.u32 %v6500_v58, 16 }
 0x118   :  { %v5371_v6 = vpop.f32.mrb[7].mxu1  ;;  %v6505_v0 = vld [vmem:[#allocation2 + $0x10] sm:$0x3] }
 0x119   :  { %v517_v7 = vadd.f32 %v512_v5, %v386_v2 }
 0x134   :  { %v626_v8 = vpop.f32.mrb[8].mxu0 }
 0x135   :  { %v633_v9 = vadd.f32 %v626_v8, %v516_v3  ;;  %v5390_v10 = vpop.f32.mrb[9].mxu0  ;;  %v757_v11 = vpop.f32.mrb[8].mxu1  ;;  %v5937_v8 = vld [vmem:[%s7293_s3 + $0x68] sm:$0xff]  }
 0x136   :  { %v629_v13 = vpop.f32.mrb[10].mxu0  ;;  %v5410_v14 = vpop.f32.mrb[9].mxu1  ;;  %v1057_v10 = vrot.slane %v1055_v60, 7 }
 0x137   :  { %v634_v15 = vadd.f32 %v629_v13, %v517_v7  ;;  %v764_v16 = vadd.f32 %v757_v11, %v633_v9  ;;  %v5391_v17 = vpop.f32.mrb[11].mxu0  ;;  %v760_v18 = vpop.f32.mrb[10].mxu1  ;;  %v5936_v7 = vld [vmem:[%s7293_s3 + $0x20] sm:$0xff]   ;;  %v1054_v9 = vrot.slane %v1052_v59, 6  ;;  %v1496_v11 = vshrl.u32 %v6505_v0, 16  ;;  %v5948_v59 = vld [vmem:[%s7293_s3 + $0x78] sm:$0xff]  }
 0x138   :  { %v5411_v19 = vpop.f32.mrb[11].mxu1  ;;  %v1352_v13 = vrot.slane %v1350_v62, 1  ;;  %v5949_v62 = vld [vmem:[%s7293_s3 + $0x90] sm:$0xff]  }
 0x139   :  { %v765_v12 = vadd.f32 %v760_v18, %v634_v15 }
 0x154   :  { %v874_v20 = vpop.f32.mrb[12].mxu0 }
 0x155   :  { %v881_v22 = vadd.f32 %v874_v20, %v764_v16  ;;  %v5430_v23 = vpop.f32.mrb[13].mxu0  ;;  %v1499_v16 = vshll.u32 %v6505_v0, 16  ;;  %v5938_v20 = vld [vmem:[%s7293_s3 + $0x28] sm:$0xff]  }
 0x156   :  { %v877_v24 = vpop.f32.mrb[14].mxu0  ;;  %v1498_v23 = vrot.slane %v1496_v11, 1 }
 0x157   :  { %v890_v25 = vadd.f32 %v4646_v21, %v881_v22  ;;  %v882_v26 = vadd.f32 %v877_v24, %v765_v12  ;;  %v5431_v27 = vpop.f32.mrb[15].mxu0  ;;  %v1058_v22 = vor.u32 %v1057_v10, %v1054_v9  ;;  %v1501_v24 = vrot.slane %v1499_v16, 2 }
 0x159   :  { %v891_v28 = vadd.f32 %v4646_v21, %v882_v26  ;;  %v892_v29 = vmax.f32 %v890_v25, 0.0  ;;  %v5939_v21 = vld [vmem:[%s7293_s3 + $0x80] sm:$0xff]   ;;  %v1502_v33 = vor.u32 %v1501_v24, %v1498_v23 }
 0x15b   :  { %v893_v30 = vmax.f32 %v891_v28, 0.0 }
 0x15d   :  { %v894_v31 = vpack.c.bf16 %v893_v30, %v892_v29  ;;  %v1631_v29 = vld [vmem:[#allocation2 + $0x10] sm:$0x7] }
 0x15e   :  { %v1646_v35 = vshrl.u32 %v1631_v29, 16  ;;  %v1649_v36 = vshll.u32 %v1631_v29, 16 }
 0x15f   :  { %895 = vst.msk [vmem:[#allocation2 + $0x8] sm:$0xff] %vm28_vm7, %v894_v31  ;;  %v5940_v31 = vld [vmem:[%s7293_s3 + $0x30] sm:$0xff]  }
 0x160   :  { %v1651_v46 = vrot.slane %v1649_v36, 3 }
 0x166   :  { %v897_v39 = vld [vmem:[#allocation2 + $0x8] sm:$0x3f] }
 0x167   :  { %v6481_v40 = vld [vmem:[#allocation2 + $0x8] sm:$0xff]  ;;  %v912_v41 = vrot.slane %v897_v39, 6  ;;  %v980_v44 = vshrl.u32 %v897_v39, 16  ;;  %v983_v48 = vshll.u32 %v897_v39, 16 }
 0x168   :  { %v1208_v43 = vshrl.u32 %v6481_v40, 16  ;;  %v1211_v51 = vshll.u32 %v6481_v40, 16  ;;  %v6489_v53 = vld [vmem:[#allocation2 + $0x8] sm:$0x7f] }
 0x169   :  { %v913_v49 = vsel %vm910_vm8, %v911_v38, %v912_v41  ;;  %v982_v52 = vrot.slane %v980_v44, 5  ;;  %v985_v54 = vrot.slane %v983_v48, 6  ;;  %v1060_v63 = vshrl.u32 %v6489_v53, 16  ;;  %v6509_v6 = vld [vmem:[#allocation2 + $0x8] sm:$0xfe] }
 0x16a   :  { %v1210_v50 = vrot.slane %v1208_v43, 7  ;;  %5437 = vmatmul.mubr.msk.bf16.vlgmr.msra.gmra.mrb[12].mxu1 %vm28_vm7, %v913_v49  ;;  %v1347_v4 = vrot.slane %v1211_v51, 1  ;;  %v1063_v5 = vshll.u32 %v6489_v53, 16  ;;  %v1488_v15 = vshrl.u32 %v6509_v6, 16  ;;  %v6540_v30 = vld [vmem:[#allocation2 + $0x8] sm:$0xfc] }
 0x16b   :  { %5441 = vmatpush3.bf16.msra.mxu1 %v5932_v42  ;;  %5444 = vmatprep.mubr.msk.bf16.mxu1 %vm6089_vm0, %v6088_v1  ;;  %v986_v3 = vor.u32 %v985_v54, %v982_v52  ;;  %v1062_v14 = vrot.slane %v1060_v63, 6  ;;  %v1491_v12 = vshll.u32 %v6509_v6, 16  ;;  %v1638_v39 = vshrl.u32 %v6540_v30, 16  ;;  %v5942_v42 = vld [vmem:[%s7293_s3 + $0x38] sm:$0xff]  }
 0x16c   :  { %v1213_v56 = vor.u32 %v1211_v51, %v1210_v50  ;;  %5442 = vmatprep.subr.bf16.mxu1 %v6088_v1  ;;  %v1348_v18 = vor.u32 %v1347_v4, %v1208_v43  ;;  %v1065_v19 = vrot.slane %v1063_v5, 7  ;;  %v1490_v27 = vrot.slane %v1488_v15, 1  ;;  %v5943_v43 = vld [vmem:[%s7293_s3 + $0xa0] sm:$0xff]   ;;  %v5945_v51 = vld [vmem:[%s7293_s3 + $0xa8] sm:$0xff]   ;;  %v5950_v63 = vld [vmem:[%s7293_s3 + $0x98] sm:$0xff]  }
 0x16d   :  { %v987_v17 = vsel %vm970_vm10, %v978_v61, %v986_v3  ;;  %v1493_v28 = vrot.slane %v1491_v12, 2  ;;  %v1641_v41 = vshll.u32 %v6540_v30, 16  ;;  %v1135_v44 = vrot.slane %v6478_v34, 7  ;;  %v5944_v34 = vld [vmem:[%s7293_s3 + $0x50] sm:$0xff]   ;;  %v5953_v5 = vld [vmem:[%s7295_s5] sm:$0xff]  }
 0x16e   :  { %v1214_v2 = vsel %vm1202_vm9, %v1206_v45, %v1213_v56  ;;  %v1353_v25 = vsel %vm77_vm1, %v1348_v18, %v1352_v13  ;;  %v1066_v26 = vor.u32 %v1065_v19, %v1062_v14  ;;  %v1648_v45 = vrot.slane %v1646_v35, 2  ;;  %v5951_v4 = vld [vmem:[%s7295_s5 + $0x10] sm:$0xff]  }
 0x16f   :  { %5469 = vmatmul.mubr.msk.bf16.vlgmr.msra.gmra.mrb[16].mxu0 %vm28_vm7, %v1214_v2  ;;  %5443 = vmatpush3.bf16.msra.mxu1 %v5934_v55  ;;  %v1494_v38 = vor.u32 %v1493_v28, %v1490_v27  ;;  %v1136_v48 = vrot.slane %v6489_v53, 7  ;;  %v1640_v49 = vrot.slane %v1638_v39, 2  ;;  %v1643_v50 = vrot.slane %v1641_v41, 3  ;;  %v5946_v55 = vld [vmem:[%s7293_s3 + $0x58] sm:$0xff]  }
 0x170   :  { %5481 = vmatpush3.bf16.msra.mxu0 %v5935_v57  ;;  %5448 = vmatprep.subr.bf16.mxu1 %v6088_v1  ;;  %v1067_v37 = vsel %vm1050_vm11, %v1058_v22, %v1066_v26  ;;  %v1652_v54 = vor.u32 %v1651_v46, %v1648_v45  ;;  %v5947_v57 = vld [vmem:[%s7293_s3 + $0x70] sm:$0xff]   ;;  %v1420_v60 = vrot.slane %v6509_v6, 1  ;;  %v1421_v61 = vrot.slane %v6500_v58, 1  ;;  %v5954_v6 = vld [vmem:[%s7295_s5 + $0x8] sm:$0xff]  }
 0x171   :  { %5482 = vmatprep.subr.bf16.mxu0 %v6088_v1  ;;  %5484 = vmatprep.mubr.msk.bf16.mxu0 %vm6089_vm0, %v6088_v1  ;;  %v1503_v47 = vsel %vm408_vm3, %v1494_v38, %v1502_v33  ;;  %v1137_v52 = vsel %vm1134_vm12, %v1135_v44, %v1136_v48  ;;  %v1644_v53 = vor.u32 %v1643_v50, %v1640_v49  ;;  %v1570_v58 = vrot.slane %v6540_v30, 2 }
 0x172   :  { %5445 = vmatmul.mubr.msk.bf16.vlgmr.msra.gmra.mrb[16].mxu1 %vm28_vm7, %v987_v17  ;;  %v1571_v2 = vrot.slane %v6505_v0, 2  ;;  %v5952_v0 = vld [vmem:[%s7295_s5 + $0x18] sm:$0xff]  }
 0x173   :  { %5449 = vmatpush3.bf16.msra.mxu1 %v5936_v7  ;;  %5452 = vmatprep.mubr.msk.bf16.mxu1 %vm6089_vm0, %v6088_v1  ;;  %v1653_v56 = vsel %vm656_vm5, %v1644_v53, %v1652_v54 }
 0x174   :  { %5483 = vmatpush3.bf16.msra.mxu0 %v5937_v8  ;;  %5450 = vmatprep.subr.bf16.mxu1 %v6088_v1  ;;  %v1572_v3 = vsel %vm539_vm4, %v1570_v58, %v1571_v2 }
 0x175   :  { %5496 = vmatprep.subr.bf16.mxu0 %v6088_v1 }
 0x177   :  { %5485 = vmatmul.mubr.msk.bf16.vlgmr.msra.gmra.mrb[20].mxu0 %vm28_vm7, %v1353_v25  ;;  %5451 = vmatpush3.bf16.msra.mxu1 %v5938_v20 }
 0x178   :  { %5497 = vmatpush3.bf16.msra.mxu0 %v5939_v21  ;;  %5456 = vmatprep.subr.bf16.mxu1 %v6088_v1 }
 0x179   :  { %5498 = vmatprep.subr.bf16.mxu0 %v6088_v1  ;;  %5500 = vmatprep.mubr.msk.bf16.mxu0 %vm6089_vm0, %v6088_v1 }
 0x17a   :  { %5453 = vmatmul.mubr.msk.bf16.vlgmr.msra.gmra.mrb[20].mxu1 %vm28_vm7, %v1067_v37 }
 0x17b   :  { %5457 = vmatpush3.bf16.msra.mxu1 %v5940_v31  ;;  %5460 = vmatprep.mubr.msk.bf16.mxu1 %vm6089_vm0, %v6088_v1 }
 0x17c   :  { %5499 = vmatpush3.bf16.msra.mxu0 %v5941_v32  ;;  %5458 = vmatprep.subr.bf16.mxu1 %v6088_v1 }
 0x17d   :  { %5512 = vmatprep.subr.bf16.mxu0 %v6088_v1 }
 0x17f   :  { %5501 = vmatmul.mubr.msk.bf16.vlgmr.msra.gmra.mrb[24].mxu0 %vm28_vm7, %v1503_v47  ;;  %5459 = vmatpush3.bf16.msra.mxu1 %v5942_v42 }
 0x180   :  { %5513 = vmatpush3.bf16.msra.mxu0 %v5943_v43  ;;  %5472 = vmatprep.subr.bf16.mxu1 %v6088_v1 }
 0x181   :  { %5514 = vmatprep.subr.bf16.mxu0 %v6088_v1  ;;  %5516 = vmatprep.mubr.msk.bf16.mxu0 %vm6089_vm0, %v6088_v1 }
 0x182   :  { %5461 = vmatmul.mubr.msk.bf16.vlgmr.msra.gmra.mrb[24].mxu1 %vm28_vm7, %v1137_v52 }
 0x183   :  { %5473 = vmatpush3.bf16.msra.mxu1 %v5944_v34  ;;  %5476 = vmatprep.mubr.msk.bf16.mxu1 %vm6089_vm0, %v6088_v1 }
 0x184   :  { %5515 = vmatpush3.bf16.msra.mxu0 %v5945_v51  ;;  %5474 = vmatprep.subr.bf16.mxu1 %v6088_v1 }
 0x185   :  { %5528 = vmatprep.subr.bf16.mxu0 %v6088_v1 }
 0x187   :  { %5517 = vmatmul.mubr.msk.bf16.vlgmr.msra.gmra.mrb[28].mxu0 %vm28_vm7, %v1653_v56  ;;  %5475 = vmatpush3.bf16.msra.mxu1 %v5946_v55 }
 0x188   :  { %5532 = vmatprep.mubr.msk.bf16.mxu0 %vm6089_vm0, %v6088_v1  ;;  %5488 = vmatprep.subr.bf16.mxu1 %v6088_v1 }
 0x189   :  { %5529 = vmatpush3.bf16.msra.mxu0 %v5953_v5 }
 0x18a   :  { %5477 = vmatmul.mubr.msk.bf16.vlgmr.msra.gmra.mrb[28].mxu1 %vm28_vm7, %v6481_v40  ;;  %v1422_v40 = vsel %vm291_vm2, %v1420_v60, %v1421_v61  ;;  %5530 = vmatprep.subr.bf16.mxu0 %v6088_v1 }
 0x18b   :  { %5489 = vmatpush3.bf16.msra.mxu1 %v5947_v57  ;;  %5492 = vmatprep.mubr.msk.bf16.mxu1 %vm6089_vm0, %v6088_v1 }
 0x18c   :  { %5490 = vmatprep.subr.bf16.mxu1 %v6088_v1 }
 0x18d   :  { %5531 = vmatpush3.bf16.msra.mxu0 %v5954_v6 }
 0x18e   :  { %5544 = vmatprep.subr.bf16.mxu0 %v6088_v1 }
 0x18f   :  { %5491 = vmatpush3.bf16.msra.mxu1 %v5948_v59 }
 0x190   :  { %5504 = vmatprep.subr.bf16.mxu1 %v6088_v1 }
 0x192   :  { %5493 = vmatmul.mubr.msk.bf16.vlgmr.msra.gmra.mrb[32].mxu1 %vm28_vm7, %v1422_v40 }
 0x193   :  { %5505 = vmatpush3.bf16.msra.mxu1 %v5949_v62  ;;  %5508 = vmatprep.mubr.msk.bf16.mxu1 %vm6089_vm0, %v6088_v1 }
 0x194   :  { %5506 = vmatprep.subr.bf16.mxu1 %v6088_v1 }
 0x197   :  { %5507 = vmatpush3.bf16.msra.mxu1 %v5950_v63 }
 0x198   :  { %5520 = vmatprep.subr.bf16.mxu1 %v6088_v1 }
 0x19a   :  { %5509 = vmatmul.mubr.msk.bf16.vlgmr.msra.gmra.mrb[36].mxu1 %vm28_vm7, %v1572_v3 }
 0x19b   :  { %5524 = vmatprep.mubr.msk.bf16.mxu1 %vm6089_vm0, %v6088_v1  ;;  %5521 = vmatpush3.bf16.msra.mxu1 %v5951_v4  ;;  %v4720_v4 = vld [vmem:[%s7294_s4] ss:$0 sm:$0xff] }
 0x19c   :  { %5522 = vmatprep.subr.bf16.mxu1 %v6088_v1 }
 0x19f   :  { %5523 = vmatpush3.bf16.msra.mxu1 %v5952_v0 }
 0x1a0   :  { %5536 = vmatprep.subr.bf16.mxu1 %v6088_v1 }
 0x23d   :  { %v963_v7 = vpop.f32.mrb[12].mxu1 }
 0x23e   :  { %v5438_v8 = vpop.f32.mrb[13].mxu1 }
 0x23f   :  { %v966_v9 = vpop.f32.mrb[14].mxu1 }
 0x240   :  { %v5439_v10 = vpop.f32.mrb[15].mxu1 }
 0x242   :  { %v1264_v11 = vpop.f32.mrb[16].mxu0 }
 0x243   :  { %v5470_v13 = vpop.f32.mrb[17].mxu0 }
 0x244   :  { %v1267_v14 = vpop.f32.mrb[18].mxu0 }
 0x245   :  { %v5471_v15 = vpop.f32.mrb[19].mxu0  ;;  %v1037_v16 = vpop.f32.mrb[16].mxu1 }
 0x246   :  { %v1038_v17 = vadd.f32 %v1037_v16, %v963_v7  ;;  %v5446_v18 = vpop.f32.mrb[17].mxu1  ;;  %v1725_v15 = vld [vmem:[#allocation3] sm:$0xc0] }
 0x247   :  { %v1040_v19 = vpop.f32.mrb[18].mxu1  ;;  %v1799_v16 = vshrl.u32 %v1725_v15, 16  ;;  %v1731_v18 = vld [vmem:[#allocation3] sm:$0x80] }
 0x248   :  { %v1041_v12 = vadd.f32 %v1040_v19, %v966_v9  ;;  %v5447_v20 = vpop.f32.mrb[19].mxu1 }
 0x249   :  { %v1801_v19 = vrot.slane %v1799_v16, 6  ;;  %v1739_v20 = vrot.slane %v1731_v18, 7  ;;  %v4767_v16 = vld [vmem:[%s7290_s0 + $0xc] sm:$0xf] }
 0x24a   :  { %v1403_v21 = vpop.f32.mrb[20].mxu0 }
 0x24b   :  { %v5486_v22 = vpop.f32.mrb[21].mxu0 }
 0x24c   :  { %v1406_v23 = vpop.f32.mrb[22].mxu0 }
 0x24d   :  { %v5487_v24 = vpop.f32.mrb[23].mxu0  ;;  %v1117_v25 = vpop.f32.mrb[20].mxu1 }
 0x24e   :  { %v1124_v26 = vadd.f32 %v1117_v25, %v1038_v17  ;;  %v5454_v27 = vpop.f32.mrb[21].mxu1  ;;  %v1802_v17 = vshll.u32 %v1725_v15, 16  ;;  %v5955_v24 = vld [vmem:[%s7295_s5 + $0x20] sm:$0xff]   ;;  %v5971_v15 = vld [vmem:[%s7291_s1 + $0x10] sm:$0xff]  }
 0x24f   :  { %v1120_v28 = vpop.f32.mrb[22].mxu1 }
 0x250   :  { %v1125_v29 = vadd.f32 %v1120_v28, %v1041_v12  ;;  %v5455_v30 = vpop.f32.mrb[23].mxu1  ;;  %v1804_v12 = vrot.slane %v1802_v17, 7  ;;  %v6745_v17 = vld [vmem:[%s7290_s0 + $0x10] sm:$0xf] }
 0x252   :  { %v1553_v31 = vpop.f32.mrb[24].mxu0  ;;  %v1805_v28 = vor.u32 %v1804_v12, %v1801_v19  ;;  %v5973_v19 = vld [vmem:[%s7291_s1 + $0x18] sm:$0xff]   ;;  %v4786_v12 = vcombine.low %v4767_v16, %v6745_v17  ;;  %v6010_v16 = vld [vmem:[%s7291_s1 + $0x128] sm:$0xff]  }
 0x253   :  { %v5502_v32 = vpop.f32.mrb[25].mxu0 }
 0x254   :  { %v1556_v33 = vpop.f32.mrb[26].mxu0 }
 0x255   :  { %v5503_v35 = vpop.f32.mrb[27].mxu0  ;;  %v1187_v36 = vpop.f32.mrb[24].mxu1 }
 0x256   :  { %v1194_v37 = vadd.f32 %v1187_v36, %v1124_v26  ;;  %v5462_v38 = vpop.f32.mrb[25].mxu1  ;;  %v5956_v36 = vld [vmem:[%s7295_s5 + $0x28] sm:$0xff]  }
 0x257   :  { %v1190_v39 = vpop.f32.mrb[26].mxu1 }
 0x258   :  { %v1195_v41 = vadd.f32 %v1190_v39, %v1125_v29  ;;  %v5463_v42 = vpop.f32.mrb[27].mxu1  ;;  %v1271_v43 = vadd.f32 %v1264_v11, %v1194_v37  ;;  %v1878_v29 = vshrl.u32 %v1731_v18, 16  ;;  %v5957_v37 = vld [vmem:[%s7295_s5 + $0x30] sm:$0xff]   ;;  %v5972_v18 = vld [vmem:[%s7291_s1 + $0x60] sm:$0xff]  }
 0x25a   :  { %v1703_v44 = vpop.f32.mrb[28].mxu0  ;;  %v1272_v46 = vadd.f32 %v1267_v14, %v1195_v41  ;;  %v1880_v41 = vrot.slane %v1878_v29, 7  ;;  %v5978_v29 = vld [vmem:[%s7291_s1 + $0x78] sm:$0xff]  }
 0x25b   :  { %v5518_v45 = vpop.f32.mrb[29].mxu0 }
 0x25c   :  { %v1706_v47 = vpop.f32.mrb[30].mxu0  ;;  %v2010_v45 = vld [vmem:[#allocation3 + $0x10] sm:$0x1] }
 0x25d   :  { %v5519_v48 = vpop.f32.mrb[31].mxu0  ;;  %v1326_v49 = vpop.f32.mrb[28].mxu1 }
 0x25e   :  { %v1333_v50 = vadd.f32 %v1326_v49, %v1271_v43  ;;  %v5478_v34 = vpop.f32.mrb[29].mxu1  ;;  %v5958_v43 = vld [vmem:[%s7295_s5 + $0x38] sm:$0xff]   ;;  %v2024_v48 = vshll.u32 %v2010_v45, 16  ;;  %v2155_v49 = vld [vmem:[#allocation3 + $0x10] sm:$0x3] }
 0x25f   :  { %v1329_v51 = vpop.f32.mrb[30].mxu1  ;;  %v5960_v34 = vld [vmem:[%s7295_s5 + $0x48] sm:$0xff]  }
 0x260   :  { %v1334_v52 = vadd.f32 %v1329_v51, %v1272_v46  ;;  %v5479_v53 = vpop.f32.mrb[31].mxu1  ;;  %v1410_v54 = vadd.f32 %v1403_v21, %v1333_v50  ;;  %v5961_v51 = vld [vmem:[%s7295_s5 + $0x50] sm:$0xff]  }
 0x261   :  { %v2173_v53 = vshll.u32 %v2155_v49, 16 }
 0x262   :  { %v1411_v55 = vadd.f32 %v1406_v23, %v1334_v52  ;;  %v2170_v52 = vshrl.u32 %v2155_v49, 16 }
 0x265   :  { %v1472_v56 = vpop.f32.mrb[32].mxu1 }
 0x266   :  { %v1479_v57 = vadd.f32 %v1472_v56, %v1410_v54  ;;  %v5494_v59 = vpop.f32.mrb[33].mxu1 }
 0x267   :  { %v1475_v60 = vpop.f32.mrb[34].mxu1  ;;  %v5962_v59 = vld [vmem:[%s7295_s5 + $0x58] sm:$0xff]  }
 0x268   :  { %v1480_v61 = vadd.f32 %v1475_v60, %v1411_v55  ;;  %v5495_v62 = vpop.f32.mrb[35].mxu1  ;;  %v1560_v40 = vadd.f32 %v1553_v31, %v1479_v57  ;;  %v2026_v55 = vrot.slane %v2024_v48, 1  ;;  %v5963_v60 = vld [vmem:[%s7295_s5 + $0x60] sm:$0xff]  }
 0x269   :  { %v2172_v62 = vrot.slane %v2170_v52, 1  ;;  %v5993_v48 = vld [vmem:[%s7291_s1 + $0xe0] sm:$0xff]  }
 0x26a   :  { %v1561_v63 = vadd.f32 %v1556_v33, %v1480_v61  ;;  %v2095_v61 = vrot.slane %v2010_v45, 1  ;;  %v5991_v45 = vld [vmem:[%s7291_s1 + $0xd8] sm:$0xff]  }
 0x26d   :  { %v1622_v58 = vpop.f32.mrb[36].mxu1 }
 0x26e   :  { %v1629_v2 = vadd.f32 %v1622_v58, %v1560_v40  ;;  %v5510_v3 = vpop.f32.mrb[37].mxu1  ;;  %v2175_v40 = vrot.slane %v2173_v53, 2 }
 0x26f   :  { %v1625_v5 = vpop.f32.mrb[38].mxu1 }
 0x270   :  { %v1710_v0 = vadd.f32 %v1703_v44, %v1629_v2  ;;  %v1630_v6 = vadd.f32 %v1625_v5, %v1561_v63  ;;  %v5511_v7 = vpop.f32.mrb[39].mxu1  ;;  %v5959_v44 = vld [vmem:[%s7295_s5 + $0x40] sm:$0xff]  }
 0x271   :  { %v5965_v5 = vld [vmem:[%s7291_s1 + $0x40] sm:$0xff]   ;;  %v2176_v7 = vor.u32 %v2175_v40, %v2172_v62 }
 0x272   :  { %v1719_v8 = vadd.f32 %v4720_v4, %v1710_v0  ;;  %v1711_v9 = vadd.f32 %v1706_v47, %v1630_v6 }
 0x274   :  { %v1720_v10 = vadd.f32 %v4720_v4, %v1711_v9  ;;  %v1721_v11 = vmax.f32 %v1719_v8, 0.0  ;;  %v5964_v4 = vld [vmem:[%s7295_s5 + $0x68] sm:$0xff]   ;;  %v5967_v9 = vld [vmem:[%s7291_s1] sm:$0xff]  }
 0x275   :  { %v5966_v8 = vld [vmem:[%s7291_s1 + $0x48] sm:$0xff]  }
 0x276   :  { %v1722_v13 = vmax.f32 %v1720_v10, 0.0 }
 0x278   :  { %v1723_v14 = vpack.c.bf16 %v1722_v13, %v1721_v11  ;;  %v5968_v11 = vld [vmem:[%s7291_s1 + $0x50] sm:$0xff]   ;;  %v5969_v13 = vld [vmem:[%s7291_s1 + $0x8] sm:$0xff]  }
 0x27a   :  { %1724 = vst.msk [vmem:[#allocation3 + $0x8] sm:$0xff] %vm28_vm7, %v1723_v14  ;;  %v5970_v14 = vld [vmem:[%s7291_s1 + $0x58] sm:$0xff]  }
 0x281   :  { %v1726_v21 = vld [vmem:[#allocation3 + $0x8] sm:$0x7f] }
 0x282   :  { %v1871_v22 = vld [vmem:[#allocation3 + $0x8] sm:$0xff]  ;;  %v1740_v23 = vrot.slane %v1726_v21, 7  ;;  %v1807_v25 = vshrl.u32 %v1726_v21, 16  ;;  %v1810_v26 = vshll.u32 %v1726_v21, 16  ;;  %v5975_v21 = vld [vmem:[%s7291_s1 + $0x20] sm:$0xff]  }
 0x283   :  { %v1882_v27 = vshrl.u32 %v1871_v22, 16  ;;  %v1885_v38 = vshll.u32 %v1871_v22, 16  ;;  %v2086_v50 = vld [vmem:[#allocation3 + $0x8] sm:$0xfe] }
 0x284   :  { %v1741_v30 = vsel %vm1134_vm12, %v1739_v20, %v1740_v23  ;;  %v1809_v31 = vrot.slane %v1807_v25, 6  ;;  %v1812_v32 = vrot.slane %v1810_v26, 7  ;;  %v2162_v56 = vshrl.u32 %v2086_v50, 16  ;;  %v5974_v20 = vld [vmem:[%s7291_s1 + $0x68] sm:$0xff]  }
 0x285   :  { %v1884_v33 = vrot.slane %v1882_v27, 7  ;;  %5525 = vmatmul.mubr.msk.bf16.vlgmr.msra.gmra.mrb[40].mxu1 %vm28_vm7, %v1741_v30  ;;  %v2021_v47 = vrot.slane %v1885_v38, 1  ;;  %v2165_v57 = vshll.u32 %v2086_v50, 16  ;;  %v2094_v58 = vrot.slane %v2086_v50, 1  ;;  %v5977_v25 = vld [vmem:[%s7291_s1 + $0x28] sm:$0xff]   ;;  %v5979_v30 = vld [vmem:[%s7291_s1 + $0x30] sm:$0xff]  }
 0x286   :  { %5537 = vmatpush3.bf16.msra.mxu1 %v5955_v24  ;;  %v1813_v35 = vor.u32 %v1812_v32, %v1809_v31  ;;  %5540 = vmatprep.mubr.msk.bf16.mxu1 %vm6089_vm0, %v6088_v1  ;;  %v2164_v2 = vrot.slane %v2162_v56, 1  ;;  %v2315_v23 = vshll.u32 %v4786_v12, 16  ;;  %v5976_v24 = vld [vmem:[%s7291_s1 + $0x70] sm:$0xff]   ;;  %v2313_v26 = vshrl.u32 %v4786_v12, 16 }
 0x287   :  { %5538 = vmatprep.subr.bf16.mxu1 %v6088_v1  ;;  %v1887_v42 = vor.u32 %v1885_v38, %v1884_v33  ;;  %v2022_v54 = vor.u32 %v2021_v47, %v1882_v27  ;;  %v2167_v3 = vrot.slane %v2165_v57, 2  ;;  %v2096_v0 = vsel %vm291_vm2, %v2094_v58, %v2095_v61  ;;  %v5985_v38 = vld [vmem:[%s7291_s1 + $0xc0] sm:$0xff]   ;;  %v5992_v47 = vld [vmem:[%s7291_s1 + $0xa8] sm:$0xff]   ;;  %v6844_v50 = vld [vmem:[%s7290_s0 + $0x14] ss:$0 sps:$4 sm:$0x33]  }
 0x288   :  { %v1814_v39 = vsel %vm1050_vm11, %v1805_v28, %v1813_v35  ;;  %v2317_v27 = vrot.slane %v2315_v23, 1  ;;  %v5982_v35 = vld [vmem:[%s7291_s1 + $0x38] sm:$0xff]  }
 0x289   :  { %5533 = vmatmul.mubr.msk.bf16.vlgmr.msra.gmra.mrb[32].mxu0 %vm28_vm7, %v1814_v39  ;;  %v1888_v46 = vsel %vm1202_vm9, %v1880_v41, %v1887_v42  ;;  %v2027_v63 = vsel %vm77_vm1, %v2022_v54, %v2026_v55  ;;  %v2168_v6 = vor.u32 %v2167_v3, %v2164_v2  ;;  %v5986_v39 = vld [vmem:[%s7291_s1 + $0x90] sm:$0xff]   ;;  %v5987_v41 = vld [vmem:[%s7291_s1 + $0xc8] sm:$0xff]   ;;  %v5988_v42 = vld [vmem:[%s7291_s1 + $0x98] sm:$0xff]   ;;  %v2648_v54 = vshrl.u32 %v6844_v50, 16 }
 0x28a   :  { %5539 = vmatpush3.bf16.msra.mxu1 %v5956_v36  ;;  %5545 = vmatpush3.bf16.msra.mxu0 %v5957_v37  ;;  %v2318_v31 = vor.u32 %v2317_v27, %v2313_v26  ;;  %v5983_v36 = vld [vmem:[%s7291_s1 + $0x80] sm:$0xff]   ;;  %v5984_v37 = vld [vmem:[%s7291_s1 + $0x88] sm:$0xff]   ;;  %v2651_v55 = vshll.u32 %v6844_v50, 16  ;;  %v5999_v2 = vld [vmem:[%s7291_s1 + $0xf8] sm:$0xff]   ;;  %v2769_v27 = vrot.slane %v6844_v50, 2 }
 0x28b   :  { %5546 = vmatprep.subr.bf16.mxu0 %v6088_v1  ;;  %5552 = vmatprep.subr.bf16.mxu1 %v6088_v1  ;;  %v2177_v10 = vsel %vm408_vm3, %v2168_v6, %v2176_v7  ;;  %v2650_v40 = vrot.slane %v2648_v54, 1  ;;  %v6000_v3 = vld [vmem:[%s7291_s1 + $0x100] sm:$0xff]   ;;  %v6002_v6 = vld [vmem:[%s7291_s1 + $0x108] sm:$0xff]   ;;  %v6026_v50 = vld [vmem:[%s7291_s1 + $0x1b8] sm:$0xff]  }
 0x28c   :  { %5548 = vmatprep.mubr.msk.bf16.mxu0 %vm6089_vm0, %v6088_v1  ;;  %v6003_v7 = vld [vmem:[%s7291_s1 + $0x140] sm:$0xff]  }
 0x28d   :  { %5541 = vmatmul.mubr.msk.bf16.vlgmr.msra.gmra.mrb[44].mxu1 %vm28_vm7, %v1888_v46  ;;  %v4804_v46 = vld [vmem:[%s7290_s0 + $0xc] sm:$0xe] }
 0x28e   :  { %5547 = vmatpush3.bf16.msra.mxu0 %v5958_v43  ;;  %5553 = vmatpush3.bf16.msra.mxu1 %v5959_v44  ;;  %v5989_v43 = vld [vmem:[%s7291_s1 + $0xd0] sm:$0xff]   ;;  %v5990_v44 = vld [vmem:[%s7291_s1 + $0xa0] sm:$0xff]   ;;  %v4821_v49 = vcombine.low %v4804_v46, %v6745_v17  ;;  %v6024_v46 = vld [vmem:[%s7291_s1 + $0x1a8] sm:$0xff]  }
 0x28f   :  { %5554 = vmatprep.subr.bf16.mxu1 %v6088_v1  ;;  %5560 = vmatprep.subr.bf16.mxu0 %v6088_v1 }
 0x290   :  { %5556 = vmatprep.mubr.msk.bf16.mxu1 %vm6089_vm0, %v6088_v1  ;;  %v2640_v52 = vshrl.u32 %v4821_v49, 16  ;;  %v2643_v53 = vshll.u32 %v4821_v49, 16  ;;  %v2524_v56 = vrot.slane %v4821_v49, 1 }
 0x291   :  { %5549 = vmatmul.mubr.msk.bf16.vlgmr.msra.gmra.mrb[36].mxu0 %vm28_vm7, %v1871_v22  ;;  %v6765_v22 = vld [vmem:[%s7290_s0 + $0x14] ss:$0 sps:$4 sm:$0x11]  }
 0x292   :  { %5555 = vmatpush3.bf16.msra.mxu1 %v5960_v34  ;;  %5561 = vmatpush3.bf16.msra.mxu0 %v5961_v51  ;;  %v2320_v28 = vshll.u32 %v6765_v22, 16  ;;  %v5994_v34 = vld [vmem:[%s7291_s1 + $0xb0] sm:$0xff]   ;;  %v5995_v51 = vld [vmem:[%s7291_s1 + $0xe8] sm:$0xff]   ;;  %v2525_v57 = vrot.slane %v6765_v22, 1  ;;  %v2642_v61 = vrot.slane %v2640_v52, 1  ;;  %v2645_v62 = vrot.slane %v2643_v53, 2 }
 0x293   :  { %5562 = vmatprep.subr.bf16.mxu0 %v6088_v1  ;;  %5568 = vmatprep.subr.bf16.mxu1 %v6088_v1 }
 0x294   :  { %5564 = vmatprep.mubr.msk.bf16.mxu0 %vm6089_vm0, %v6088_v1  ;;  %v2322_v32 = vrot.slane %v2320_v28, 1  ;;  %v2526_v58 = vsel %vm291_vm2, %v2524_v56, %v2525_v57  ;;  %v6014_v28 = vld [vmem:[%s7291_s1 + $0x138] sm:$0xff]  }
 0x295   :  { %5557 = vmatmul.mubr.msk.bf16.vlgmr.msra.gmra.mrb[48].mxu1 %vm28_vm7, %v2027_v63  ;;  %v2653_v63 = vrot.slane %v2651_v55, 2 }
 0x296   :  { %5563 = vmatpush3.bf16.msra.mxu0 %v5962_v59  ;;  %5569 = vmatpush3.bf16.msra.mxu1 %v5963_v60  ;;  %v2323_v33 = vsel %vm77_vm1, %v2318_v31, %v2322_v32  ;;  %v5996_v59 = vld [vmem:[%s7291_s1 + $0xb8] sm:$0xff]   ;;  %v5997_v60 = vld [vmem:[%s7291_s1 + $0xf0] sm:$0xff]  }
 0x297   :  { %5570 = vmatprep.subr.bf16.mxu1 %v6088_v1  ;;  %5576 = vmatprep.subr.bf16.mxu0 %v6088_v1 }
 0x298   :  { %5572 = vmatprep.mubr.msk.bf16.mxu1 %vm6089_vm0, %v6088_v1 }
 0x299   :  { %5565 = vmatmul.mubr.msk.bf16.vlgmr.msra.gmra.mrb[40].mxu0 %vm28_vm7, %v2096_v0 }
 0x29a   :  { %5571 = vmatpush3.bf16.msra.mxu1 %v5964_v4  ;;  %5577 = vmatpush3.bf16.msra.mxu0 %v5965_v5  ;;  %v2646_v4 = vor.u32 %v2645_v62, %v2642_v61  ;;  %v2654_v5 = vor.u32 %v2653_v63, %v2650_v40 }
 0x29b   :  { %5578 = vmatprep.subr.bf16.mxu0 %v6088_v1  ;;  %5596 = vmatprep.subr.bf16.mxu1 %v6088_v1 }
 0x29c   :  { %5592 = vmatprep.mubr.msk.bf16.mxu0 %vm6089_vm0, %v6088_v1  ;;  %v2655_v0 = vsel %vm408_vm3, %v2646_v4, %v2654_v5 }
 0x29d   :  { %5573 = vmatmul.mubr.msk.bf16.vlgmr.msra.gmra.mrb[52].mxu1 %vm28_vm7, %v2177_v10  ;;  %v6006_v10 = vld [vmem:[%s7291_s1 + $0x118] sm:$0xff]  }
 0x29e   :  { %5579 = vmatpush3.bf16.msra.mxu0 %v5966_v8  ;;  %5597 = vmatpush3.bf16.msra.mxu1 %v5967_v9  ;;  %v6004_v8 = vld [vmem:[%s7291_s1 + $0x110] sm:$0xff]   ;;  %v6005_v9 = vld [vmem:[%s7291_s1 + $0x148] sm:$0xff]  }
 0x29f   :  { %5580 = vmatprep.subr.bf16.mxu0 %v6088_v1  ;;  %5598 = vmatprep.subr.bf16.mxu1 %v6088_v1 }
 0x2a0   :  { %5612 = vmatprep.mubr.msk.bf16.mxu1 %vm6089_vm0, %v6088_v1 }
 0x2a2   :  { %5581 = vmatpush3.bf16.msra.mxu0 %v5968_v11  ;;  %5599 = vmatpush3.bf16.msra.mxu1 %v5969_v13  ;;  %v6007_v11 = vld [vmem:[%s7291_s1 + $0x150] sm:$0xff]   ;;  %v6008_v13 = vld [vmem:[%s7291_s1 + $0x120] sm:$0xff]  }
 0x2a3   :  { %5582 = vmatprep.subr.bf16.mxu0 %v6088_v1  ;;  %5600 = vmatprep.subr.bf16.mxu1 %v6088_v1 }
 0x2a6   :  { %5583 = vmatpush3.bf16.msra.mxu0 %v5970_v14  ;;  %5601 = vmatpush3.bf16.msra.mxu1 %v5971_v15  ;;  %v6009_v14 = vld [vmem:[%s7291_s1 + $0x158] sm:$0xff]   ;;  %v4856_v15 = vld [vmem:[%s7290_s0 + $0xc] sm:$0xc] }
 0x2a7   :  { %5584 = vmatprep.subr.bf16.mxu0 %v6088_v1  ;;  %5602 = vmatprep.subr.bf16.mxu1 %v6088_v1 }
 0x2aa   :  { %5585 = vmatpush3.bf16.msra.mxu0 %v5972_v18  ;;  %5603 = vmatpush3.bf16.msra.mxu1 %v5973_v19  ;;  %v6011_v18 = vld [vmem:[%s7291_s1 + $0x160] sm:$0xff]   ;;  %v4873_v19 = vcombine.low %v4856_v15, %v6745_v17 }
 0x2ab   :  { %5586 = vmatprep.subr.bf16.mxu0 %v6088_v1  ;;  %5604 = vmatprep.subr.bf16.mxu1 %v6088_v1 }
 0x2ac   :  { %v2884_v22 = vshrl.u32 %v4873_v19, 16  ;;  %v2887_v23 = vshll.u32 %v4873_v19, 16  ;;  %v2768_v26 = vrot.slane %v4873_v19, 2 }
 0x2ae   :  { %5587 = vmatpush3.bf16.msra.mxu0 %v5974_v20  ;;  %5605 = vmatpush3.bf16.msra.mxu1 %v5975_v21  ;;  %v6012_v20 = vld [vmem:[%s7291_s1 + $0x130] sm:$0xff]   ;;  %v6013_v21 = vld [vmem:[%s7291_s1 + $0x168] sm:$0xff]   ;;  %v2889_v31 = vrot.slane %v2887_v23, 3 }
 0x2af   :  { %5588 = vmatprep.subr.bf16.mxu0 %v6088_v1  ;;  %5606 = vmatprep.subr.bf16.mxu1 %v6088_v1 }
 0x2b2   :  { %5589 = vmatpush3.bf16.msra.mxu0 %v5976_v24  ;;  %5607 = vmatpush3.bf16.msra.mxu1 %v5977_v25 }
 0x2b3   :  { %5590 = vmatprep.subr.bf16.mxu0 %v6088_v1  ;;  %5608 = vmatprep.subr.bf16.mxu1 %v6088_v1 }
 0x2b6   :  { %5591 = vmatpush3.bf16.msra.mxu0 %v5978_v29  ;;  %5609 = vmatpush3.bf16.msra.mxu1 %v5979_v30  ;;  %v6015_v29 = vld [vmem:[%s7291_s1 + $0x170] sm:$0xff]   ;;  %v2886_v30 = vrot.slane %v2884_v22, 2 }
 0x2b7   :  { %5610 = vmatprep.subr.bf16.mxu1 %v6088_v1  ;;  %5616 = vmatprep.subr.bf16.mxu0 %v6088_v1 }
 0x2b9   :  { %5593 = vmatmul.mubr.bf16.vlgmr.msra.gmra.mrb[44].mxu0 %v2323_v33 }
 0x2ba   :  { %5611 = vmatpush3.bf16.msra.mxu1 %v5982_v35  ;;  %5617 = vmatpush3.bf16.msra.mxu0 %v5983_v36  ;;  %v2770_v35 = vsel %vm539_vm4, %v2768_v26, %v2769_v27  ;;  %v6017_v36 = vld [vmem:[%s7291_s1 + $0x178] sm:$0xff]  }
 0x2bb   :  { %5618 = vmatprep.subr.bf16.mxu0 %v6088_v1  ;;  %5636 = vmatprep.subr.bf16.mxu1 %v6088_v1 }
 0x2bc   :  { %5632 = vmatprep.mubr.msk.bf16.mxu0 %vm6089_vm0, %v6088_v1 }
 0x2bd   :  { %5613 = vmatmul.mubr.bf16.vlgmr.msra.gmra.mrb[56].mxu1 %v4786_v12  ;;  %v6926_v12 = vld [vmem:[%s7290_s0 + $0x14] ss:$0 sps:$4 sm:$0x77]  }
 0x2be   :  { %5619 = vmatpush3.bf16.msra.mxu0 %v5984_v37  ;;  %5637 = vmatpush3.bf16.msra.mxu1 %v5985_v38  ;;  %v2892_v24 = vshrl.u32 %v6926_v12, 16  ;;  %v2895_v25 = vshll.u32 %v6926_v12, 16  ;;  %v6018_v37 = vld [vmem:[%s7291_s1 + $0x180] sm:$0xff]   ;;  %v2890_v38 = vor.u32 %v2889_v31, %v2886_v30 }
 0x2bf   :  { %5620 = vmatprep.subr.bf16.mxu0 %v6088_v1  ;;  %5638 = vmatprep.subr.bf16.mxu1 %v6088_v1 }
 0x2c0   :  { %5652 = vmatprep.mubr.msk.bf16.mxu1 %vm6089_vm0, %v6088_v1  ;;  %v2894_v32 = vrot.slane %v2892_v24, 2  ;;  %v2897_v33 = vrot.slane %v2895_v25, 3 }
 0x2c2   :  { %5621 = vmatpush3.bf16.msra.mxu0 %v5986_v39  ;;  %5639 = vmatpush3.bf16.msra.mxu1 %v5987_v41  ;;  %v2898_v39 = vor.u32 %v2897_v33, %v2894_v32  ;;  %v4766_v32 = vld [vmem:[%s7296_s6] ss:$0 sm:$0xff] }
 0x2c3   :  { %5622 = vmatprep.subr.bf16.mxu0 %v6088_v1  ;;  %5640 = vmatprep.subr.bf16.mxu1 %v6088_v1 }
 0x2c4   :  { %v2899_v41 = vsel %vm656_vm5, %v2890_v38, %v2898_v39 }
 0x2c6   :  { %5623 = vmatpush3.bf16.msra.mxu0 %v5988_v42  ;;  %5641 = vmatpush3.bf16.msra.mxu1 %v5989_v43  ;;  %v6020_v42 = vld [vmem:[%s7291_s1 + $0x188] sm:$0xff]   ;;  %v6021_v43 = vld [vmem:[%s7291_s1 + $0x190] sm:$0xff]  }
 0x2c7   :  { %5624 = vmatprep.subr.bf16.mxu0 %v6088_v1  ;;  %5642 = vmatprep.subr.bf16.mxu1 %v6088_v1 }
 0x2ca   :  { %5625 = vmatpush3.bf16.msra.mxu0 %v5990_v44  ;;  %5643 = vmatpush3.bf16.msra.mxu1 %v5991_v45  ;;  %v6022_v44 = vld [vmem:[%s7291_s1 + $0x198] sm:$0xff]   ;;  %v6023_v45 = vld [vmem:[%s7291_s1 + $0x1a0] sm:$0xff]  }
 0x2cb   :  { %5626 = vmatprep.subr.bf16.mxu0 %v6088_v1  ;;  %5644 = vmatprep.subr.bf16.mxu1 %v6088_v1 }
 0x2ce   :  { %5627 = vmatpush3.bf16.msra.mxu0 %v5992_v47  ;;  %5645 = vmatpush3.bf16.msra.mxu1 %v5993_v48  ;;  %v4908_v47 = vld [vmem:[%s7290_s0 + $0xc] sm:$0x8]  ;;  %v6025_v48 = vld [vmem:[%s7291_s1 + $0x1b0] sm:$0xff]  }
 0x2cf   :  { %5628 = vmatprep.subr.bf16.mxu0 %v6088_v1  ;;  %5646 = vmatprep.subr.bf16.mxu1 %v6088_v1  ;;  %v4925_v49 = vcombine.low %v4908_v47, %v6745_v17 }
 0x2d2   :  { %5629 = vmatpush3.bf16.msra.mxu0 %v5994_v34  ;;  %5647 = vmatpush3.bf16.msra.mxu1 %v5995_v51  ;;  %v3012_v34 = vrot.slane %v4925_v49, 3  ;;  %v3013_v51 = vrot.slane %v6926_v12, 3  ;;  %v6030_v49 = vld [vmem:[%s7293_s3 + $0x40] sm:$0xff]  }
 0x2d3   :  { %5630 = vmatprep.subr.bf16.mxu0 %v6088_v1  ;;  %5648 = vmatprep.subr.bf16.mxu1 %v6088_v1 }
 0x2d4   :  { %v3014_v52 = vsel %vm787_vm6, %v3012_v34, %v3013_v51  ;;  %v6029_v34 = vld [vmem:[%s7293_s3 + $0x18] sm:$0xff]   ;;  %v6032_v51 = vld [vmem:[%s7293_s3 + $0x48] sm:$0xff]  }
 0x2d6   :  { %5631 = vmatpush3.bf16.msra.mxu0 %v5996_v59  ;;  %5649 = vmatpush3.bf16.msra.mxu1 %v5997_v60 }
 0x2d7   :  { %5650 = vmatprep.subr.bf16.mxu1 %v6088_v1  ;;  %5656 = vmatprep.subr.bf16.mxu0 %v6088_v1 }
 0x2d9   :  { %5633 = vmatmul.mubr.bf16.vlgmr.msra.gmra.mrb[48].mxu0 %v2526_v58 }
 0x2da   :  { %5651 = vmatpush3.bf16.msra.mxu1 %v5999_v2  ;;  %5657 = vmatpush3.bf16.msra.mxu0 %v6000_v3 }
 0x2db   :  { %5658 = vmatprep.subr.bf16.mxu0 %v6088_v1  ;;  %5676 = vmatprep.subr.bf16.mxu1 %v6088_v1 }
 0x2dc   :  { %5672 = vmatprep.mubr.msk.bf16.mxu0 %vm6089_vm0, %v6088_v1 }
 0x2dd   :  { %5653 = vmatmul.mubr.bf16.vlgmr.msra.gmra.mrb[60].mxu1 %v2655_v0 }
 0x2de   :  { %5659 = vmatpush3.bf16.msra.mxu0 %v6002_v6  ;;  %5677 = vmatpush3.bf16.msra.mxu1 %v6003_v7 }
 0x2df   :  { %5660 = vmatprep.subr.bf16.mxu0 %v6088_v1  ;;  %5678 = vmatprep.subr.bf16.mxu1 %v6088_v1 }
 0x2e0   :  { %5692 = vmatprep.mubr.msk.bf16.mxu1 %vm6089_vm0, %v6088_v1 }
 0x2e2   :  { %5661 = vmatpush3.bf16.msra.mxu0 %v6004_v8  ;;  %5679 = vmatpush3.bf16.msra.mxu1 %v6005_v9 }
 0x2e3   :  { %5662 = vmatprep.subr.bf16.mxu0 %v6088_v1  ;;  %5680 = vmatprep.subr.bf16.mxu1 %v6088_v1 }
 0x2e6   :  { %5663 = vmatpush3.bf16.msra.mxu0 %v6006_v10  ;;  %5681 = vmatpush3.bf16.msra.mxu1 %v6007_v11  ;;  %v2245_v10 = vld [vmem:[%s7290_s0] sm:$0xe]  ;;  %v2246_v11 = vld [vmem:[%s7290_s0 + $0x4] sm:$0xf] }
 0x2e7   :  { %5664 = vmatprep.subr.bf16.mxu0 %v6088_v1  ;;  %5682 = vmatprep.subr.bf16.mxu1 %v6088_v1  ;;  %v2248_v19 = vunpack.c.l.bf16 %v2245_v10  ;;  %v2249_v12 = vunpack.c.l.bf16 %v2246_v11 }
 0x2e9   :  { %v2255_v27 = vrot.slane %v2248_v19, 3 }
 0x2ea   :  { %5665 = vmatpush3.bf16.msra.mxu0 %v6008_v13  ;;  %5683 = vmatpush3.bf16.msra.mxu1 %v6009_v14 }
 0x2eb   :  { %5666 = vmatprep.subr.bf16.mxu0 %v6088_v1  ;;  %5684 = vmatprep.subr.bf16.mxu1 %v6088_v1 }
 0x2ee   :  { %5667 = vmatpush3.bf16.msra.mxu0 %v6010_v16  ;;  %5685 = vmatpush3.bf16.msra.mxu1 %v6011_v18  ;;  %v2247_v16 = vld [vmem:[%s7290_s0 + $0x8] sm:$0x3] }
 0x2ef   :  { %5668 = vmatprep.subr.bf16.mxu0 %v6088_v1  ;;  %5686 = vmatprep.subr.bf16.mxu1 %v6088_v1  ;;  %v2250_v23 = vunpack.c.l.bf16 %v2247_v16 }
 0x2f1   :  { %v2258_v33 = vrot.slane %v2250_v23, 3  ;;  %v4934_v23 = vld [vmem:[%s7292_s2] ss:$0 sm:$0xff] }
 0x2f2   :  { %5669 = vmatpush3.bf16.msra.mxu0 %v6012_v20  ;;  %5687 = vmatpush3.bf16.msra.mxu1 %v6013_v21 }
 0x2f3   :  { %5670 = vmatprep.subr.bf16.mxu0 %v6088_v1  ;;  %5688 = vmatprep.subr.bf16.mxu1 %v6088_v1 }
 0x2f6   :  { %5671 = vmatpush3.bf16.msra.mxu0 %v6014_v28  ;;  %5689 = vmatpush3.bf16.msra.mxu1 %v6015_v29  ;;  %v2256_v28 = vrot.slane %v2249_v12, 3 }
 0x2f7   :  { %5690 = vmatprep.subr.bf16.mxu1 %v6088_v1  ;;  %5696 = vmatprep.subr.bf16.mxu0 %v6088_v1 }
 0x2f9   :  { %5673 = vmatmul.mubr.bf16.vlgmr.msra.gmra.mrb[52].mxu0 %v2770_v35 }
 0x2fa   :  { %5691 = vmatpush3.bf16.msra.mxu1 %v6017_v36  ;;  %5697 = vmatpush3.bf16.msra.mxu0 %v6018_v37  ;;  %v2257_v37 = vsel %vm787_vm6, %v2255_v27, %v2256_v28 }
 0x2fb   :  { %5698 = vmatprep.subr.bf16.mxu0 %v6088_v1  ;;  %5712 = vmatprep.mubr.msk.bf16.mxu0 %vm6089_vm0, %v6088_v1 }
 0x2fc   :  { %5716 = vmatprep.subr.bf16.mxu1 %v6088_v1 }
 0x2fd   :  { %5693 = vmatmul.mubr.bf16.vlgmr.msra.gmra.mrb[64].mxu1 %v2899_v41 }
 0x2fe   :  { %5699 = vmatpush3.bf16.msra.mxu0 %v6020_v42  ;;  %5720 = vmatprep.mubr.msk.bf16.mxu1 %vm6089_vm0, %v6088_v1 }
 0x2ff   :  { %5700 = vmatprep.subr.bf16.mxu0 %v6088_v1 }
 0x302   :  { %5701 = vmatpush3.bf16.msra.mxu0 %v6021_v43  ;;  %v2259_v43 = vsel %vm787_vm6, %v2256_v28, %v2258_v33 }
 0x303   :  { %5702 = vmatprep.subr.bf16.mxu0 %v6088_v1 }
 0x306   :  { %5703 = vmatpush3.bf16.msra.mxu0 %v6022_v44 }
 0x307   :  { %5704 = vmatprep.subr.bf16.mxu0 %v6088_v1 }
 0x30a   :  { %5705 = vmatpush3.bf16.msra.mxu0 %v6023_v45 }
 0x30b   :  { %5706 = vmatprep.subr.bf16.mxu0 %v6088_v1 }
 0x30e   :  { %5707 = vmatpush3.bf16.msra.mxu0 %v6024_v46 }
 0x30f   :  { %5708 = vmatprep.subr.bf16.mxu0 %v6088_v1 }
 0x312   :  { %5709 = vmatpush3.bf16.msra.mxu0 %v6025_v48  ;;  %v6028_v48 = vld [vmem:[%s7293_s3 + $0x10] sm:$0xff]  }
 0x313   :  { %5710 = vmatprep.subr.bf16.mxu0 %v6088_v1  ;;  %5717 = vmatpush3.bf16.msra.mxu1 %v6028_v48 }
 0x314   :  { %5718 = vmatprep.subr.bf16.mxu1 %v6088_v1 }
 0x316   :  { %5711 = vmatpush3.bf16.msra.mxu0 %v6026_v50 }
 0x317   :  { %5748 = vmatprep.subr.bf16.mxu0 %v6088_v1  ;;  %5719 = vmatpush3.bf16.msra.mxu1 %v6029_v34 }
 0x318   :  { %5724 = vmatprep.subr.bf16.mxu1 %v6088_v1 }
 0x319   :  { %5713 = vmatmul.mubr.bf16.vlgmr.msra.gmra.mrb[56].mxu0 %v3014_v52 }
 0x31a   :  { %5752 = vmatprep.mubr.msk.bf16.mxu0 %vm6089_vm0, %v6088_v1  ;;  %5749 = vmatpush3.bf16.msra.mxu0 %v6030_v49 }
 0x31b   :  { %5750 = vmatprep.subr.bf16.mxu0 %v6088_v1 }
 0x31e   :  { %5751 = vmatpush3.bf16.msra.mxu0 %v6032_v51 }
 0x31f   :  { %5764 = vmatprep.subr.bf16.mxu0 %v6088_v1 }
 0x358   :  { %v1791_v17 = vpop.f32.mrb[40].mxu1 }
 0x359   :  { %v5526_v53 = vpop.f32.mrb[41].mxu1 }
 0x35a   :  { %v1794_v54 = vpop.f32.mrb[42].mxu1 }
 0x35b   :  { %v5527_v55 = vpop.f32.mrb[43].mxu1 }
 0x35c   :  { %v1864_v56 = vpop.f32.mrb[32].mxu0 }
 0x35d   :  { %v1865_v57 = vadd.f32 %v1864_v56, %v1791_v17  ;;  %v5534_v59 = vpop.f32.mrb[33].mxu0 }
 0x35e   :  { %v1867_v60 = vpop.f32.mrb[34].mxu0 }
 0x35f   :  { %v1868_v61 = vadd.f32 %v1867_v60, %v1794_v54  ;;  %v5535_v62 = vpop.f32.mrb[35].mxu0 }
 0x360   :  { %v1938_v40 = vpop.f32.mrb[44].mxu1 }
 0x361   :  { %v1945_v63 = vadd.f32 %v1938_v40, %v1865_v57  ;;  %v5542_v58 = vpop.f32.mrb[45].mxu1 }
 0x362   :  { %v1941_v2 = vpop.f32.mrb[46].mxu1 }
 0x363   :  { %v1946_v3 = vadd.f32 %v1941_v2, %v1868_v61  ;;  %v5543_v4 = vpop.f32.mrb[47].mxu1 }
 0x364   :  { %v2000_v5 = vpop.f32.mrb[36].mxu0 }
 0x365   :  { %v2007_v0 = vadd.f32 %v2000_v5, %v1945_v63  ;;  %v5550_v6 = vpop.f32.mrb[37].mxu0 }
 0x366   :  { %v2003_v7 = vpop.f32.mrb[38].mxu0 }
 0x367   :  { %v2008_v8 = vadd.f32 %v2003_v7, %v1946_v3  ;;  %v5551_v9 = vpop.f32.mrb[39].mxu0 }
 0x368   :  { %v2077_v13 = vpop.f32.mrb[48].mxu1 }
 0x369   :  { %v2084_v14 = vadd.f32 %v2077_v13, %v2007_v0  ;;  %v5558_v15 = vpop.f32.mrb[49].mxu1 }
 0x36a   :  { %v2080_v18 = vpop.f32.mrb[50].mxu1 }
 0x36b   :  { %v2085_v20 = vadd.f32 %v2080_v18, %v2008_v8  ;;  %v5559_v21 = vpop.f32.mrb[51].mxu1 }
 0x36c   :  { %v2146_v22 = vpop.f32.mrb[40].mxu0 }
 0x36d   :  { %v2153_v24 = vadd.f32 %v2146_v22, %v2084_v14  ;;  %v5566_v25 = vpop.f32.mrb[41].mxu0 }
 0x36e   :  { %v2149_v26 = vpop.f32.mrb[42].mxu0 }
 0x36f   :  { %v2154_v29 = vadd.f32 %v2149_v26, %v2085_v20  ;;  %v5567_v30 = vpop.f32.mrb[43].mxu0 }
 0x370   :  { %v2227_v31 = vpop.f32.mrb[52].mxu1 }
 0x371   :  { %v2234_v35 = vadd.f32 %v2227_v31, %v2153_v24  ;;  %v5574_v36 = vpop.f32.mrb[53].mxu1 }
 0x372   :  { %v2230_v38 = vpop.f32.mrb[54].mxu1  ;;  %v3126_v36 = vld [vmem:[#allocation2] sm:$0xc0] }
 0x373   :  { %v2243_v39 = vadd.f32 %v4766_v32, %v2234_v35  ;;  %v2235_v41 = vadd.f32 %v2230_v38, %v2154_v29  ;;  %v5575_v42 = vpop.f32.mrb[55].mxu1  ;;  %v3120_v35 = vld [vmem:[#allocation2] sm:$0xe0] }
 0x374   :  { %v3133_v42 = vrot.slane %v3126_v36, 6 }
 0x375   :  { %v2262_v44 = vadd.f32 %v2257_v37, %v2243_v39  ;;  %v2244_v45 = vadd.f32 %v4766_v32, %v2235_v41  ;;  %v7035_v37 = vld [vmem:[#allocation2] sm:$0x80]  ;;  %v3193_v39 = vshrl.u32 %v3120_v35, 16  ;;  %v3196_v41 = vshll.u32 %v3120_v35, 16  ;;  %v6040_v35 = vld [vmem:[%s7293_s3 + $0x88] sm:$0xff]  }
 0x376   :  { %v3419_v38 = vshrl.u32 %v7035_v37, 16 }
 0x377   :  { %v2264_v46 = vmax.f32 %v2262_v44, 0.0  ;;  %v2263_v47 = vadd.f32 %v2259_v43, %v2244_v45  ;;  %v3198_v34 = vrot.slane %v3196_v41, 6 }
 0x378   :  { %v3421_v49 = vrot.slane %v3419_v38, 7 }
 0x379   :  { %2266 = vst [vmem:[#allocation4] sm:$0xff] %v2264_v46  ;;  %v2265_v50 = vmax.f32 %v2263_v47, 0.0  ;;  %v6031_v46 = vld [vmem:[%s7293_s3] sm:$0xff]  }
 0x37b   :  { %2267 = vst [vmem:[#allocation4 + $0x8] sm:$0xff] %v2265_v50  ;;  %v3195_v50 = vrot.slane %v3193_v39, 5 }
 0x38c   :  { %v2407_v52 = vpop.f32.mrb[44].mxu0 }
 0x38d   :  { %v5594_v17 = vpop.f32.mrb[45].mxu0 }
 0x38e   :  { %v2410_v53 = vpop.f32.mrb[46].mxu0 }
 0x38f   :  { %v5595_v54 = vpop.f32.mrb[47].mxu0 }
 0x390   :  { %v2497_v55 = vpop.f32.mrb[56].mxu1 }
 0x391   :  { %v2498_v56 = vadd.f32 %v2497_v55, %v2407_v52  ;;  %v5614_v57 = vpop.f32.mrb[57].mxu1 }
 0x392   :  { %v2500_v59 = vpop.f32.mrb[58].mxu1  ;;  %v6033_v57 = vld [vmem:[%s7293_s3 + $0x8] sm:$0xff]  }
 0x393   :  { %v2501_v60 = vadd.f32 %v2500_v59, %v2410_v53  ;;  %v5615_v61 = vpop.f32.mrb[59].mxu1 }
 0x394   :  { %v7057_v61 = vld [vmem:[#allocation2 + $0x10] sm:$0x1] }
 0x3ac   :  { %v2610_v62 = vpop.f32.mrb[48].mxu0 }
 0x3ad   :  { %v2617_v40 = vadd.f32 %v2610_v62, %v2498_v56  ;;  %v5634_v63 = vpop.f32.mrb[49].mxu0  ;;  %v3271_v62 = vshrl.u32 %v3126_v36, 16 }
 0x3ae   :  { %v2613_v58 = vpop.f32.mrb[50].mxu0  ;;  %v3563_v63 = vshll.u32 %v7057_v61, 16 }
 0x3af   :  { %v2618_v2 = vadd.f32 %v2613_v58, %v2501_v60  ;;  %v5635_v3 = vpop.f32.mrb[51].mxu0  ;;  %v6034_v60 = vld [vmem:[%s7293_s3 + $0x60] sm:$0xff]   ;;  %v3274_v58 = vshll.u32 %v3126_v36, 16 }
 0x3b0   :  { %v2739_v4 = vpop.f32.mrb[60].mxu1  ;;  %v7062_v3 = vld [vmem:[#allocation2 + $0x10] sm:$0x3] }
 0x3b1   :  { %v2746_v5 = vadd.f32 %v2739_v4, %v2617_v40  ;;  %v5654_v0 = vpop.f32.mrb[61].mxu1  ;;  %v3199_v40 = vor.u32 %v3198_v34, %v3195_v50 }
 0x3b2   :  { %v2742_v6 = vpop.f32.mrb[62].mxu1 }
 0x3b3   :  { %v2747_v7 = vadd.f32 %v2742_v6, %v2618_v2  ;;  %v5655_v8 = vpop.f32.mrb[63].mxu1 }
 0x3b4   :  { %v6035_v8 = vld [vmem:[%s7293_s3 + $0x20] sm:$0xff]  }
 0x3cc   :  { %v2854_v9 = vpop.f32.mrb[52].mxu0 }
 0x3cd   :  { %v2861_v10 = vadd.f32 %v2854_v9, %v2746_v5  ;;  %v5674_v11 = vpop.f32.mrb[53].mxu0  ;;  %v6036_v9 = vld [vmem:[%s7293_s3 + $0x68] sm:$0xff]  }
 0x3ce   :  { %v2857_v13 = vpop.f32.mrb[54].mxu0  ;;  %v3707_v11 = vshrl.u32 %v7062_v3, 16 }
 0x3cf   :  { %v2862_v14 = vadd.f32 %v2857_v13, %v2747_v7  ;;  %v5675_v15 = vpop.f32.mrb[55].mxu0  ;;  %v3710_v13 = vshll.u32 %v7062_v3, 16 }
 0x3d0   :  { %v2983_v16 = vpop.f32.mrb[64].mxu1  ;;  %v3276_v15 = vrot.slane %v3274_v58, 7  ;;  %v6048_v58 = vld [vmem:[%s7293_s3 + $0x90] sm:$0xff]  }
 0x3d1   :  { %v2990_v18 = vadd.f32 %v2983_v16, %v2861_v10  ;;  %v5694_v19 = vpop.f32.mrb[65].mxu1  ;;  %v3273_v10 = vrot.slane %v3271_v62, 6  ;;  %v6047_v62 = vld [vmem:[%s7293_s3 + $0x78] sm:$0xff]  }
 0x3d2   :  { %v2986_v12 = vpop.f32.mrb[66].mxu1 }
 0x3d3   :  { %v2991_v20 = vadd.f32 %v2986_v12, %v2862_v14  ;;  %v5695_v21 = vpop.f32.mrb[67].mxu1  ;;  %v3565_v14 = vrot.slane %v3563_v63, 1  ;;  %v3633_v63 = vrot.slane %v7057_v61, 1 }
 0x3ec   :  { %v3098_v22 = vpop.f32.mrb[56].mxu0 }
 0x3ed   :  { %v3105_v24 = vadd.f32 %v3098_v22, %v2990_v18  ;;  %v5714_v25 = vpop.f32.mrb[57].mxu0  ;;  %v6037_v22 = vld [vmem:[%s7293_s3 + $0x28] sm:$0xff]  }
 0x3ee   :  { %v3101_v26 = vpop.f32.mrb[58].mxu0  ;;  %v3709_v25 = vrot.slane %v3707_v11, 1 }
 0x3ef   :  { %v3114_v27 = vadd.f32 %v4934_v23, %v3105_v24  ;;  %v3106_v28 = vadd.f32 %v3101_v26, %v2991_v20  ;;  %v5715_v29 = vpop.f32.mrb[59].mxu0  ;;  %v3277_v24 = vor.u32 %v3276_v15, %v3273_v10  ;;  %v3712_v26 = vrot.slane %v3710_v13, 2 }
 0x3f1   :  { %v3115_v30 = vadd.f32 %v4934_v23, %v3106_v28  ;;  %v3116_v31 = vmax.f32 %v3114_v27, 0.0  ;;  %v6038_v23 = vld [vmem:[%s7293_s3 + $0x80] sm:$0xff]   ;;  %v3713_v36 = vor.u32 %v3712_v26, %v3709_v25 }
 0x3f3   :  { %v3117_v32 = vmax.f32 %v3115_v30, 0.0 }
 0x3f5   :  { %v3118_v33 = vpack.c.bf16 %v3117_v32, %v3116_v31  ;;  %v3841_v31 = vld [vmem:[#allocation2 + $0x10] sm:$0x7] }
 0x3f6   :  { %v3855_v38 = vshrl.u32 %v3841_v31, 16  ;;  %v3858_v39 = vshll.u32 %v3841_v31, 16 }
 0x3f7   :  { %3119 = vst.msk [vmem:[#allocation2 + $0x8] sm:$0xff] %vm28_vm7, %v3118_v33  ;;  %v6039_v33 = vld [vmem:[%s7293_s3 + $0x30] sm:$0xff]  }
 0x3f8   :  { %v3860_v50 = vrot.slane %v3858_v39, 3 }
 0x3fe   :  { %v3121_v43 = vld [vmem:[#allocation2 + $0x8] sm:$0x3f] }
 0x3ff   :  { %v7038_v44 = vld [vmem:[#allocation2 + $0x8] sm:$0xff]  ;;  %v3134_v45 = vrot.slane %v3121_v43, 6  ;;  %v3201_v48 = vshrl.u32 %v3121_v43, 16  ;;  %v3204_v51 = vshll.u32 %v3121_v43, 16 }
 0x400   :  { %v3423_v47 = vshrl.u32 %v7038_v44, 16  ;;  %v3426_v53 = vshll.u32 %v7038_v44, 16  ;;  %v7046_v55 = vld [vmem:[#allocation2 + $0x8] sm:$0x7f] }
 0x401   :  { %v3135_v52 = vsel %vm910_vm8, %v3133_v42, %v3134_v45  ;;  %v3203_v54 = vrot.slane %v3201_v48, 5  ;;  %v3206_v56 = vrot.slane %v3204_v51, 6  ;;  %v3279_v2 = vshrl.u32 %v7046_v55, 16  ;;  %v7066_v7 = vld [vmem:[#allocation2 + $0x8] sm:$0xfe] }
 0x402   :  { %v3425_v17 = vrot.slane %v3423_v47, 7  ;;  %5721 = vmatmul.mubr.msk.bf16.vlgmr.msra.gmra.mrb[68].mxu1 %vm28_vm7, %v3135_v52  ;;  %v3560_v0 = vrot.slane %v3426_v53, 1  ;;  %v3282_v6 = vshll.u32 %v7046_v55, 16  ;;  %v3699_v18 = vshrl.u32 %v7066_v7, 16  ;;  %v7097_v32 = vld [vmem:[#allocation2 + $0x8] sm:$0xfc] }
 0x403   :  { %5725 = vmatpush3.bf16.msra.mxu1 %v6031_v46  ;;  %5728 = vmatprep.mubr.msk.bf16.mxu1 %vm6089_vm0, %v6088_v1  ;;  %v3207_v5 = vor.u32 %v3206_v56, %v3203_v54  ;;  %v3281_v16 = vrot.slane %v3279_v2, 6  ;;  %v3702_v21 = vshll.u32 %v7066_v7, 16  ;;  %v3847_v43 = vshrl.u32 %v7097_v32, 16  ;;  %v6041_v46 = vld [vmem:[%s7293_s3 + $0x38] sm:$0xff]  }
 0x404   :  { %v3428_v59 = vor.u32 %v3426_v53, %v3425_v17  ;;  %5726 = vmatprep.subr.bf16.mxu1 %v6088_v1  ;;  %v3561_v12 = vor.u32 %v3560_v0, %v3423_v47  ;;  %v3284_v20 = vrot.slane %v3282_v6, 7  ;;  %v3701_v29 = vrot.slane %v3699_v18, 1  ;;  %v6042_v47 = vld [vmem:[%s7293_s3 + $0xa0] sm:$0xff]   ;;  %v6043_v53 = vld [vmem:[%s7293_s3 + $0x50] sm:$0xff]   ;;  %v6049_v2 = vld [vmem:[%s7293_s3 + $0x98] sm:$0xff]  }
 0x405   :  { %v3208_v19 = vsel %vm970_vm10, %v3199_v40, %v3207_v5  ;;  %v3704_v30 = vrot.slane %v3702_v21, 2  ;;  %v3850_v45 = vshll.u32 %v7097_v32, 16  ;;  %v3352_v48 = vrot.slane %v7035_v37, 7  ;;  %v6044_v37 = vld [vmem:[%s7293_s3 + $0xa8] sm:$0xff]   ;;  %v6050_v0 = vld [vmem:[%s7295_s5 + $0x10] sm:$0xff]   ;;  %v6052_v6 = vld [vmem:[%s7295_s5] sm:$0xff]  }
 0x406   :  { %v3429_v4 = vsel %vm1202_vm9, %v3421_v49, %v3428_v59  ;;  %v3566_v27 = vsel %vm77_vm1, %v3561_v12, %v3565_v14  ;;  %v3285_v28 = vor.u32 %v3284_v20, %v3281_v16  ;;  %v3857_v49 = vrot.slane %v3855_v38, 2 }
 0x407   :  { %5753 = vmatmul.mubr.msk.bf16.vlgmr.msra.gmra.mrb[60].mxu0 %vm28_vm7, %v3429_v4  ;;  %5727 = vmatpush3.bf16.msra.mxu1 %v6033_v57  ;;  %v3705_v42 = vor.u32 %v3704_v30, %v3701_v29  ;;  %v3353_v51 = vrot.slane %v7046_v55, 7  ;;  %v3849_v52 = vrot.slane %v3847_v43, 2  ;;  %v3852_v17 = vrot.slane %v3850_v45, 3  ;;  %v6045_v57 = vld [vmem:[%s7293_s3 + $0x58] sm:$0xff]  }
 0x408   :  { %5765 = vmatpush3.bf16.msra.mxu0 %v6034_v60  ;;  %5732 = vmatprep.subr.bf16.mxu1 %v6088_v1  ;;  %v3286_v41 = vsel %vm1050_vm11, %v3277_v24, %v3285_v28  ;;  %v3861_v56 = vor.u32 %v3860_v50, %v3857_v49  ;;  %v6046_v60 = vld [vmem:[%s7293_s3 + $0x70] sm:$0xff]   ;;  %v3632_v40 = vrot.slane %v7066_v7, 1  ;;  %v3780_v61 = vrot.slane %v7097_v32, 2  ;;  %v6054_v7 = vld [vmem:[%s7295_s5 + $0x8] sm:$0xff]  }
 0x409   :  { %5766 = vmatprep.subr.bf16.mxu0 %v6088_v1  ;;  %5768 = vmatprep.mubr.msk.bf16.mxu0 %vm6089_vm0, %v6088_v1  ;;  %v3714_v34 = vsel %vm408_vm3, %v3705_v42, %v3713_v36  ;;  %v3354_v54 = vsel %vm1134_vm12, %v3352_v48, %v3353_v51  ;;  %v3853_v55 = vor.u32 %v3852_v17, %v3849_v52  ;;  %v3781_v4 = vrot.slane %v7062_v3, 2  ;;  %v6051_v3 = vld [vmem:[%s7295_s5 + $0x18] sm:$0xff]  }
 0x40a   :  { %5729 = vmatmul.mubr.msk.bf16.vlgmr.msra.gmra.mrb[72].mxu1 %vm28_vm7, %v3208_v19 }
 0x40b   :  { %5733 = vmatpush3.bf16.msra.mxu1 %v6035_v8  ;;  %5736 = vmatprep.mubr.msk.bf16.mxu1 %vm6089_vm0, %v6088_v1  ;;  %v3862_v59 = vsel %vm656_vm5, %v3853_v55, %v3861_v56  ;;  %v3782_v5 = vsel %vm539_vm4, %v3780_v61, %v3781_v4 }
 0x40c   :  { %5767 = vmatpush3.bf16.msra.mxu0 %v6036_v9  ;;  %5734 = vmatprep.subr.bf16.mxu1 %v6088_v1 }
 0x40d   :  { %5780 = vmatprep.subr.bf16.mxu0 %v6088_v1 }
 0x40f   :  { %5769 = vmatmul.mubr.msk.bf16.vlgmr.msra.gmra.mrb[64].mxu0 %vm28_vm7, %v3566_v27  ;;  %5735 = vmatpush3.bf16.msra.mxu1 %v6037_v22 }
 0x410   :  { %5781 = vmatpush3.bf16.msra.mxu0 %v6038_v23  ;;  %5740 = vmatprep.subr.bf16.mxu1 %v6088_v1 }
 0x411   :  { %5782 = vmatprep.subr.bf16.mxu0 %v6088_v1  ;;  %5784 = vmatprep.mubr.msk.bf16.mxu0 %vm6089_vm0, %v6088_v1 }
 0x412   :  { %5737 = vmatmul.mubr.msk.bf16.vlgmr.msra.gmra.mrb[76].mxu1 %vm28_vm7, %v3286_v41 }
 0x413   :  { %5741 = vmatpush3.bf16.msra.mxu1 %v6039_v33  ;;  %5744 = vmatprep.mubr.msk.bf16.mxu1 %vm6089_vm0, %v6088_v1 }
 0x414   :  { %5783 = vmatpush3.bf16.msra.mxu0 %v6040_v35  ;;  %5742 = vmatprep.subr.bf16.mxu1 %v6088_v1 }
 0x415   :  { %5796 = vmatprep.subr.bf16.mxu0 %v6088_v1 }
 0x417   :  { %5785 = vmatmul.mubr.msk.bf16.vlgmr.msra.gmra.mrb[68].mxu0 %vm28_vm7, %v3714_v34  ;;  %5743 = vmatpush3.bf16.msra.mxu1 %v6041_v46 }
 0x418   :  { %5797 = vmatpush3.bf16.msra.mxu0 %v6042_v47  ;;  %5756 = vmatprep.subr.bf16.mxu1 %v6088_v1 }
 0x419   :  { %5798 = vmatprep.subr.bf16.mxu0 %v6088_v1  ;;  %5800 = vmatprep.mubr.msk.bf16.mxu0 %vm6089_vm0, %v6088_v1 }
 0x41a   :  { %5745 = vmatmul.mubr.msk.bf16.vlgmr.msra.gmra.mrb[80].mxu1 %vm28_vm7, %v3354_v54 }
 0x41b   :  { %5757 = vmatpush3.bf16.msra.mxu1 %v6043_v53  ;;  %5760 = vmatprep.mubr.msk.bf16.mxu1 %vm6089_vm0, %v6088_v1 }
 0x41c   :  { %5799 = vmatpush3.bf16.msra.mxu0 %v6044_v37  ;;  %5758 = vmatprep.subr.bf16.mxu1 %v6088_v1 }
 0x41d   :  { %5812 = vmatprep.subr.bf16.mxu0 %v6088_v1 }
 0x41f   :  { %5801 = vmatmul.mubr.msk.bf16.vlgmr.msra.gmra.mrb[72].mxu0 %vm28_vm7, %v3862_v59  ;;  %5759 = vmatpush3.bf16.msra.mxu1 %v6045_v57 }
 0x420   :  { %5816 = vmatprep.mubr.msk.bf16.mxu0 %vm6089_vm0, %v6088_v1  ;;  %5772 = vmatprep.subr.bf16.mxu1 %v6088_v1 }
 0x421   :  { %5813 = vmatpush3.bf16.msra.mxu0 %v6052_v6 }
 0x422   :  { %5761 = vmatmul.mubr.msk.bf16.vlgmr.msra.gmra.mrb[84].mxu1 %vm28_vm7, %v7038_v44  ;;  %v3634_v44 = vsel %vm291_vm2, %v3632_v40, %v3633_v63  ;;  %5814 = vmatprep.subr.bf16.mxu0 %v6088_v1 }
 0x423   :  { %5773 = vmatpush3.bf16.msra.mxu1 %v6046_v60  ;;  %5776 = vmatprep.mubr.msk.bf16.mxu1 %vm6089_vm0, %v6088_v1 }
 0x424   :  { %5774 = vmatprep.subr.bf16.mxu1 %v6088_v1 }
 0x425   :  { %5815 = vmatpush3.bf16.msra.mxu0 %v6054_v7 }
 0x426   :  { %5828 = vmatprep.subr.bf16.mxu0 %v6088_v1 }
 0x427   :  { %5775 = vmatpush3.bf16.msra.mxu1 %v6047_v62 }
 0x428   :  { %5788 = vmatprep.subr.bf16.mxu1 %v6088_v1 }
 0x42a   :  { %5777 = vmatmul.mubr.msk.bf16.vlgmr.msra.gmra.mrb[88].mxu1 %vm28_vm7, %v3634_v44 }
 0x42b   :  { %5789 = vmatpush3.bf16.msra.mxu1 %v6048_v58  ;;  %5792 = vmatprep.mubr.msk.bf16.mxu1 %vm6089_vm0, %v6088_v1 }
 0x42c   :  { %5790 = vmatprep.subr.bf16.mxu1 %v6088_v1 }
 0x42f   :  { %5791 = vmatpush3.bf16.msra.mxu1 %v6049_v2 }
 0x430   :  { %5804 = vmatprep.subr.bf16.mxu1 %v6088_v1 }
 0x432   :  { %5793 = vmatmul.mubr.msk.bf16.vlgmr.msra.gmra.mrb[92].mxu1 %vm28_vm7, %v3782_v5 }
 0x433   :  { %5808 = vmatprep.mubr.msk.bf16.mxu1 %vm6089_vm0, %v6088_v1  ;;  %5805 = vmatpush3.bf16.msra.mxu1 %v6050_v0  ;;  %v5008_v0 = vld [vmem:[%s7294_s4] ss:$0 sm:$0xff] }
 0x434   :  { %5806 = vmatprep.subr.bf16.mxu1 %v6088_v1 }
 0x437   :  { %5807 = vmatpush3.bf16.msra.mxu1 %v6051_v3 }
 0x438   :  { %5820 = vmatprep.subr.bf16.mxu1 %v6088_v1 }
 0x4d5   :  { %v3185_v8 = vpop.f32.mrb[68].mxu1 }
 0x4d6   :  { %v5722_v9 = vpop.f32.mrb[69].mxu1 }
 0x4d7   :  { %v3188_v10 = vpop.f32.mrb[70].mxu1 }
 0x4d8   :  { %v5723_v11 = vpop.f32.mrb[71].mxu1 }
 0x4da   :  { %v3479_v13 = vpop.f32.mrb[60].mxu0 }
 0x4db   :  { %v5754_v14 = vpop.f32.mrb[61].mxu0 }
 0x4dc   :  { %v3482_v15 = vpop.f32.mrb[62].mxu0 }
 0x4dd   :  { %v5755_v16 = vpop.f32.mrb[63].mxu0  ;;  %v3258_v18 = vpop.f32.mrb[72].mxu1 }
 0x4de   :  { %v3259_v19 = vadd.f32 %v3258_v18, %v3185_v8  ;;  %v5730_v12 = vpop.f32.mrb[73].mxu1  ;;  %v3934_v16 = vld [vmem:[#allocation3] sm:$0xc0] }
 0x4df   :  { %v3261_v20 = vpop.f32.mrb[74].mxu1  ;;  %v4007_v18 = vshrl.u32 %v3934_v16, 16  ;;  %v3940_v12 = vld [vmem:[#allocation3] sm:$0x80] }
 0x4e0   :  { %v3262_v21 = vadd.f32 %v3261_v20, %v3188_v10  ;;  %v5731_v22 = vpop.f32.mrb[75].mxu1 }
 0x4e1   :  { %v4009_v20 = vrot.slane %v4007_v18, 6  ;;  %v3947_v22 = vrot.slane %v3940_v12, 7 }
 0x4e2   :  { %v3616_v23 = vpop.f32.mrb[64].mxu0 }
 0x4e3   :  { %v5770_v24 = vpop.f32.mrb[65].mxu0 }
 0x4e4   :  { %v3619_v25 = vpop.f32.mrb[66].mxu0 }
 0x4e5   :  { %v5771_v26 = vpop.f32.mrb[67].mxu0  ;;  %v3336_v27 = vpop.f32.mrb[76].mxu1 }
 0x4e6   :  { %v3343_v28 = vadd.f32 %v3336_v27, %v3259_v19  ;;  %v5738_v29 = vpop.f32.mrb[77].mxu1  ;;  %v4010_v19 = vshll.u32 %v3934_v16, 16  ;;  %v6053_v26 = vld [vmem:[%s7295_s5 + $0x20] sm:$0xff]  }
 0x4e7   :  { %v3339_v30 = vpop.f32.mrb[78].mxu1 }
 0x4e8   :  { %v3344_v31 = vadd.f32 %v3339_v30, %v3262_v21  ;;  %v5739_v32 = vpop.f32.mrb[79].mxu1  ;;  %v4012_v21 = vrot.slane %v4010_v19, 7 }
 0x4ea   :  { %v3764_v33 = vpop.f32.mrb[68].mxu0  ;;  %v4013_v30 = vor.u32 %v4012_v21, %v4009_v20 }
 0x4eb   :  { %v5786_v35 = vpop.f32.mrb[69].mxu0 }
 0x4ec   :  { %v3767_v36 = vpop.f32.mrb[70].mxu0 }
 0x4ed   :  { %v5787_v38 = vpop.f32.mrb[71].mxu0  ;;  %v3404_v39 = vpop.f32.mrb[80].mxu1 }
 0x4ee   :  { %v3411_v41 = vadd.f32 %v3404_v39, %v3343_v28  ;;  %v5746_v42 = vpop.f32.mrb[81].mxu1  ;;  %v6055_v39 = vld [vmem:[%s7295_s5 + $0x28] sm:$0xff]  }
 0x4ef   :  { %v3407_v43 = vpop.f32.mrb[82].mxu1 }
 0x4f0   :  { %v3412_v45 = vadd.f32 %v3407_v43, %v3344_v31  ;;  %v5747_v46 = vpop.f32.mrb[83].mxu1  ;;  %v3486_v47 = vadd.f32 %v3479_v13, %v3411_v41  ;;  %v4085_v31 = vshrl.u32 %v3940_v12, 16  ;;  %v6056_v41 = vld [vmem:[%s7295_s5 + $0x30] sm:$0xff]  }
 0x4f2   :  { %v3912_v48 = vpop.f32.mrb[72].mxu0  ;;  %v3487_v50 = vadd.f32 %v3482_v15, %v3412_v45  ;;  %v4087_v45 = vrot.slane %v4085_v31, 7  ;;  %v5055_v31 = vld [vmem:[%s7290_s0 + $0xc] sm:$0xe] }
 0x4f3   :  { %v5802_v49 = vpop.f32.mrb[73].mxu0 }
 0x4f4   :  { %v3915_v34 = vpop.f32.mrb[74].mxu0  ;;  %v4216_v49 = vld [vmem:[#allocation3 + $0x10] sm:$0x1] }
 0x4f5   :  { %v5803_v51 = vpop.f32.mrb[75].mxu0  ;;  %v3540_v52 = vpop.f32.mrb[84].mxu1 }
 0x4f6   :  { %v3547_v17 = vadd.f32 %v3540_v52, %v3486_v47  ;;  %v5762_v53 = vpop.f32.mrb[85].mxu1  ;;  %v6057_v47 = vld [vmem:[%s7295_s5 + $0x40] sm:$0xff]   ;;  %v4229_v51 = vshll.u32 %v4216_v49, 16 }
 0x4f7   :  { %v3543_v37 = vpop.f32.mrb[86].mxu1  ;;  %v4359_v52 = vld [vmem:[#allocation3 + $0x10] sm:$0x3]  ;;  %v6059_v53 = vld [vmem:[%s7295_s5 + $0x48] sm:$0xff]  }
 0x4f8   :  { %v3548_v54 = vadd.f32 %v3543_v37, %v3487_v50  ;;  %v5763_v55 = vpop.f32.mrb[87].mxu1  ;;  %v3623_v56 = vadd.f32 %v3616_v23, %v3547_v17  ;;  %v6060_v37 = vld [vmem:[%s7295_s5 + $0x50] sm:$0xff]  }
 0x4f9   :  { %v4376_v55 = vshll.u32 %v4359_v52, 16 }
 0x4fa   :  { %v3624_v57 = vadd.f32 %v3619_v25, %v3548_v54  ;;  %v4373_v54 = vshrl.u32 %v4359_v52, 16 }
 0x4fd   :  { %v3684_v59 = vpop.f32.mrb[88].mxu1 }
 0x4fe   :  { %v3691_v60 = vadd.f32 %v3684_v59, %v3623_v56  ;;  %v5778_v62 = vpop.f32.mrb[89].mxu1 }
 0x4ff   :  { %v3687_v40 = vpop.f32.mrb[90].mxu1  ;;  %v6061_v62 = vld [vmem:[%s7295_s5 + $0x60] sm:$0xff]  }
 0x500   :  { %v3692_v63 = vadd.f32 %v3687_v40, %v3624_v57  ;;  %v5779_v58 = vpop.f32.mrb[91].mxu1  ;;  %v3771_v44 = vadd.f32 %v3764_v33, %v3691_v60  ;;  %v4231_v57 = vrot.slane %v4229_v51, 1  ;;  %v6062_v40 = vld [vmem:[%s7295_s5 + $0x58] sm:$0xff]  }
 0x501   :  { %v4375_v58 = vrot.slane %v4373_v54, 1 }
 0x502   :  { %v3772_v2 = vadd.f32 %v3767_v36, %v3692_v63  ;;  %v4299_v63 = vrot.slane %v4216_v49, 1 }
 0x505   :  { %v3832_v61 = vpop.f32.mrb[92].mxu1 }
 0x506   :  { %v3839_v4 = vadd.f32 %v3832_v61, %v3771_v44  ;;  %v5794_v5 = vpop.f32.mrb[93].mxu1  ;;  %v4378_v44 = vrot.slane %v4376_v55, 2 }
 0x507   :  { %v3835_v6 = vpop.f32.mrb[94].mxu1 }
 0x508   :  { %v3919_v3 = vadd.f32 %v3912_v48, %v3839_v4  ;;  %v3840_v7 = vadd.f32 %v3835_v6, %v3772_v2  ;;  %v5795_v8 = vpop.f32.mrb[95].mxu1  ;;  %v6058_v48 = vld [vmem:[%s7295_s5 + $0x38] sm:$0xff]  }
 0x50a   :  { %v3928_v9 = vadd.f32 %v5008_v0, %v3919_v3  ;;  %v3920_v10 = vadd.f32 %v3915_v34, %v3840_v7  ;;  %v4379_v7 = vor.u32 %v4378_v44, %v4375_v58 }
 0x50c   :  { %v3929_v11 = vadd.f32 %v5008_v0, %v3920_v10  ;;  %v3930_v13 = vmax.f32 %v3928_v9, 0.0  ;;  %v6063_v0 = vld [vmem:[%s7295_s5 + $0x68] sm:$0xff]  }
 0x50e   :  { %v3931_v14 = vmax.f32 %v3929_v11, 0.0 }
 0x510   :  { %v3932_v15 = vpack.c.bf16 %v3931_v14, %v3930_v13 }
 0x512   :  { %3933 = vst.msk [vmem:[#allocation3 + $0x8] sm:$0xff] %vm28_vm7, %v3932_v15 }
 0x519   :  { %v3935_v23 = vld [vmem:[#allocation3 + $0x8] sm:$0x7f] }
 0x51a   :  { %v4079_v24 = vld [vmem:[#allocation3 + $0x8] sm:$0xff]  ;;  %v3948_v25 = vrot.slane %v3935_v23, 7  ;;  %v4015_v27 = vshrl.u32 %v3935_v23, 16  ;;  %v4018_v28 = vshll.u32 %v3935_v23, 16 }
 0x51b   :  { %v4089_v29 = vshrl.u32 %v4079_v24, 16  ;;  %v4092_v42 = vshll.u32 %v4079_v24, 16  ;;  %v4291_v17 = vld [vmem:[#allocation3 + $0x8] sm:$0xfe] }
 0x51c   :  { %v3949_v32 = vsel %vm1134_vm12, %v3947_v22, %v3948_v25  ;;  %v4017_v33 = vrot.slane %v4015_v27, 6  ;;  %v4020_v35 = vrot.slane %v4018_v28, 7  ;;  %v4365_v59 = vshrl.u32 %v4291_v17, 16 }
 0x51d   :  { %v4091_v36 = vrot.slane %v4089_v29, 7  ;;  %5809 = vmatmul.mubr.msk.bf16.vlgmr.msra.gmra.mrb[96].mxu1 %vm28_vm7, %v3949_v32  ;;  %v4226_v34 = vrot.slane %v4092_v42, 1  ;;  %v4368_v60 = vshll.u32 %v4291_v17, 16  ;;  %v4298_v61 = vrot.slane %v4291_v17, 1  ;;  %v5056_v32 = vld [vmem:[%s7290_s0 + $0x10] sm:$0xf] }
 0x51e   :  { %5821 = vmatpush3.bf16.msra.mxu1 %v6053_v26  ;;  %v4021_v38 = vor.u32 %v4020_v35, %v4017_v33  ;;  %5824 = vmatprep.mubr.msk.bf16.mxu1 %vm6089_vm0, %v6088_v1  ;;  %v4367_v4 = vrot.slane %v4365_v59, 1 }
 0x51f   :  { %5822 = vmatprep.subr.bf16.mxu1 %v6088_v1  ;;  %v4094_v46 = vor.u32 %v4092_v42, %v4091_v36  ;;  %v4227_v56 = vor.u32 %v4226_v34, %v4089_v29  ;;  %v4370_v5 = vrot.slane %v4368_v60, 2  ;;  %v4300_v6 = vsel %vm291_vm2, %v4298_v61, %v4299_v63 }
 0x520   :  { %v4022_v43 = vsel %vm1050_vm11, %v4013_v30, %v4021_v38  ;;  %v5057_v38 = vld [vmem:[%s7290_s0 + $0x14] sm:$0x3]  ;;  %v4452_v42 = vunpack.c.l.bf16 %v5056_v32  ;;  %s6091_s0 = smov [#allocation4]  }
 0x521   :  { %5817 = vmatmul.mubr.msk.bf16.vlgmr.msra.gmra.mrb[76].mxu0 %vm28_vm7, %v4022_v43  ;;  %v4095_v50 = vsel %vm1202_vm9, %v4087_v45, %v4094_v46  ;;  %v4232_v2 = vsel %vm77_vm1, %v4227_v56, %v4231_v57  ;;  %v4371_v3 = vor.u32 %v4370_v5, %v4367_v4  ;;  %s4476_s4 = sshll.u32 %s6091_s0, 4  ;;  %s4477_s4 = int_to_ptr.vmem [resolvable:$true] %s4476_s4 }
 0x522   :  { %5823 = vmatpush3.bf16.msra.mxu1 %v6055_v39  ;;  %5829 = vmatpush3.bf16.msra.mxu0 %v6056_v41  ;;  %v4451_v41 = vunpack.c.l.bf16 %v5055_v31  ;;  %v4458_v51 = vrot.slane %v4452_v42, 3  ;;  %p6069_p1 = scmp.lt.s32.totalorder %s4477_s4, %s4477_s4 }
 0x523   :  { %5836 = vmatprep.subr.bf16.mxu1 %v6088_v1  ;;  %5830 = vmatprep.subr.bf16.mxu0 %v6088_v1  ;;  %v4380_v8 = vsel %vm408_vm3, %v4371_v3, %v4379_v7 }
 0x524   :  { %5832 = vmatprep.mubr.msk.bf16.mxu0 %vm6089_vm0, %v6088_v1  ;;  %v4457_v34 = vrot.slane %v4451_v41, 3 }
 0x525   :  { %5825 = vmatmul.mubr.msk.bf16.vlgmr.msra.gmra.mrb[100].mxu1 %vm28_vm7, %v4095_v50 }
 0x526   :  { %5837 = vmatpush3.bf16.msra.mxu1 %v6057_v47  ;;  %5831 = vmatpush3.bf16.msra.mxu0 %v6058_v48  ;;  %v4453_v47 = vunpack.c.l.bf16 %v5057_v38  ;;  %v4459_v57 = vsel %vm787_vm6, %v4457_v34, %v4458_v51 }
 0x527   :  { %5838 = vmatprep.subr.bf16.mxu1 %v6088_v1  ;;  %5844 = vmatprep.subr.bf16.mxu0 %v6088_v1 }
 0x528   :  { %5840 = vmatprep.mubr.msk.bf16.mxu1 %vm6089_vm0, %v6088_v1  ;;  %v4460_v54 = vrot.slane %v4453_v47, 3 }
 0x529   :  { %5833 = vmatmul.mubr.msk.bf16.vlgmr.msra.gmra.mrb[80].mxu0 %vm28_vm7, %v4079_v24 }
 0x52a   :  { %5839 = vmatpush3.bf16.msra.mxu1 %v6059_v53  ;;  %5845 = vmatpush3.bf16.msra.mxu0 %v6060_v37  ;;  %v5054_v37 = vld [vmem:[%s7296_s6] ss:$0 sm:$0xff]  ;;  %v4461_v63 = vsel %vm787_vm6, %v4458_v51, %v4460_v54  ;;  %s6064_s6 = scalar_lea.vmem %s4477_s4, 512 }
 0x52b   :  { %5852 = vmatprep.subr.bf16.mxu1 %v6088_v1  ;;  %5846 = vmatprep.subr.bf16.mxu0 %v6088_v1  ;;  %p6065_p0 = scmp.ne.s32.totalorder %s4477_s4, %s6064_s6  ;;  %p6070_p2 = scmp.lt.s32.totalorder %s6064_s6, %s6064_s6 }
 0x52c   :  { %5848 = vmatprep.mubr.msk.bf16.mxu0 %vm6089_vm0, %v6088_v1 }
 0x52d   :  { %5841 = vmatmul.mubr.msk.bf16.vlgmr.msra.gmra.mrb[104].mxu1 %vm28_vm7, %v4232_v2  ;;  %p6071_p3 = por %p6070_p2, %p6069_p1 }
 0x52e   :  { %5853 = vmatpush3.bf16.msra.mxu1 %v6061_v62  ;;  %5847 = vmatpush3.bf16.msra.mxu0 %v6062_v40 }
 0x52f   :  { %5854 = vmatprep.subr.bf16.mxu1 %v6088_v1  ;;  %5856 = vmatprep.mubr.msk.bf16.mxu1 %vm6089_vm0, %v6088_v1  ;;  %p6072_p4 = pnand %p6071_p3, %p6065_p0 }
 0x531   :  { %5849 = vmatmul.mubr.msk.bf16.vlgmr.msra.gmra.mrb[84].mxu0 %vm28_vm7, %v4300_v6 }
 0x532   :  { %5855 = vmatpush3.bf16.msra.mxu1 %v6063_v0 }
 0x535   :  { %5857 = vmatmul.mubr.msk.bf16.vlgmr.msra.gmra.mrb[108].mxu1 %vm28_vm7, %v4380_v8 }
 0x5f0   :  { %v3999_v9 = vpop.f32.mrb[96].mxu1 }
 0x5f1   :  { %v5810_v10 = vpop.f32.mrb[97].mxu1 }
 0x5f2   :  { %v4002_v11 = vpop.f32.mrb[98].mxu1 }
 0x5f3   :  { %v5811_v13 = vpop.f32.mrb[99].mxu1 }
 0x5f4   :  { %v4072_v14 = vpop.f32.mrb[76].mxu0 }
 0x5f5   :  { %v4073_v15 = vadd.f32 %v4072_v14, %v3999_v9  ;;  %v5818_v16 = vpop.f32.mrb[77].mxu0 }
 0x5f6   :  { %v4075_v18 = vpop.f32.mrb[78].mxu0 }
 0x5f7   :  { %v4076_v1 = vadd.f32 %v4075_v18, %v4002_v11  ;;  %v5819_v19 = vpop.f32.mrb[79].mxu0 }
 0x5f8   :  { %v4145_v12 = vpop.f32.mrb[100].mxu1 }
 0x5f9   :  { %v4152_v20 = vadd.f32 %v4145_v12, %v4073_v15  ;;  %v5826_v21 = vpop.f32.mrb[101].mxu1 }
 0x5fa   :  { %v4148_v22 = vpop.f32.mrb[102].mxu1 }
 0x5fb   :  { %v4153_v23 = vadd.f32 %v4148_v22, %v4076_v1  ;;  %v5827_v24 = vpop.f32.mrb[103].mxu1 }
 0x5fc   :  { %v4206_v25 = vpop.f32.mrb[80].mxu0 }
 0x5fd   :  { %v4213_v26 = vadd.f32 %v4206_v25, %v4152_v20  ;;  %v5834_v27 = vpop.f32.mrb[81].mxu0 }
 0x5fe   :  { %v4209_v28 = vpop.f32.mrb[82].mxu0 }
 0x5ff   :  { %v4214_v29 = vadd.f32 %v4209_v28, %v4153_v23  ;;  %v5835_v30 = vpop.f32.mrb[83].mxu0 }
 0x600   :  { %v4282_v33 = vpop.f32.mrb[104].mxu1 }
 0x601   :  { %v4289_v35 = vadd.f32 %v4282_v33, %v4213_v26  ;;  %v5842_v36 = vpop.f32.mrb[105].mxu1 }
 0x602   :  { %v4285_v39 = vpop.f32.mrb[106].mxu1 }
 0x603   :  { %v4290_v43 = vadd.f32 %v4285_v39, %v4214_v29  ;;  %v5843_v45 = vpop.f32.mrb[107].mxu1 }
 0x604   :  { %v4350_v46 = vpop.f32.mrb[84].mxu0 }
 0x605   :  { %v4357_v48 = vadd.f32 %v4350_v46, %v4289_v35  ;;  %v5850_v49 = vpop.f32.mrb[85].mxu0 }
 0x606   :  { %v4353_v50 = vpop.f32.mrb[86].mxu0 }
 0x607   :  { %v4358_v52 = vadd.f32 %v4353_v50, %v4290_v43  ;;  %v5851_v17 = vpop.f32.mrb[87].mxu0 }
 0x608   :  { %v4430_v53 = vpop.f32.mrb[108].mxu1 }
 0x609   :  { %v4437_v55 = vadd.f32 %v4430_v53, %v4357_v48  ;;  %v5858_v56 = vpop.f32.mrb[109].mxu1 }
 0x60a   :  { %v4433_v59 = vpop.f32.mrb[110].mxu1 }
 0x60b   :  { %v4446_v60 = vadd.f32 %v5054_v37, %v4437_v55  ;;  %v4438_v62 = vadd.f32 %v4433_v59, %v4358_v52  ;;  %v5859_v40 = vpop.f32.mrb[111].mxu1 }
 0x60d   :  { %v4464_v58 = vadd.f32 %v4459_v57, %v4446_v60  ;;  %v4447_v44 = vadd.f32 %v5054_v37, %v4438_v62 }
 0x60f   :  { %v4466_v2 = vmax.f32 %v4464_v58, 0.0  ;;  %v4465_v61 = vadd.f32 %v4461_v63, %v4447_v44 }
 0x611   :  { %4469 = vst [vmem:[#allocation4 + $0x10] sm:$0xff] %v4466_v2  ;;  %v4467_v4 = vmax.f32 %v4465_v61, 0.0 }
 0x613   :  { %4470 = vst [vmem:[#allocation4 + $0x18] sm:$0xff] %v4467_v4 }
 0x614   :  { %6075 = shalt.err (!%p6072_p4)
}
 0x615   :  { %s6076_s25 = scalar_lea.hbm %s7297_s7, 512 }
 0x616   :  { %p6077_p5 = scmp.ne.s32.totalorder %s7297_s7, %s6076_s25  ;;  %p6080_p6 = scmp.lt.u32.totalorder %s6076_s25, %s7297_s7 }
 0x618   :  { %p6082_p7 = pnand %p6080_p6, %p6077_p5 }
 0x61a   :  { %6085 = shalt.err (!%p6082_p7)
}
 0x61b   :  { %s6092_s29 = smov 128   ;;  %s6093_s30 = smov 8  }
 0x61c   :  { %4482 = dma.vmem_to_hbm [thread:$0]  %s4477_s4, 512, %s7297_s7, [#allocation5], %s6092_s29, %s6092_s29, %s6093_s30  }
 0x61d   :  { %6086 = dma.done.wait [#allocation5], 512  }
 0x61e   :  { %6087 = vsyncadd [#allocation5], 4294966784 }
 0x61f   :  { %4486 = vsyncpa [#allocation5], 1 }

</bundles_post_ra>
